<compile_context>
chip_gen: v5e
topology: v5e:2x2
jax: 0.10.0
libtpu: 0.0.40
codegen_flags: <defaults>
</compile_context>

<pallas_src>
import functools

import jax
import jax.numpy as jnp
import numpy as np
from jax.experimental import pallas as pl
from jax.experimental.pallas import tpu as pltpu


# -----------------------------------------------------------------------------
# helpers
# -----------------------------------------------------------------------------
def _softplus(x):
    # numerically-stable softplus, matches torch.nn.Softplus (beta=1) within fp32
    return jnp.maximum(x, 0.0) + jnp.log1p(jnp.exp(-jnp.abs(x)))


def _sigmoid(x):
    # single-EUP-op sigmoid: 0.5 * (tanh(x/2) + 1)  (== 1/(1+exp(-x)))
    return 0.5 * (jnp.tanh(0.5 * x) + 1.0)


def _auto_tile(n, cap=256):
    """Largest multiple-of-8 divisor of n that is <= cap (falls back to n).

    NOTE: cap was chosen for 128 MiB VMEM parts (v5e/v6e); on v7x (64 MiB per TC)
    halve the cap if M*(A+B) is large.
    """
    best = n
    t = 8
    while t <= min(n, cap):
        if n % t == 0:
            best = t
        t += 8
    return best


# -----------------------------------------------------------------------------
# Pallas kernels
# -----------------------------------------------------------------------------
def embed_kernel(x_ref, w_ref, b_ref, o_ref):
    # (T, F_in) @ (F_in, A) + (1, A)
    o_ref[...] = (
        jnp.dot(x_ref[...], w_ref[...], preferred_element_type=jnp.float32)
        + b_ref[...]
    )


def conv_kernel(x_ref, xg_ref, nbr_ref,
                wsf_ref, wsc_ref, wnf_ref, wnc_ref, wbf_ref, wbc_ref,
                bf_ref, bc_ref, bn2s_ref, bn2b_ref, o_ref):
    """One CGCNN ConvLayer for a tile of T atoms.

    x_ref   : (T, A)      current atom features (self term + residual)
    xg_ref  : (T*M, A)    gathered neighbor atom features (row t*M+m = nbr m of atom t)
    nbr_ref : (T*M, B)    bond features, flattened the same way
    w*_ref  : fc_full weight split by row-group {self,nbr,bond} x column-half
              {filter,core}, with eval-mode bn1 folded in
    b*_ref  : (1, A)      folded bias (filter / core halves)
    bn2*    : (1, A)      eval-mode bn2 as scale / shift
    o_ref   : (T, A)
    """
    T, A = x_ref.shape
    M = xg_ref.shape[0] // T

    x_t = x_ref[...]                                               # (T, A)
    xg = xg_ref[...]                                               # (T*M, A)
    nb = nbr_ref[...]                                              # (T*M, B)

    # per-neighbor contributions: one big (T*M)-row matmul per output half
    zf_nm = (jnp.dot(xg, wnf_ref[...], preferred_element_type=jnp.float32)
             + jnp.dot(nb, wbf_ref[...], preferred_element_type=jnp.float32))
    zc_nm = (jnp.dot(xg, wnc_ref[...], preferred_element_type=jnp.float32)
             + jnp.dot(nb, wbc_ref[...], preferred_element_type=jnp.float32))

    # self contributions computed once per atom (bias + bn1 already folded in)
    zf_s = jnp.dot(x_t, wsf_ref[...], preferred_element_type=jnp.float32) + bf_ref[...]
    zc_s = jnp.dot(x_t, wsc_ref[...], preferred_element_type=jnp.float32) + bc_ref[...]

    # broadcast self term over the M neighbors, gate, and reduce over M
    zf = zf_nm.reshape(T, M, A) + zf_s[:, None, :]
    zc = zc_nm.reshape(T, M, A) + zc_s[:, None, :]
    prod = _sigmoid(zf) * _softplus(zc)                            # (T, M, A)
    summed = jnp.sum(prod, axis=1)                                 # sum over neighbors

    summed = summed * bn2s_ref[...] + bn2b_ref[...]                # bn2 (eval)
    o_ref[...] = _softplus(x_t + summed)


def pool_head_kernel(p_ref, atom_ref, wc_ref, bc_ref, wo_ref, bo_ref, o_ref):
    """Crystal pooling (mean via pooling matrix) + conv_to_fc + fc_out."""
    # TODO(synk): at large N/N0 replace the dense pool_mat matmul with a
    # scalar-prefetched segment-mean and tile the head; trivial at test scale.
    crys = jnp.dot(p_ref[...], atom_ref[...], preferred_element_type=jnp.float32)
    h = _softplus(crys)                                            # conv_to_fc_softplus
    h = jnp.dot(h, wc_ref[...], preferred_element_type=jnp.float32) + bc_ref[...]
    h = _softplus(h)                                               # second softplus
    o_ref[...] = (
        jnp.dot(h, wo_ref[...], preferred_element_type=jnp.float32) + bo_ref[...]
    )


# -----------------------------------------------------------------------------
# parameters
# -----------------------------------------------------------------------------
def init_params(key, orig_atom_fea_len, nbr_fea_len, atom_fea_len, n_conv, h_fea_len):
    """Raw (PyTorch-shaped) parameters; BN params are eval-mode scale/shift."""
    keys = jax.random.split(key, 8 + 6 * n_conv)
    s = 0.1
    A = atom_fea_len
    params = {
        "emb_w": s * jax.random.normal(keys[0], (orig_atom_fea_len, A), jnp.float32),
        "emb_b": s * jax.random.normal(keys[1], (1, A), jnp.float32),
        "convs": [],
        "fc_w": s * jax.random.normal(keys[2], (A, h_fea_len), jnp.float32),
        "fc_b": s * jax.random.normal(keys[3], (1, h_fea_len), jnp.float32),
        "out_w": s * jax.random.normal(keys[4], (h_fea_len, 1), jnp.float32),
        "out_b": jnp.zeros((1, 1), jnp.float32),
    }
    for c in range(n_conv):
        kk = keys[5 + 6 * c: 11 + 6 * c]
        params["convs"].append({
            "w": s * jax.random.normal(kk[0], (2 * A + nbr_fea_len, 2 * A), jnp.float32),
            "b": s * jax.random.normal(kk[1], (1, 2 * A), jnp.float32),
            # non-trivial eval-mode BN scale/shift so the weight-folding is exercised
            "bn1_s": 1.0 + 0.1 * jax.random.normal(kk[2], (1, 2 * A), jnp.float32),
            "bn1_b": 0.1 * jax.random.normal(kk[3], (1, 2 * A), jnp.float32),
            "bn2_s": 1.0 + 0.1 * jax.random.normal(kk[4], (1, A), jnp.float32),
            "bn2_b": 0.1 * jax.random.normal(kk[5], (1, A), jnp.float32),
        })
    return params


def prepare_params(params):
    """Fold bn1 + bias into fc_full and split it into lane-aligned sub-weights."""
    A = params["emb_w"].shape[1]
    convs = []
    for cp in params["convs"]:
        w = cp["w"] * cp["bn1_s"]                      # (2A+B, 2A), bn1 scale folded
        b = cp["b"] * cp["bn1_s"] + cp["bn1_b"]        # (1, 2A),   bn1 shift folded
        convs.append(dict(
            wsf=w[:A, :A],          wsc=w[:A, A:],           # self  -> filter / core
            wnf=w[A:2 * A, :A],     wnc=w[A:2 * A, A:],      # nbr   -> filter / core
            wbf=w[2 * A:, :A],      wbc=w[2 * A:, A:],       # bond  -> filter / core
            bf=b[:, :A],            bc=b[:, A:],
            bn2_s=cp["bn2_s"],      bn2_b=cp["bn2_b"],
        ))
    return dict(
        emb_w=params["emb_w"], emb_b=params["emb_b"],
        fc_w=params["fc_w"], fc_b=params["fc_b"],
        out_w=params["out_w"], out_b=params["out_b"],
        convs=convs,
    )


# -----------------------------------------------------------------------------
# model wrapper
# -----------------------------------------------------------------------------
def crystal_graph_conv_net(prepared, atom_fea, nbr_fea, nbr_fea_idx, pool_mat,
                           tile_n=None):
    N, M = nbr_fea_idx.shape
    B = nbr_fea.shape[2]
    F = atom_fea.shape[1]
    A = prepared["emb_w"].shape[1]

    T = tile_n if tile_n is not None else _auto_tile(N)
    assert N % T == 0, "atom tile must divide N"
    G = N // T

    cparams = pltpu.CompilerParams(dimension_semantics=("parallel",))

    # ---- embedding (gridded over atom tiles) ---------------------------------
    x = pl.pallas_call(
        embed_kernel,
        out_shape=jax.ShapeDtypeStruct((N, A), jnp.float32),
        grid=(G,),
        in_specs=[pl.BlockSpec((T, F), lambda i: (i, 0)),
                  pl.BlockSpec((F, A), lambda i: (0, 0)),
                  pl.BlockSpec((1, A), lambda i: (0, 0))],
        out_specs=pl.BlockSpec((T, A), lambda i: (i, 0)),
        compiler_params=cparams,
    )(atom_fea, prepared["emb_w"], prepared["emb_b"])

    # ---- conv layers ----------------------------------------------------------
    nbr_flat = nbr_fea.reshape(N * M, B)       # bonds flattened once, reused per layer
    idx_flat = nbr_fea_idx.reshape(N * M)

    conv_call = pl.pallas_call(
        conv_kernel,
        out_shape=jax.ShapeDtypeStruct((N, A), jnp.float32),
        grid=(G,),
        in_specs=[
            pl.BlockSpec((T, A), lambda i: (i, 0)),          # x (self + residual)
            pl.BlockSpec((T * M, A), lambda i: (i, 0)),      # gathered neighbor atoms
            pl.BlockSpec((T * M, B), lambda i: (i, 0)),      # bond features
            pl.BlockSpec((A, A), lambda i: (0, 0)),          # wsf (resident)
            pl.BlockSpec((A, A), lambda i: (0, 0)),          # wsc
            pl.BlockSpec((A, A), lambda i: (0, 0)),          # wnf
            pl.BlockSpec((A, A), lambda i: (0, 0)),          # wnc
            pl.BlockSpec((B, A), lambda i: (0, 0)),          # wbf
            pl.BlockSpec((B, A), lambda i: (0, 0)),          # wbc
            pl.BlockSpec((1, A), lambda i: (0, 0)),          # bf
            pl.BlockSpec((1, A), lambda i: (0, 0)),          # bc
            pl.BlockSpec((1, A), lambda i: (0, 0)),          # bn2_s
            pl.BlockSpec((1, A), lambda i: (0, 0)),          # bn2_b
        ],
        out_specs=pl.BlockSpec((T, A), lambda i: (i, 0)),
        compiler_params=cparams,
    )

    for fp in prepared["convs"]:
        # narrow (width-A) XLA gather of current atom features; everything else
        # (matmuls, gating, neighbor reduction, bn2, residual) runs in the kernel
        xg = x[idx_flat]                                     # (N*M, A)
        x = conv_call(x, xg, nbr_flat,
                      fp["wsf"], fp["wsc"], fp["wnf"], fp["wnc"],
                      fp["wbf"], fp["wbc"], fp["bf"], fp["bc"],
                      fp["bn2_s"], fp["bn2_b"])

    # ---- pooling + head (small; whole-array VMEM) ------------------------------
    N0 = pool_mat.shape[0]
    vspec = pl.BlockSpec(memory_space=pltpu.MemorySpace.VMEM)
    out = pl.pallas_call(
        pool_head_kernel,
        out_shape=jax.ShapeDtypeStruct((N0, 1), jnp.float32),
        in_specs=[vspec] * 6,
        out_specs=vspec,
    )(pool_mat, x, prepared["fc_w"], prepared["fc_b"],
      prepared["out_w"], prepared["out_b"])
    return out


def make_pool_matrix(crystal_atom_idx, n_atoms):
    """Ragged list of atom-index arrays -> dense mean-pooling matrix (N0, N)."""
    n0 = len(crystal_atom_idx)
    p = np.zeros((n0, n_atoms), np.float32)
    for c, idx in enumerate(crystal_atom_idx):
        p[c, np.asarray(idx)] = 1.0 / len(idx)
    return jnp.asarray(p)


# -----------------------------------------------------------------------------
# pure-JAX reference (silent correctness check, mirrors the PyTorch module)
# -----------------------------------------------------------------------------
def ref_forward(params, atom_fea, nbr_fea, nbr_fea_idx, pool_mat):
    N, M = nbr_fea_idx.shape
    x = atom_fea @ params["emb_w"] + params["emb_b"]
    A = x.shape[1]
    for cp in params["convs"]:
        atom_nbr = x[nbr_fea_idx]
        total = jnp.concatenate(
            [jnp.broadcast_to(x[:, None, :], (N, M, A)), atom_nbr, nbr_fea], axis=2)
        z = total @ cp["w"] + cp["b"]
        z = z * cp["bn1_s"] + cp["bn1_b"]
        filt = jax.nn.sigmoid(z[..., :A])
        core = jax.nn.softplus(z[..., A:])
        summed = jnp.sum(filt * core, axis=1)
        summed = summed * cp["bn2_s"] + cp["bn2_b"]
        x = jax.nn.softplus(x + summed)
    crys = pool_mat @ x
    h = jax.nn.softplus(crys)
    h = jax.nn.softplus(h @ params["fc_w"] + params["fc_b"])
    return h @ params["out_w"] + params["out_b"]


# -----------------------------------------------------------------------------
if __name__ == "__main__":
    # small shapes consistent with the module's forward signature
    N = 64                  # total atoms in the batch
    M = 8                   # max neighbors
    orig_atom_fea_len = 32
    nbr_fea_len = 32
    atom_fea_len = 64       # module default
    n_conv = 3              # module default
    h_fea_len = 128         # module default

    key = jax.random.PRNGKey(0)
    k1, k2, k3, kp = jax.random.split(key, 4)

    atom_fea = jax.random.normal(k1, (N, orig_atom_fea_len), jnp.float32)
    nbr_fea = jax.random.normal(k2, (N, M, nbr_fea_len), jnp.float32)
    nbr_fea_idx = jax.random.randint(k3, (N, M), 0, N, dtype=jnp.int32)
    crystal_atom_idx = [np.arange(0, 40), np.arange(40, 64)]   # N0 = 2 crystals
    pool_mat = make_pool_matrix(crystal_atom_idx, N)

    params = init_params(kp, orig_atom_fea_len, nbr_fea_len,
                         atom_fea_len, n_conv, h_fea_len)
    prepared = prepare_params(params)   # fold bn1/bias, split weights (offline)

    fwd = jax.jit(functools.partial(crystal_graph_conv_net, tile_n=32))
    out = fwd(prepared, atom_fea, nbr_fea, nbr_fea_idx, pool_mat)
    out = jax.block_until_ready(out)

    ref = ref_forward(params, atom_fea, nbr_fea, nbr_fea_idx, pool_mat)
    np.testing.assert_allclose(np.asarray(out), np.asarray(ref), rtol=2e-4, atol=2e-4)

    print("KERNEL_OK")
</pallas_src>

<mosaic_0001>
module attributes {stable_mosaic.version = 11 : i64} {
  func.func @embed_kernel(%arg0: i32, %arg1: memref<32x32xf32, #tpu.memory_space<vmem>>, %arg2: memref<32x64xf32, #tpu.memory_space<vmem>>, %arg3: memref<1x64xf32, #tpu.memory_space<vmem>>, %arg4: memref<32x64xf32, #tpu.memory_space<vmem>>) attributes {dimension_semantics = [#tpu.dimension_semantics<parallel>], iteration_bounds = array<i64: 2>, scalar_prefetch = 0 : i64, scratch_operands = 0 : i64, tpu.core_type = #tpu.core_type<tc>, window_params = [{transform_indices = @transform_0, window_bounds = array<i64: 32, 32>}, {pipeline_mode = #tpu.pipeline_mode<synchronous>, transform_indices = @transform_1, window_bounds = array<i64: 32, 64>}, {pipeline_mode = #tpu.pipeline_mode<synchronous>, transform_indices = @transform_2, window_bounds = array<i64: 1, 64>}, {transform_indices = @transform_3, window_bounds = array<i64: 32, 64>}]} {
    %c0 = arith.constant 0 : index
    %c0_0 = arith.constant 0 : index
    %0 = vector.load %arg1[%c0, %c0_0] : memref<32x32xf32, #tpu.memory_space<vmem>>, vector<32x32xf32>
    %c0_1 = arith.constant 0 : index
    %c0_2 = arith.constant 0 : index
    %1 = vector.load %arg2[%c0_1, %c0_2] : memref<32x64xf32, #tpu.memory_space<vmem>>, vector<32x64xf32>
    %cst = arith.constant dense<0.000000e+00> : vector<32x64xf32>
    %2 = tpu.matmul %0, %1, %cst {dimension_numbers = #tpu.dot_dimension_numbers<[1], [0], [0], [1], [0, 0, 1, 1], [], []>} : vector<32x32xf32>, vector<32x64xf32>, vector<32x64xf32> -> vector<32x64xf32>
    %c0_3 = arith.constant 0 : index
    %c0_4 = arith.constant 0 : index
    %3 = vector.load %arg3[%c0_3, %c0_4] : memref<1x64xf32, #tpu.memory_space<vmem>>, vector<1x64xf32>
    %4 = vector.broadcast %3 : vector<1x64xf32> to vector<32x64xf32>
    %5 = arith.addf %2, %4 : vector<32x64xf32>
    %c0_5 = arith.constant 0 : index
    %c0_6 = arith.constant 0 : index
    %6 = vector.load %arg4[%c0_5, %c0_6] : memref<32x64xf32, #tpu.memory_space<vmem>>, vector<32x64xf32>
    tpu.vector_store %arg4[%c0_5, %c0_6], %5 {strides = array<i32>} : memref<32x64xf32, #tpu.memory_space<vmem>>, vector<32x64xf32>,
    return
  }
  func.func @transform_0(%arg0: i32) -> (i32, i32) {
    %c0_i32 = arith.constant 0 : i32
    %c0_i32_0 = arith.constant 0 : i32
    return %arg0, %c0_i32 : i32, i32
  }
  func.func @transform_1(%arg0: i32) -> (i32, i32) {
    %c0_i32 = arith.constant 0 : i32
    %c0_i32_0 = arith.constant 0 : i32
    %c0_i32_1 = arith.constant 0 : i32
    return %c0_i32, %c0_i32_0 : i32, i32
  }
  func.func @transform_2(%arg0: i32) -> (i32, i32) {
    %c0_i32 = arith.constant 0 : i32
    %c0_i32_0 = arith.constant 0 : i32
    %c0_i32_1 = arith.constant 0 : i32
    return %c0_i32, %c0_i32_0 : i32, i32
  }
  func.func @transform_3(%arg0: i32) -> (i32, i32) {
    %c0_i32 = arith.constant 0 : i32
    %c0_i32_0 = arith.constant 0 : i32
    return %arg0, %c0_i32 : i32, i32
  }
}

module attributes {stable_mosaic.version = 11 : i64} {
  func.func @conv_kernel(%arg0: i32, %arg1: memref<32x64xf32, #tpu.memory_space<vmem>>, %arg2: memref<256x64xf32, #tpu.memory_space<vmem>>, %arg3: memref<256x32xf32, #tpu.memory_space<vmem>>, %arg4: memref<64x64xf32, #tpu.memory_space<vmem>>, %arg5: memref<64x64xf32, #tpu.memory_space<vmem>>, %arg6: memref<64x64xf32, #tpu.memory_space<vmem>>, %arg7: memref<64x64xf32, #tpu.memory_space<vmem>>, %arg8: memref<32x64xf32, #tpu.memory_space<vmem>>, %arg9: memref<32x64xf32, #tpu.memory_space<vmem>>, %arg10: memref<1x64xf32, #tpu.memory_space<vmem>>, %arg11: memref<1x64xf32, #tpu.memory_space<vmem>>, %arg12: memref<1x64xf32, #tpu.memory_space<vmem>>, %arg13: memref<1x64xf32, #tpu.memory_space<vmem>>, %arg14: memref<32x64xf32, #tpu.memory_space<vmem>>) attributes {dimension_semantics = [#tpu.dimension_semantics<parallel>], iteration_bounds = array<i64: 2>, scalar_prefetch = 0 : i64, scratch_operands = 0 : i64, tpu.core_type = #tpu.core_type<tc>, window_params = [{transform_indices = @transform_0, window_bounds = array<i64: 32, 64>}, {transform_indices = @transform_1, window_bounds = array<i64: 256, 64>}, {transform_indices = @transform_2, window_bounds = array<i64: 256, 32>}, {pipeline_mode = #tpu.pipeline_mode<synchronous>, transform_indices = @transform_3, window_bounds = array<i64: 64, 64>}, {pipeline_mode = #tpu.pipeline_mode<synchronous>, transform_indices = @transform_4, window_bounds = array<i64: 64, 64>}, {pipeline_mode = #tpu.pipeline_mode<synchronous>, transform_indices = @transform_5, window_bounds = array<i64: 64, 64>}, {pipeline_mode = #tpu.pipeline_mode<synchronous>, transform_indices = @transform_6, window_bounds = array<i64: 64, 64>}, {pipeline_mode = #tpu.pipeline_mode<synchronous>, transform_indices = @transform_7, window_bounds = array<i64: 32, 64>}, {pipeline_mode = #tpu.pipeline_mode<synchronous>, transform_indices = @transform_8, window_bounds = array<i64: 32, 64>}, {pipeline_mode = #tpu.pipeline_mode<synchronous>, transform_indices = @transform_9, window_bounds = array<i64: 1, 64>}, {pipeline_mode = #tpu.pipeline_mode<synchronous>, transform_indices = @transform_10, window_bounds = array<i64: 1, 64>}, {pipeline_mode = #tpu.pipeline_mode<synchronous>, transform_indices = @transform_11, window_bounds = array<i64: 1, 64>}, {pipeline_mode = #tpu.pipeline_mode<synchronous>, transform_indices = @transform_12, window_bounds = array<i64: 1, 64>}, {transform_indices = @transform_13, window_bounds = array<i64: 32, 64>}]} {
    %c0 = arith.constant 0 : index
    %c0_0 = arith.constant 0 : index
    %0 = vector.load %arg1[%c0, %c0_0] : memref<32x64xf32, #tpu.memory_space<vmem>>, vector<32x64xf32>
    %c0_1 = arith.constant 0 : index
    %c0_2 = arith.constant 0 : index
    %1 = vector.load %arg2[%c0_1, %c0_2] : memref<256x64xf32, #tpu.memory_space<vmem>>, vector<256x64xf32>
    %c0_3 = arith.constant 0 : index
    %c0_4 = arith.constant 0 : index
    %2 = vector.load %arg3[%c0_3, %c0_4] : memref<256x32xf32, #tpu.memory_space<vmem>>, vector<256x32xf32>
    %c0_5 = arith.constant 0 : index
    %c0_6 = arith.constant 0 : index
    %3 = vector.load %arg6[%c0_5, %c0_6] : memref<64x64xf32, #tpu.memory_space<vmem>>, vector<64x64xf32>
    %cst = arith.constant dense<0.000000e+00> : vector<256x64xf32>
    %4 = tpu.matmul %1, %3, %cst {dimension_numbers = #tpu.dot_dimension_numbers<[1], [0], [0], [1], [0, 0, 1, 1], [], []>} : vector<256x64xf32>, vector<64x64xf32>, vector<256x64xf32> -> vector<256x64xf32>
    %c0_7 = arith.constant 0 : index
    %c0_8 = arith.constant 0 : index
    %5 = vector.load %arg8[%c0_7, %c0_8] : memref<32x64xf32, #tpu.memory_space<vmem>>, vector<32x64xf32>
    %cst_9 = arith.constant dense<0.000000e+00> : vector<256x64xf32>
    %6 = tpu.matmul %2, %5, %cst_9 {dimension_numbers = #tpu.dot_dimension_numbers<[1], [0], [0], [1], [0, 0, 1, 1], [], []>} : vector<256x32xf32>, vector<32x64xf32>, vector<256x64xf32> -> vector<256x64xf32>
    %7 = arith.addf %4, %6 : vector<256x64xf32>
    %c0_10 = arith.constant 0 : index
    %c0_11 = arith.constant 0 : index
    %8 = vector.load %arg7[%c0_10, %c0_11] : memref<64x64xf32, #tpu.memory_space<vmem>>, vector<64x64xf32>
    %cst_12 = arith.constant dense<0.000000e+00> : vector<256x64xf32>
    %9 = tpu.matmul %1, %8, %cst_12 {dimension_numbers = #tpu.dot_dimension_numbers<[1], [0], [0], [1], [0, 0, 1, 1], [], []>} : vector<256x64xf32>, vector<64x64xf32>, vector<256x64xf32> -> vector<256x64xf32>
    %c0_13 = arith.constant 0 : index
    %c0_14 = arith.constant 0 : index
    %10 = vector.load %arg9[%c0_13, %c0_14] : memref<32x64xf32, #tpu.memory_space<vmem>>, vector<32x64xf32>
    %cst_15 = arith.constant dense<0.000000e+00> : vector<256x64xf32>
    %11 = tpu.matmul %2, %10, %cst_15 {dimension_numbers = #tpu.dot_dimension_numbers<[1], [0], [0], [1], [0, 0, 1, 1], [], []>} : vector<256x32xf32>, vector<32x64xf32>, vector<256x64xf32> -> vector<256x64xf32>
    %12 = arith.addf %9, %11 : vector<256x64xf32>
    %c0_16 = arith.constant 0 : index
    %c0_17 = arith.constant 0 : index
    %13 = vector.load %arg4[%c0_16, %c0_17] : memref<64x64xf32, #tpu.memory_space<vmem>>, vector<64x64xf32>
    %cst_18 = arith.constant dense<0.000000e+00> : vector<32x64xf32>
    %14 = tpu.matmul %0, %13, %cst_18 {dimension_numbers = #tpu.dot_dimension_numbers<[1], [0], [0], [1], [0, 0, 1, 1], [], []>} : vector<32x64xf32>, vector<64x64xf32>, vector<32x64xf32> -> vector<32x64xf32>
    %c0_19 = arith.constant 0 : index
    %c0_20 = arith.constant 0 : index
    %15 = vector.load %arg10[%c0_19, %c0_20] : memref<1x64xf32, #tpu.memory_space<vmem>>, vector<1x64xf32>
    %16 = vector.broadcast %15 : vector<1x64xf32> to vector<32x64xf32>
    %17 = arith.addf %14, %16 : vector<32x64xf32>
    %c0_21 = arith.constant 0 : index
    %c0_22 = arith.constant 0 : index
    %18 = vector.load %arg5[%c0_21, %c0_22] : memref<64x64xf32, #tpu.memory_space<vmem>>, vector<64x64xf32>
    %cst_23 = arith.constant dense<0.000000e+00> : vector<32x64xf32>
    %19 = tpu.matmul %0, %18, %cst_23 {dimension_numbers = #tpu.dot_dimension_numbers<[1], [0], [0], [1], [0, 0, 1, 1], [], []>} : vector<32x64xf32>, vector<64x64xf32>, vector<32x64xf32> -> vector<32x64xf32>
    %c0_24 = arith.constant 0 : index
    %c0_25 = arith.constant 0 : index
    %20 = vector.load %arg11[%c0_24, %c0_25] : memref<1x64xf32, #tpu.memory_space<vmem>>, vector<1x64xf32>
    %21 = vector.broadcast %20 : vector<1x64xf32> to vector<32x64xf32>
    %22 = arith.addf %19, %21 : vector<32x64xf32>
    %23 = vector.shape_cast %7 : vector<256x64xf32> to vector<32x8x64xf32>
    %24 = vector.shape_cast %17 : vector<32x64xf32> to vector<32x1x64xf32>
    %25 = vector.broadcast %24 : vector<32x1x64xf32> to vector<32x8x64xf32>
    %26 = arith.addf %23, %25 : vector<32x8x64xf32>
    %27 = vector.shape_cast %12 : vector<256x64xf32> to vector<32x8x64xf32>
    %28 = vector.shape_cast %22 : vector<32x64xf32> to vector<32x1x64xf32>
    %29 = vector.broadcast %28 : vector<32x1x64xf32> to vector<32x8x64xf32>
    %30 = arith.addf %27, %29 : vector<32x8x64xf32>
    %cst_26 = arith.constant 5.000000e-01 : f32
    %31 = vector.broadcast %cst_26 : f32 to vector<32x8x64xf32>
    %32 = arith.mulf %31, %26 : vector<32x8x64xf32>
    %33 = math.tanh %32 : vector<32x8x64xf32>
    %cst_27 = arith.constant 1.000000e+00 : f32
    %34 = vector.broadcast %cst_27 : f32 to vector<32x8x64xf32>
    %35 = arith.addf %33, %34 : vector<32x8x64xf32>
    %cst_28 = arith.constant 5.000000e-01 : f32
    %36 = vector.broadcast %cst_28 : f32 to vector<32x8x64xf32>
    %37 = arith.mulf %36, %35 : vector<32x8x64xf32>
    %cst_29 = arith.constant 0.000000e+00 : f32
    %38 = vector.broadcast %cst_29 : f32 to vector<32x8x64xf32>
    %39 = arith.maximumf %30, %38 : vector<32x8x64xf32>
    %40 = math.absf %30 : vector<32x8x64xf32>
    %cst_30 = arith.constant 0.000000e+00 : f32
    %41 = vector.broadcast %cst_30 : f32 to vector<32x8x64xf32>
    %42 = arith.subf %41, %40 : vector<32x8x64xf32>
    %43 = math.exp %42 : vector<32x8x64xf32>
    %44 = math.log1p %43 : vector<32x8x64xf32>
    %45 = arith.addf %39, %44 : vector<32x8x64xf32>
    %46 = arith.mulf %37, %45 : vector<32x8x64xf32>
    %cst_31 = arith.constant dense<0.000000e+00> : vector<32x64xf32>
    %47 = vector.multi_reduction <add>, %46, %cst_31 [1] : vector<32x8x64xf32> to vector<32x64xf32>
    %c0_32 = arith.constant 0 : index
    %c0_33 = arith.constant 0 : index
    %48 = vector.load %arg12[%c0_32, %c0_33] : memref<1x64xf32, #tpu.memory_space<vmem>>, vector<1x64xf32>
    %49 = vector.broadcast %48 : vector<1x64xf32> to vector<32x64xf32>
    %50 = arith.mulf %47, %49 : vector<32x64xf32>
    %c0_34 = arith.constant 0 : index
    %c0_35 = arith.constant 0 : index
    %51 = vector.load %arg13[%c0_34, %c0_35] : memref<1x64xf32, #tpu.memory_space<vmem>>, vector<1x64xf32>
    %52 = vector.broadcast %51 : vector<1x64xf32> to vector<32x64xf32>
    %53 = arith.addf %50, %52 : vector<32x64xf32>
    %54 = arith.addf %0, %53 : vector<32x64xf32>
    %cst_36 = arith.constant 0.000000e+00 : f32
    %55 = vector.broadcast %cst_36 : f32 to vector<32x64xf32>
    %56 = arith.maximumf %54, %55 : vector<32x64xf32>
    %57 = math.absf %54 : vector<32x64xf32>
    %cst_37 = arith.constant 0.000000e+00 : f32
    %58 = vector.broadcast %cst_37 : f32 to vector<32x64xf32>
    %59 = arith.subf %58, %57 : vector<32x64xf32>
    %60 = math.exp %59 : vector<32x64xf32>
    %61 = math.log1p %60 : vector<32x64xf32>
    %62 = arith.addf %56, %61 : vector<32x64xf32>
    %c0_38 = arith.constant 0 : index
    %c0_39 = arith.constant 0 : index
    %63 = vector.load %arg14[%c0_38, %c0_39] : memref<32x64xf32, #tpu.memory_space<vmem>>, vector<32x64xf32>
    tpu.vector_store %arg14[%c0_38, %c0_39], %62 {strides = array<i32>} : memref<32x64xf32, #tpu.memory_space<vmem>>, vector<32x64xf32>,
    return
  }
  func.func @transform_0(%arg0: i32) -> (i32, i32) {
    %c0_i32 = arith.constant 0 : i32
    %c0_i32_0 = arith.constant 0 : i32
    return %arg0, %c0_i32 : i32, i32
  }
  func.func @transform_1(%arg0: i32) -> (i32, i32) {
    %c0_i32 = arith.constant 0 : i32
    %c0_i32_0 = arith.constant 0 : i32
    return %arg0, %c0_i32 : i32, i32
  }
  func.func @transform_2(%arg0: i32) -> (i32, i32) {
    %c0_i32 = arith.constant 0 : i32
    %c0_i32_0 = arith.constant 0 : i32
    return %arg0, %c0_i32 : i32, i32
  }
  func.func @transform_3(%arg0: i32) -> (i32, i32) {
    %c0_i32 = arith.constant 0 : i32
    %c0_i32_0 = arith.constant 0 : i32
    %c0_i32_1 = arith.constant 0 : i32
    return %c0_i32, %c0_i32_0 : i32, i32
  }
  func.func @transform_4(%arg0: i32) -> (i32, i32) {
    %c0_i32 = arith.constant 0 : i32
    %c0_i32_0 = arith.constant 0 : i32
    %c0_i32_1 = arith.constant 0 : i32
    return %c0_i32, %c0_i32_0 : i32, i32
  }
  func.func @transform_5(%arg0: i32) -> (i32, i32) {
    %c0_i32 = arith.constant 0 : i32
    %c0_i32_0 = arith.constant 0 : i32
    %c0_i32_1 = arith.constant 0 : i32
    return %c0_i32, %c0_i32_0 : i32, i32
  }
  func.func @transform_6(%arg0: i32) -> (i32, i32) {
    %c0_i32 = arith.constant 0 : i32
    %c0_i32_0 = arith.constant 0 : i32
    %c0_i32_1 = arith.constant 0 : i32
    return %c0_i32, %c0_i32_0 : i32, i32
  }
  func.func @transform_7(%arg0: i32) -> (i32, i32) {
    %c0_i32 = arith.constant 0 : i32
    %c0_i32_0 = arith.constant 0 : i32
    %c0_i32_1 = arith.constant 0 : i32
    return %c0_i32, %c0_i32_0 : i32, i32
  }
  func.func @transform_8(%arg0: i32) -> (i32, i32) {
    %c0_i32 = arith.constant 0 : i32
    %c0_i32_0 = arith.constant 0 : i32
    %c0_i32_1 = arith.constant 0 : i32
    return %c0_i32, %c0_i32_0 : i32, i32
  }
  func.func @transform_9(%arg0: i32) -> (i32, i32) {
    %c0_i32 = arith.constant 0 : i32
    %c0_i32_0 = arith.constant 0 : i32
    %c0_i32_1 = arith.constant 0 : i32
    return %c0_i32, %c0_i32_0 : i32, i32
  }
  func.func @transform_10(%arg0: i32) -> (i32, i32) {
    %c0_i32 = arith.constant 0 : i32
    %c0_i32_0 = arith.constant 0 : i32
    %c0_i32_1 = arith.constant 0 : i32
    return %c0_i32, %c0_i32_0 : i32, i32
  }
  func.func @transform_11(%arg0: i32) -> (i32, i32) {
    %c0_i32 = arith.constant 0 : i32
    %c0_i32_0 = arith.constant 0 : i32
    %c0_i32_1 = arith.constant 0 : i32
    return %c0_i32, %c0_i32_0 : i32, i32
  }
  func.func @transform_12(%arg0: i32) -> (i32, i32) {
    %c0_i32 = arith.constant 0 : i32
    %c0_i32_0 = arith.constant 0 : i32
    %c0_i32_1 = arith.constant 0 : i32
    return %c0_i32, %c0_i32_0 : i32, i32
  }
  func.func @transform_13(%arg0: i32) -> (i32, i32) {
    %c0_i32 = arith.constant 0 : i32
    %c0_i32_0 = arith.constant 0 : i32
    return %arg0, %c0_i32 : i32, i32
  }
}

module attributes {stable_mosaic.version = 11 : i64} {
  func.func @pool_head_kernel(%arg0: memref<2x64xf32, #tpu.memory_space<vmem>>, %arg1: memref<64x64xf32, #tpu.memory_space<vmem>>, %arg2: memref<64x128xf32, #tpu.memory_space<vmem>>, %arg3: memref<1x128xf32, #tpu.memory_space<vmem>>, %arg4: memref<128x1xf32, #tpu.memory_space<vmem>>, %arg5: memref<1x1xf32, #tpu.memory_space<vmem>>, %arg6: memref<2x1xf32, #tpu.memory_space<vmem>>) attributes {dimension_semantics = [], scalar_prefetch = 0 : i64, scratch_operands = 0 : i64, tpu.core_type = #tpu.core_type<tc>} {
    %c0 = arith.constant 0 : index
    %c0_0 = arith.constant 0 : index
    %0 = vector.load %arg0[%c0, %c0_0] : memref<2x64xf32, #tpu.memory_space<vmem>>, vector<2x64xf32>
    %c0_1 = arith.constant 0 : index
    %c0_2 = arith.constant 0 : index
    %1 = vector.load %arg1[%c0_1, %c0_2] : memref<64x64xf32, #tpu.memory_space<vmem>>, vector<64x64xf32>
    %cst = arith.constant dense<0.000000e+00> : vector<2x64xf32>
    %2 = tpu.matmul %0, %1, %cst {dimension_numbers = #tpu.dot_dimension_numbers<[1], [0], [0], [1], [0, 0, 1, 1], [], []>} : vector<2x64xf32>, vector<64x64xf32>, vector<2x64xf32> -> vector<2x64xf32>
    %cst_3 = arith.constant 0.000000e+00 : f32
    %3 = vector.broadcast %cst_3 : f32 to vector<2x64xf32>
    %4 = arith.maximumf %2, %3 : vector<2x64xf32>
    %5 = math.absf %2 : vector<2x64xf32>
    %cst_4 = arith.constant 0.000000e+00 : f32
    %6 = vector.broadcast %cst_4 : f32 to vector<2x64xf32>
    %7 = arith.subf %6, %5 : vector<2x64xf32>
    %8 = math.exp %7 : vector<2x64xf32>
    %9 = math.log1p %8 : vector<2x64xf32>
    %10 = arith.addf %4, %9 : vector<2x64xf32>
    %c0_5 = arith.constant 0 : index
    %c0_6 = arith.constant 0 : index
    %11 = vector.load %arg2[%c0_5, %c0_6] : memref<64x128xf32, #tpu.memory_space<vmem>>, vector<64x128xf32>
    %cst_7 = arith.constant dense<0.000000e+00> : vector<2x128xf32>
    %12 = tpu.matmul %10, %11, %cst_7 {dimension_numbers = #tpu.dot_dimension_numbers<[1], [0], [0], [1], [0, 0, 1, 1], [], []>} : vector<2x64xf32>, vector<64x128xf32>, vector<2x128xf32> -> vector<2x128xf32>
    %c0_8 = arith.constant 0 : index
    %c0_9 = arith.constant 0 : index
    %13 = vector.load %arg3[%c0_8, %c0_9] : memref<1x128xf32, #tpu.memory_space<vmem>>, vector<1x128xf32>
    %14 = vector.broadcast %13 : vector<1x128xf32> to vector<2x128xf32>
    %15 = arith.addf %12, %14 : vector<2x128xf32>
    %cst_10 = arith.constant 0.000000e+00 : f32
    %16 = vector.broadcast %cst_10 : f32 to vector<2x128xf32>
    %17 = arith.maximumf %15, %16 : vector<2x128xf32>
    %18 = math.absf %15 : vector<2x128xf32>
    %cst_11 = arith.constant 0.000000e+00 : f32
    %19 = vector.broadcast %cst_11 : f32 to vector<2x128xf32>
    %20 = arith.subf %19, %18 : vector<2x128xf32>
    %21 = math.exp %20 : vector<2x128xf32>
    %22 = math.log1p %21 : vector<2x128xf32>
    %23 = arith.addf %17, %22 : vector<2x128xf32>
    %c0_12 = arith.constant 0 : index
    %c0_13 = arith.constant 0 : index
    %24 = vector.load %arg4[%c0_12, %c0_13] : memref<128x1xf32, #tpu.memory_space<vmem>>, vector<128x1xf32>
    %cst_14 = arith.constant dense<0.000000e+00> : vector<2x1xf32>
    %25 = tpu.matmul %23, %24, %cst_14 {dimension_numbers = #tpu.dot_dimension_numbers<[1], [0], [0], [1], [0, 0, 1, 1], [], []>} : vector<2x128xf32>, vector<128x1xf32>, vector<2x1xf32> -> vector<2x1xf32>
    %c0_15 = arith.constant 0 : index
    %c0_16 = arith.constant 0 : index
    %26 = vector.load %arg5[%c0_15, %c0_16] : memref<1x1xf32, #tpu.memory_space<vmem>>, vector<1x1xf32>
    %27 = vector.broadcast %26 : vector<1x1xf32> to vector<2x1xf32>
    %28 = arith.addf %25, %27 : vector<2x1xf32>
    %c0_17 = arith.constant 0 : index
    %c0_18 = arith.constant 0 : index
    %29 = vector.load %arg6[%c0_17, %c0_18] : memref<2x1xf32, #tpu.memory_space<vmem>>, vector<2x1xf32>
    tpu.vector_store %arg6[%c0_17, %c0_18], %28 {strides = array<i32>} : memref<2x1xf32, #tpu.memory_space<vmem>>, vector<2x1xf32>,
    return
  }
}

</mosaic_0001>

<bundles_post_ra>
// kernel: crystal_graph_conv_net.5
= control target key start
LH: loop header
LB: loop body
LE: loop exit
PB: predicated region body
PF: predicated region fallthrough
CT: control target
= control target key end

     0   :  { %s353_s12 = smov 0   ;;  %s385_s0 = inlined_call_operand.vmem [shape: f32[64,32], index: 0, kind: input, shape index: {}]   ;;  %s386_s1 = inlined_call_operand.vmem [shape: f32[32,64], index: 1, kind: input, shape index: {}]   ;;  %s387_s2 = inlined_call_operand.vmem [shape: f32[1,64], index: 2, kind: input, shape index: {}]   ;;  %s388_s3 = inlined_call_operand.vmem [shape: f32[64,64], index: 3, kind: output, shape index: {}]  }
   0x1 LB: > { %s289_s13 = sadd.s32 4294967295, %s331_s12   ;;  %p293_p0 = scmp.ge.s32.totalorder %s331_s12, 1  ;;  %s331_s12 = sphi %s353_s12, %s13_s12  }
   0x2   : > { %p138_p1 = scmp.lt.s32.totalorder %s331_s12, 3 }
   0x4   : > { %p139_p2 = pnand %p293_p0, %p138_p1 }
   0x5   : > { %s294_s18 = sshll.u32 (!%p139_p2), %s289_s13, 2 }
   0x6   : > { %142 = sbr.rel (%p139_p2) target bundleno = 155 (0x9b), region = 32  ;;  %p163_p3 = scmp.lt.s32.totalorder (!%p139_p2), %s294_s18, 7 }
   0xb   : > { %v181_v0 = vld [vmem:[%s386_s1 + $0x18] sm:$0xff]  ;;  %v180_v1 = vld [vmem:[%s386_s1 + $0x10] sm:$0xff]  ;;  %v179_v2 = vld [vmem:[%s386_s1 + $0x8] sm:$0xff]  ;;  %s390_s18 = smov (!%p163_p3, %s294_s18), 7  ;;  %vm186_vm0 = vcmask 261120   ;;  %vm228_vm1 = vcmask 523264  }
   0xc   : > { %305 = vmatpush.msra.mxu2 %v181_v0  ;;  %306 = vmatpush.msra.mxu3 %v181_v0  ;;  %v178_v3 = vld [vmem:[%s386_s1] sm:$0xff]  ;;  %s295_s23 = sshll.u32 %s390_s18, 3 }
   0xd   : > { %211 = vmatpush.msra.mxu0 %v181_v0  ;;  %304 = vmatpush.msra.mxu1 %v181_v0  ;;  %s166_s26 = scalar_lea.vmem %s385_s0, %s295_s23  ;;  %v324_v8 = vld [vmem:[%s387_s2] ss:$0 sm:$0xff]  ;;  %s172_s4 = scalar_lea.vmem %s388_s3, %s295_s23 }
   0xe   : > { %308 = vmatpush.msra.mxu2 %v180_v1  ;;  %309 = vmatpush.msra.mxu3 %v180_v1  ;;  %v176_v4 = vld [vmem:[%s166_s26 + $0x10] sm:$0xff]  ;;  %v177_v5 = vld [vmem:[%s166_s26 + $0x18] sm:$0xff]  ;;  %v174_v6 = vld [vmem:[%s166_s26] sm:$0xff] }
   0xf   : > { %212 = vmatpush.msra.mxu0 %v180_v1  ;;  %307 = vmatpush.msra.mxu1 %v180_v1  ;;  %v175_v7 = vld [vmem:[%s166_s26 + $0x8] sm:$0xff] }
  0x10   : > { %311 = vmatpush.msra.mxu2 %v179_v2  ;;  %312 = vmatpush.msra.mxu3 %v179_v2 }
  0x11   : > { %213 = vmatpush.msra.mxu0 %v179_v2  ;;  %310 = vmatpush.msra.mxu1 %v179_v2 }
  0x12   : > { %314 = vmatpush.msra.mxu2 %v178_v3  ;;  %315 = vmatpush.msra.mxu3 %v178_v3 }
  0x13   : > { %300 = vmatmul.msk.f32.vlgmr.msra.gmra.mxu2 %vm186_vm0, %v176_v4  ;;  %301 = vmatmul.msk.f32.vlgmr.msra.gmra.mxu3 %vm186_vm0, %v177_v5 }
  0x14   : > { %214 = vmatpush.msra.mxu0 %v178_v3  ;;  %313 = vmatpush.msra.mxu1 %v178_v3 }
  0x15   : > { %298 = vmatmul.msk.f32.vlgmr.msra.gmra.mxu0 %vm186_vm0, %v174_v6  ;;  %299 = vmatmul.msk.f32.vlgmr.msra.gmra.mxu1 %vm186_vm0, %v175_v7 }
  0x92   : > { %v216_v9 = vpop.f32.mrf.mxu0  ;;  %v219_v10 = vpop.f32.mrf.mxu1 }
  0x93   : > { %v217_v11 = vadd.f32 %v324_v8, %v216_v9  ;;  %v220_v12 = vadd.f32 %v324_v8, %v219_v10 }
  0x95   : > { %229 = vst.msk [vmem:[%s172_s4] sm:$0xff] %vm228_vm1, %v217_v11 }
  0x96   : > { %230 = vst.msk [vmem:[%s172_s4 + $0x8] sm:$0xff] %vm228_vm1, %v220_v12  ;;  %v222_v13 = vpop.f32.mrf.mxu2  ;;  %v225_v14 = vpop.f32.mrf.mxu3 }
  0x97   : > { %v223_v15 = vadd.f32 %v324_v8, %v222_v13  ;;  %v226_v16 = vadd.f32 %v324_v8, %v225_v14 }
  0x99   : > { %231 = vst.msk [vmem:[%s172_s4 + $0x10] sm:$0xff] %vm228_vm1, %v223_v15 }
  0x9a   : > { %232 = vst.msk [vmem:[%s172_s4 + $0x18] sm:$0xff] %vm228_vm1, %v226_v16 }
  0x9b PF: > { %s13_s12 = sadd.s32 1, %s331_s12  }
  0x9c   : > { %p10_p4 = scmp.ge.s32.totalorder %s13_s12, 4  }
  0x9e   :  { %12 = sbr.rel (!%p10_p4) target bundleno = 1 (0x1), region = 62 }

// kernel: crystal_graph_conv_net.9
= control target key start
LH: loop header
LB: loop body
LE: loop exit
PB: predicated region body
PF: predicated region fallthrough
CT: control target
= control target key end

     0   :  { %vm34_vm0 = vcmask 523264   ;;  %vm163_vm3 = vcmask 1024   ;;  %s326_s1 = inlined_call_operand.vmem [shape: f32[64,64], index: 1, kind: input, shape index: {}]   ;;  %s327_s0 = inlined_call_operand.vmem [shape: f32[2,64], index: 0, kind: input, shape index: {}]   ;;  %s328_s3 = inlined_call_operand.vmem [shape: f32[1,128], index: 3, kind: input, shape index: {}]   ;;  %s329_s2 = inlined_call_operand.vmem [shape: f32[64,128], index: 2, kind: input, shape index: {}]   ;;  %s330_s4 = inlined_call_operand.vmem [shape: f32[128,1], index: 4, kind: input, shape index: {}]   ;;  %s331_s5 = inlined_call_operand.<no memory space> [shape: f32[1,1], index: 5, kind: input, shape index: {}]   ;;  %s332_s6 = inlined_call_operand.vmem [shape: f32[2,1], index: 6, kind: output, shape index: {}]  }
   0x1   :  { %v33_v0 = vld [vmem:[%s326_s1 + $0x38] sm:$0xff]  ;;  %v32_v1 = vld [vmem:[%s326_s1 + $0x30] sm:$0xff]  ;;  %v31_v2 = vld [vmem:[%s326_s1 + $0x28] sm:$0xff]  ;;  %v11_v49 = vstv %s331_s5 }
   0x2   :  { %46 = vmatpush.msra.mxu0 %v33_v0  ;;  %v30_v3 = vld [vmem:[%s326_s1 + $0x20] sm:$0xff]  ;;  %v29_v4 = vld [vmem:[%s326_s1 + $0x18] sm:$0xff]  ;;  %v28_v5 = vld [vmem:[%s326_s1 + $0x10] sm:$0xff]  ;;  %12 = vst [vmem:[#allocation2] sm:$0x1] %v11_v49 }
   0x3   :  { %v27_v6 = vld [vmem:[%s326_s1 + $0x8] sm:$0xff]  ;;  %v26_v7 = vld [vmem:[%s326_s1] sm:$0xff]  ;;  %v80_v9 = vld [vmem:[%s329_s2 + $0x38] sm:$0xff] }
   0x4   :  { %47 = vmatpush.msra.mxu0 %v32_v1  ;;  %v25_v8 = vld [vmem:[%s327_s0] sm:$0x3]  ;;  %96 = vmatpush.msra.mxu1 %v80_v9  ;;  %v79_v10 = vld [vmem:[%s329_s2 + $0x30] sm:$0xff]  ;;  %v78_v11 = vld [vmem:[%s329_s2 + $0x28] sm:$0xff] }
   0x5   :  { %v77_v12 = vld [vmem:[%s329_s2 + $0x20] sm:$0xff]  ;;  %v76_v13 = vld [vmem:[%s329_s2 + $0x18] sm:$0xff]  ;;  %v75_v14 = vld [vmem:[%s329_s2 + $0x10] sm:$0xff] }
   0x6   :  { %48 = vmatpush.msra.mxu0 %v31_v2  ;;  %97 = vmatpush.msra.mxu1 %v79_v10  ;;  %v74_v15 = vld [vmem:[%s329_s2 + $0x8] sm:$0xff]  ;;  %v73_v16 = vld [vmem:[%s329_s2] sm:$0xff]  ;;  %v138_v17 = vld [vmem:[%s330_s4 + $0x78] sm:$0xff] }
   0x7   :  { %143 = vmatpush.msra.mxu2 %v138_v17  ;;  %v137_v33 = vld [vmem:[%s330_s4 + $0x70] sm:$0xff]  ;;  %v136_v34 = vld [vmem:[%s330_s4 + $0x68] sm:$0xff]  ;;  %v135_v35 = vld [vmem:[%s330_s4 + $0x60] sm:$0xff] }
   0x8   :  { %49 = vmatpush.msra.mxu0 %v30_v3  ;;  %98 = vmatpush.msra.mxu1 %v78_v11  ;;  %v134_v36 = vld [vmem:[%s330_s4 + $0x58] sm:$0xff]  ;;  %v133_v37 = vld [vmem:[%s330_s4 + $0x50] sm:$0xff]  ;;  %v132_v38 = vld [vmem:[%s330_s4 + $0x48] sm:$0xff] }
   0x9   :  { %144 = vmatpush.msra.mxu2 %v137_v33  ;;  %v131_v39 = vld [vmem:[%s330_s4 + $0x40] sm:$0xff]  ;;  %v130_v40 = vld [vmem:[%s330_s4 + $0x38] sm:$0xff]  ;;  %v129_v41 = vld [vmem:[%s330_s4 + $0x30] sm:$0xff] }
   0xa   :  { %50 = vmatpush.msra.mxu0 %v29_v4  ;;  %99 = vmatpush.msra.mxu1 %v77_v12  ;;  %v128_v42 = vld [vmem:[%s330_s4 + $0x28] sm:$0xff]  ;;  %v127_v43 = vld [vmem:[%s330_s4 + $0x20] sm:$0xff]  ;;  %v126_v44 = vld [vmem:[%s330_s4 + $0x18] sm:$0xff] }
   0xb   :  { %145 = vmatpush.msra.mxu2 %v136_v34  ;;  %v125_v45 = vld [vmem:[%s330_s4 + $0x10] sm:$0xff]  ;;  %v124_v46 = vld [vmem:[%s330_s4 + $0x8] sm:$0xff]  ;;  %v123_v47 = vld [vmem:[%s330_s4] sm:$0xff] }
   0xc   :  { %51 = vmatpush.msra.mxu0 %v28_v5  ;;  %100 = vmatpush.msra.mxu1 %v76_v13  ;;  %v171_v48 = vld [vmem:[%s328_s3] ss:$0 sm:$0xff] }
   0xd   :  { %146 = vmatpush.msra.mxu2 %v135_v35  ;;  %v172_v2 = vld [vmem:[#allocation2] ss:$0 sm:$0xff] }
   0xe   :  { %52 = vmatpush.msra.mxu0 %v27_v6  ;;  %101 = vmatpush.msra.mxu1 %v75_v14 }
   0xf   :  { %147 = vmatpush.msra.mxu2 %v134_v36 }
  0x10   :  { %53 = vmatpush.msra.mxu0 %v26_v7  ;;  %102 = vmatpush.msra.mxu1 %v74_v15 }
  0x11   :  { %169 = vmatmul.msk.f32.vlgmr.msra.gmra.mxu0 %vm34_vm0, %v25_v8  ;;  %148 = vmatpush.msra.mxu2 %v133_v37 }
  0x12   :  { %103 = vmatpush.msra.mxu1 %v73_v16 }
  0x13   :  { %149 = vmatpush.msra.mxu2 %v132_v38 }
  0x15   :  { %150 = vmatpush.msra.mxu2 %v131_v39 }
  0x17   :  { %151 = vmatpush.msra.mxu2 %v130_v40 }
  0x19   :  { %152 = vmatpush.msra.mxu2 %v129_v41 }
  0x1b   :  { %153 = vmatpush.msra.mxu2 %v128_v42 }
  0x1d   :  { %154 = vmatpush.msra.mxu2 %v127_v43 }
  0x1f   :  { %155 = vmatpush.msra.mxu2 %v126_v44 }
  0x21   :  { %156 = vmatpush.msra.mxu2 %v125_v45 }
  0x23   :  { %157 = vmatpush.msra.mxu2 %v124_v46 }
  0x25   :  { %158 = vmatpush.msra.mxu2 %v123_v47 }
  0x8e   :  { %v55_v18 = vpop.f32.mrf.mxu0 }
  0x8f   :  { %v59_v19 = vand.u32 2147483647, %v55_v18  ;;  %v58_v30 = vmax.f32 %v55_v18, 0.0 }
  0x91   :  { %v60_v20 = vsub.f32 0.0, %v59_v19 }
  0x93   :  { %v61_v21 = vmul.f32 1.442695, %v60_v20 }
  0x95   :  { %173 = vpow2.f32 %v61_v21 }
  0x9b   :  { %v174_v22 = vpop.eup %173 }
  0x9c   :  { %v63_v23 = vadd.f32 1.0, %v174_v22  ;;  %v66_v24 = vmul.f32 -0.5, %v174_v22  ;;  %v69_v26 = vand.u32 2147483647, %v174_v22 }
  0x9e   :  { %175 = vlog2.f32 %v63_v23  ;;  %v67_v25 = vadd.f32 1.0, %v66_v24  ;;  %vm70_vm1 = vcmp.lt.f32.partialorder %v69_v26, 0.0004427343 }
  0xa0   :  { %v68_v29 = vmul.f32 %v174_v22, %v67_v25 }
  0xa4   :  { %v176_v27 = vpop.eup %175 }
  0xa5   :  { %v65_v28 = vmul.f32 0.6931472, %v176_v27 }
  0xa7   :  { %v71_v31 = vsel %vm70_vm1, %v68_v29, %v65_v28 }
  0xa8   :  { %v72_v32 = vadd.f32 %v71_v31, %v58_v30 }
  0xaa   :  { %170 = vmatmul.msk.f32.vlgmr.msra.gmra.mxu1 %vm34_vm0, %v72_v32 }
 0x127   :  { %v105_v50 = vpop.f32.mrf.mxu1 }
 0x128   :  { %v106_v51 = vadd.f32 %v171_v48, %v105_v50 }
 0x12a   :  { %v109_v52 = vand.u32 2147483647, %v106_v51  ;;  %v108_v63 = vmax.f32 %v106_v51, 0.0 }
 0x12c   :  { %v110_v53 = vsub.f32 0.0, %v109_v52 }
 0x12e   :  { %v111_v54 = vmul.f32 1.442695, %v110_v53 }
 0x130   :  { %177 = vpow2.f32 %v111_v54 }
 0x136   :  { %v178_v55 = vpop.eup %177 }
 0x137   :  { %v113_v56 = vadd.f32 1.0, %v178_v55  ;;  %v116_v57 = vmul.f32 -0.5, %v178_v55  ;;  %v119_v59 = vand.u32 2147483647, %v178_v55 }
 0x139   :  { %179 = vlog2.f32 %v113_v56  ;;  %v117_v58 = vadd.f32 1.0, %v116_v57  ;;  %vm120_vm2 = vcmp.lt.f32.partialorder %v119_v59, 0.0004427343 }
 0x13b   :  { %v118_v62 = vmul.f32 %v178_v55, %v117_v58 }
 0x13f   :  { %v180_v60 = vpop.eup %179 }
 0x140   :  { %v115_v61 = vmul.f32 0.6931472, %v180_v60 }
 0x142   :  { %v121_v0 = vsel %vm120_vm2, %v118_v62, %v115_v61 }
 0x143   :  { %v122_v1 = vadd.f32 %v121_v0, %v108_v63 }
 0x145   :  { %159 = vmatmul.f32.vlgmr.msra.gmra.mxu2 %v122_v1 }
 0x1c8   :  { %v160_v3 = vpop.f32.mrf.mxu2 }
 0x1c9   :  { %v161_v4 = vadd.f32 %v172_v2, %v160_v3 }
 0x1cb   :  { %164 = vst.msk [vmem:[%s332_s6] sm:$0x3] %vm163_vm3, %v161_v4 }

// kernel: crystal_graph_conv_net.6
= control target key start
LH: loop header
LB: loop body
LE: loop exit
PB: predicated region body
PF: predicated region fallthrough
CT: control target
= control target key end

     0   :  { %s3232_s25 = smov 0   ;;  %s4776_s0 = inlined_call_operand.vmem [shape: f32[64,64], index: 0, kind: input, shape index: {}]   ;;  %s4777_s1 = inlined_call_operand.vmem [shape: f32[512,64], index: 1, kind: input, shape index: {}]   ;;  %s4778_s2 = inlined_call_operand.vmem [shape: f32[512,32], index: 2, kind: input, shape index: {}]   ;;  %s4779_s3 = inlined_call_operand.vmem [shape: f32[64,64], index: 3, kind: input, shape index: {}]   ;;  %s4780_s4 = inlined_call_operand.vmem [shape: f32[64,64], index: 4, kind: input, shape index: {}]   ;;  %s4781_s5 = inlined_call_operand.vmem [shape: f32[64,64], index: 5, kind: input, shape index: {}]   ;;  %s4782_s6 = inlined_call_operand.vmem [shape: f32[64,64], index: 6, kind: input, shape index: {}]   ;;  %s4783_s7 = inlined_call_operand.vmem [shape: f32[32,64], index: 7, kind: input, shape index: {}]   ;;  %s4784_s8 = inlined_call_operand.vmem [shape: f32[32,64], index: 8, kind: input, shape index: {}]   ;;  %s4785_s9 = inlined_call_operand.vmem [shape: f32[1,64], index: 9, kind: input, shape index: {}]   ;;  %s4786_s10 = inlined_call_operand.vmem [shape: f32[1,64], index: 10, kind: input, shape index: {}]   ;;  %s4787_s11 = inlined_call_operand.vmem [shape: f32[1,64], index: 11, kind: input, shape index: {}]   ;;  %s4788_s12 = inlined_call_operand.vmem [shape: f32[1,64], index: 12, kind: input, shape index: {}]   ;;  %s4789_s13 = inlined_call_operand.vmem [shape: f32[64,64], index: 13, kind: output, shape index: {}]  }
   0x1 LB: > { %s2759_s26 = sadd.s32 4294967295, %s3160_s25   ;;  %p2763_p0 = scmp.ge.s32.totalorder %s3160_s25, 1  ;;  %s3160_s25 = sphi %s3232_s25, %s23_s25  }
   0x2   : > { %p410_p1 = scmp.lt.s32.totalorder %s3160_s25, 3 }
   0x4   : > { %p411_p2 = pnand %p2763_p0, %p410_p1 }
   0x6   : > { %414 = sbr.rel (%p411_p2) target bundleno = 755 (0x2f3), region = 72 }
   0xb   : > { %v567_v0 = vld [vmem:[%s4783_s7 + $0x18] sm:$0xff]  ;;  %s2766_s16 = sshll.u32 %s2759_s26, 5  ;;  %v566_v4 = vld [vmem:[%s4783_s7 + $0x10] sm:$0xff]  ;;  %v565_v8 = vld [vmem:[%s4783_s7 + $0x8] sm:$0xff]  ;;  %vm568_vm0 = vcmask 261120   ;;  %vm778_vm1 = vcmask 523264  }
   0xc   : > { %v563_v1 = vld [vmem:[%s4781_s5 + $0x38] sm:$0xff]  ;;  %677 = vmatpush.msra.mxu0 %v567_v0  ;;  %v562_v5 = vld [vmem:[%s4781_s5 + $0x30] sm:$0xff]  ;;  %p471_p3 = scmp.lt.s32.totalorder %s2766_s16, 63  ;;  %v561_v9 = vld [vmem:[%s4781_s5 + $0x28] sm:$0xff]  ;;  %vm2545_vm10 = vcmask 1041409   ;;  %vm2548_vm11 = vcmask 1042434  }
   0xd   : > { %v999_v2 = vld [vmem:[%s4784_s8 + $0x18] sm:$0xff]  ;;  %883 = vmatpush.msra.mxu1 %v563_v1  ;;  %v998_v6 = vld [vmem:[%s4784_s8 + $0x10] sm:$0xff]  ;;  %v997_v10 = vld [vmem:[%s4784_s8 + $0x8] sm:$0xff]  ;;  %vm2551_vm12 = vcmask 1043459   ;;  %vm2554_vm13 = vcmask 1044484   ;;  %vm2557_vm14 = vcmask 1045509  }
   0xe   : > { %v995_v3 = vld [vmem:[%s4782_s6 + $0x38] sm:$0xff]  ;;  %1012 = vmatpush.msra.mxu2 %v999_v2  ;;  %v994_v7 = vld [vmem:[%s4782_s6 + $0x30] sm:$0xff]  ;;  %678 = vmatpush.msra.mxu0 %v566_v4  ;;  %v993_v11 = vld [vmem:[%s4782_s6 + $0x28] sm:$0xff]  ;;  %s5007_s16 = smov (!%p471_p3, %s2766_s16), 63  ;;  %vm2560_vm15 = vcmask 1046534  }
   0xf   : > { %1121 = vmatpush.msra.mxu3 %v995_v3  ;;  %884 = vmatpush.msra.mxu1 %v562_v5  ;;  %v564_v12 = vld [vmem:[%s4783_s7] sm:$0xff]  ;;  %s2767_s14 = sshll.u32 %s5007_s16, 3  ;;  %v1286_v17 = vld [vmem:[%s4780_s4 + $0x38] sm:$0xff]  ;;  %v558_v20 = vld [vmem:[%s4781_s5 + $0x10] sm:$0xff] }
  0x10   : > { %1013 = vmatpush.msra.mxu2 %v998_v6  ;;  %v560_v13 = vld [vmem:[%s4781_s5 + $0x20] sm:$0xff]  ;;  %679 = vmatpush.msra.mxu0 %v565_v8  ;;  %s3296_s18 = scalar_lea.vmem %s4778_s2, %s2767_s14  ;;  %v559_v18 = vld [vmem:[%s4781_s5 + $0x18] sm:$0xff]  ;;  %v990_v21 = vld [vmem:[%s4782_s6 + $0x10] sm:$0xff]  ;;  %s3331_s27 = scalar_lea.vmem %s4777_s1, %s2767_s14 }
  0x11   : > { %1122 = vmatpush.msra.mxu3 %v994_v7  ;;  %885 = vmatpush.msra.mxu1 %v561_v9  ;;  %v996_v14 = vld [vmem:[%s4784_s8] sm:$0xff]  ;;  %v991_v19 = vld [vmem:[%s4782_s6 + $0x18] sm:$0xff]  ;;  %v557_v23 = vld [vmem:[%s4781_s5 + $0x8] sm:$0xff]  ;;  %s2764_s14 = sshll.u32 %s2759_s26, 2 }
  0x12   : > { %v992_v15 = vld [vmem:[%s4782_s6 + $0x20] sm:$0xff]  ;;  %1014 = vmatpush.msra.mxu2 %v997_v10  ;;  %680 = vmatpush.msra.mxu0 %v564_v12  ;;  %v1233_v22 = vld [vmem:[%s4779_s3 + $0x38] sm:$0xff]  ;;  %v1285_v24 = vld [vmem:[%s4780_s4 + $0x30] sm:$0xff]  ;;  %p465_p4 = scmp.lt.s32.totalorder %s2764_s14, 7 }
  0x13   : > { %1123 = vmatpush.msra.mxu3 %v993_v11  ;;  %886 = vmatpush.msra.mxu1 %v560_v13  ;;  %v524_v16 = vld [vmem:[%s3296_s18] sm:$0xff]  ;;  %v989_v25 = vld [vmem:[%s4782_s6 + $0x8] sm:$0xff]  ;;  %v526_v30 = vld [vmem:[%s3296_s18 + $0x10] sm:$0xff] }
  0x14   : > { %1015 = vmatpush.msra.mxu2 %v996_v14  ;;  %2772 = vmatmul.msk.f32.vlgmr.msra.gmra.mxu0 %vm568_vm0, %v524_v16  ;;  %v556_v26 = vld [vmem:[%s4781_s5] sm:$0xff]  ;;  %v525_v28 = vld [vmem:[%s3296_s18 + $0x8] sm:$0xff]  ;;  %v1232_v32 = vld [vmem:[%s4779_s3 + $0x30] sm:$0xff]  ;;  %s5009_s14 = smov (!%p465_p4, %s2764_s14), 7 }
  0x15   : > { %1124 = vmatpush.msra.mxu3 %v992_v15  ;;  %2836 = vmatmul.msk.f32.vlgmr.msra.gmra.mxu2 %vm568_vm0, %v524_v16  ;;  %v988_v27 = vld [vmem:[%s4782_s6] sm:$0xff]  ;;  %v493_v31 = vld [vmem:[%s3331_s27 + $0x8] sm:$0xff]  ;;  %v527_v33 = vld [vmem:[%s3296_s18 + $0x18] sm:$0xff]  ;;  %s2765_s26 = sshll.u32 %s5009_s14, 3 }
  0x16   : > { %1299 = vmatpush.msrb.mxu2 %v1286_v17  ;;  %887 = vmatpush.msra.mxu1 %v559_v18  ;;  %v492_v29 = vld [vmem:[%s3331_s27] sm:$0xff]  ;;  %v494_v34 = vld [vmem:[%s3331_s27 + $0x10] sm:$0xff]  ;;  %v495_v36 = vld [vmem:[%s3331_s27 + $0x18] sm:$0xff]  ;;  %s3676_s20 = scalar_lea.vmem %s4776_s0, %s2765_s26  ;;  %s4178_s15 = scalar_lea.vmem %s4789_s13, %s2765_s26 }
  0x17   : > { %1125 = vmatpush.msra.mxu3 %v991_v19  ;;  %1258 = vmatpush.msrb.mxu0 %v1233_v22  ;;  %v528_v35 = vld [vmem:[%s3296_s18 + $0x20] sm:$0xff]  ;;  %v1284_v37 = vld [vmem:[%s4780_s4 + $0x28] sm:$0xff]  ;;  %v530_v40 = vld [vmem:[%s3296_s18 + $0x30] sm:$0xff] }
  0x18   : > { %888 = vmatpush.msra.mxu1 %v558_v20  ;;  %1300 = vmatpush.msrb.mxu2 %v1285_v24  ;;  %v529_v38 = vld [vmem:[%s3296_s18 + $0x28] sm:$0xff]  ;;  %v496_v39 = vld [vmem:[%s3331_s27 + $0x20] sm:$0xff]  ;;  %v531_v43 = vld [vmem:[%s3296_s18 + $0x38] sm:$0xff] }
  0x19   : > { %1126 = vmatpush.msra.mxu3 %v990_v21  ;;  %1259 = vmatpush.msrb.mxu0 %v1232_v32  ;;  %v497_v41 = vld [vmem:[%s3331_s27 + $0x28] sm:$0xff]  ;;  %v498_v44 = vld [vmem:[%s3331_s27 + $0x30] sm:$0xff]  ;;  %v532_v45 = vld [vmem:[%s3296_s18 + $0x40] sm:$0xff] }
  0x1a   : > { %889 = vmatpush.msra.mxu1 %v557_v23  ;;  %1301 = vmatpush.msrb.mxu2 %v1284_v37  ;;  %v1231_v42 = vld [vmem:[%s4779_s3 + $0x28] sm:$0xff]  ;;  %v499_v46 = vld [vmem:[%s3331_s27 + $0x38] sm:$0xff]  ;;  %v1283_v47 = vld [vmem:[%s4780_s4 + $0x20] sm:$0xff] }
  0x1b   : > { %1127 = vmatpush.msra.mxu3 %v989_v25  ;;  %1260 = vmatpush.msrb.mxu0 %v1231_v42  ;;  %v533_v48 = vld [vmem:[%s3296_s18 + $0x48] sm:$0xff]  ;;  %v500_v49 = vld [vmem:[%s3331_s27 + $0x40] sm:$0xff]  ;;  %v534_v50 = vld [vmem:[%s3296_s18 + $0x50] sm:$0xff] }
  0x1c   : > { %890 = vmatpush.msra.mxu1 %v556_v26  ;;  %2773 = vmatmul.msk.f32.gmra.mxu0 %vm568_vm0, %v525_v28  ;;  %v501_v51 = vld [vmem:[%s3331_s27 + $0x48] sm:$0xff]  ;;  %v1230_v52 = vld [vmem:[%s4779_s3 + $0x20] sm:$0xff]  ;;  %v535_v53 = vld [vmem:[%s3296_s18 + $0x58] sm:$0xff] }
  0x1d   : > { %1128 = vmatpush.msra.mxu3 %v988_v27  ;;  %2804 = vmatmul.msk.f32.vlgmr.msra.gmra.mxu1 %vm778_vm1, %v492_v29  ;;  %v502_v54 = vld [vmem:[%s3331_s27 + $0x50] sm:$0xff]  ;;  %v536_v55 = vld [vmem:[%s3296_s18 + $0x60] sm:$0xff]  ;;  %v503_v56 = vld [vmem:[%s3331_s27 + $0x58] sm:$0xff] }
  0x1e   : > { %2837 = vmatmul.msk.f32.gmra.mxu2 %vm568_vm0, %v525_v28  ;;  %2868 = vmatmul.msk.f32.vlgmr.msra.gmra.mxu3 %vm778_vm1, %v492_v29  ;;  %v1282_v57 = vld [vmem:[%s4780_s4 + $0x18] sm:$0xff]  ;;  %v537_v58 = vld [vmem:[%s3296_s18 + $0x68] sm:$0xff]  ;;  %v504_v59 = vld [vmem:[%s3331_s27 + $0x60] sm:$0xff] }
  0x1f   : > { %2910 = vmatpush.msrb.mxu1 %v1233_v22  ;;  %2918 = vmatpush.msrb.mxu3 %v1286_v17  ;;  %v538_v60 = vld [vmem:[%s3296_s18 + $0x70] sm:$0xff]  ;;  %v505_v61 = vld [vmem:[%s3331_s27 + $0x68] sm:$0xff]  ;;  %v539_v62 = vld [vmem:[%s3296_s18 + $0x78] sm:$0xff] }
  0x20   : > { %1302 = vmatpush.msrb.mxu2 %v1283_v47  ;;  %1261 = vmatpush.msrb.mxu0 %v1230_v52  ;;  %v506_v63 = vld [vmem:[%s3331_s27 + $0x70] sm:$0xff]  ;;  %v1229_v0 = vld [vmem:[%s4779_s3 + $0x18] sm:$0xff]  ;;  %v540_v2 = vld [vmem:[%s3296_s18 + $0x80] sm:$0xff] }
  0x21   : > { %2919 = vmatpush.msrb.mxu3 %v1285_v24  ;;  %2911 = vmatpush.msrb.mxu1 %v1232_v32  ;;  %v507_v3 = vld [vmem:[%s3331_s27 + $0x78] sm:$0xff]  ;;  %v1281_v4 = vld [vmem:[%s4780_s4 + $0x10] sm:$0xff]  ;;  %v541_v7 = vld [vmem:[%s3296_s18 + $0x88] sm:$0xff] }
  0x22   : > { %1303 = vmatpush.msrb.mxu2 %v1282_v57  ;;  %1262 = vmatpush.msrb.mxu0 %v1229_v0  ;;  %v508_v9 = vld [vmem:[%s3331_s27 + $0x80] sm:$0xff]  ;;  %v542_v13 = vld [vmem:[%s3296_s18 + $0x90] sm:$0xff]  ;;  %v509_v16 = vld [vmem:[%s3331_s27 + $0x88] sm:$0xff] }
  0x23   : > { %2920 = vmatpush.msrb.mxu3 %v1284_v37  ;;  %2912 = vmatpush.msrb.mxu1 %v1231_v42  ;;  %v543_v20 = vld [vmem:[%s3296_s18 + $0x98] sm:$0xff]  ;;  %v510_v23 = vld [vmem:[%s3331_s27 + $0x90] sm:$0xff]  ;;  %v544_v28 = vld [vmem:[%s3296_s18 + $0xa0] sm:$0xff] }
  0x24   : > { %2774 = vmatmul.msk.f32.gmra.mxu0 %vm568_vm0, %v526_v30  ;;  %1304 = vmatpush.msrb.mxu2 %v1281_v4  ;;  %v1228_v24 = vld [vmem:[%s4779_s3 + $0x10] sm:$0xff]  ;;  %v1280_v32 = vld [vmem:[%s4780_s4 + $0x8] sm:$0xff] }
  0x25   : > { %2805 = vmatmul.msk.f32.gmra.mxu1 %vm778_vm1, %v493_v31  ;;  %2921 = vmatpush.msrb.mxu3 %v1283_v47 }
  0x26   : > { %2838 = vmatmul.msk.f32.gmra.mxu2 %vm568_vm0, %v526_v30  ;;  %2869 = vmatmul.msk.f32.gmra.mxu3 %vm778_vm1, %v493_v31  ;;  %v511_v31 = vld [vmem:[%s3331_s27 + $0x98] sm:$0xff] }
  0x27   : > { %2913 = vmatpush.msrb.mxu1 %v1230_v52  ;;  %2922 = vmatpush.msrb.mxu3 %v1282_v57 }
  0x28   : > { %1263 = vmatpush.msrb.mxu0 %v1228_v24  ;;  %1305 = vmatpush.msrb.mxu2 %v1280_v32 }
  0x29   : > { %2914 = vmatpush.msrb.mxu1 %v1229_v0  ;;  %2923 = vmatpush.msrb.mxu3 %v1281_v4 }
  0x2b   : > { %2915 = vmatpush.msrb.mxu1 %v1228_v24  ;;  %2924 = vmatpush.msrb.mxu3 %v1280_v32 }
  0x2c   : > { %2775 = vmatmul.msk.f32.gmra.mxu0 %vm568_vm0, %v527_v33 }
  0x2d   : > { %2806 = vmatmul.msk.f32.gmra.mxu1 %vm778_vm1, %v494_v34 }
  0x2e   : > { %2839 = vmatmul.msk.f32.gmra.mxu2 %vm568_vm0, %v527_v33  ;;  %2870 = vmatmul.msk.f32.gmra.mxu3 %vm778_vm1, %v494_v34 }
  0x34   : > { %2776 = vmatmul.msk.f32.gmra.mxu0 %vm568_vm0, %v528_v35 }
  0x35   : > { %2807 = vmatmul.msk.f32.gmra.mxu1 %vm778_vm1, %v495_v36 }
  0x36   : > { %2840 = vmatmul.msk.f32.gmra.mxu2 %vm568_vm0, %v528_v35  ;;  %2871 = vmatmul.msk.f32.gmra.mxu3 %vm778_vm1, %v495_v36  ;;  %v545_v36 = vld [vmem:[%s3296_s18 + $0xa8] sm:$0xff] }
  0x3c   : > { %2777 = vmatmul.msk.f32.gmra.mxu0 %vm568_vm0, %v529_v38 }
  0x3d   : > { %2808 = vmatmul.msk.f32.gmra.mxu1 %vm778_vm1, %v496_v39 }
  0x3e   : > { %2841 = vmatmul.msk.f32.gmra.mxu2 %vm568_vm0, %v529_v38  ;;  %2872 = vmatmul.msk.f32.gmra.mxu3 %vm778_vm1, %v496_v39  ;;  %v512_v39 = vld [vmem:[%s3331_s27 + $0xa0] sm:$0xff] }
  0x44   : > { %2778 = vmatmul.msk.f32.gmra.mxu0 %vm568_vm0, %v530_v40 }
  0x45   : > { %2809 = vmatmul.msk.f32.gmra.mxu1 %vm778_vm1, %v497_v41 }
  0x46   : > { %2842 = vmatmul.msk.f32.gmra.mxu2 %vm568_vm0, %v530_v40  ;;  %2873 = vmatmul.msk.f32.gmra.mxu3 %vm778_vm1, %v497_v41 }
  0x4c   : > { %2779 = vmatmul.msk.f32.gmra.mxu0 %vm568_vm0, %v531_v43 }
  0x4d   : > { %2810 = vmatmul.msk.f32.gmra.mxu1 %vm778_vm1, %v498_v44 }
  0x4e   : > { %2843 = vmatmul.msk.f32.gmra.mxu2 %vm568_vm0, %v531_v43  ;;  %2874 = vmatmul.msk.f32.gmra.mxu3 %vm778_vm1, %v498_v44  ;;  %v546_v43 = vld [vmem:[%s3296_s18 + $0xb0] sm:$0xff] }
  0x54   : > { %2780 = vmatmul.msk.f32.gmra.mxu0 %vm568_vm0, %v532_v45 }
  0x55   : > { %2811 = vmatmul.msk.f32.gmra.mxu1 %vm778_vm1, %v499_v46 }
  0x56   : > { %2844 = vmatmul.msk.f32.gmra.mxu2 %vm568_vm0, %v532_v45  ;;  %2875 = vmatmul.msk.f32.gmra.mxu3 %vm778_vm1, %v499_v46  ;;  %v513_v46 = vld [vmem:[%s3331_s27 + $0xa8] sm:$0xff] }
  0x5c   : > { %2781 = vmatmul.msk.f32.gmra.mxu0 %vm568_vm0, %v533_v48 }
  0x5d   : > { %2812 = vmatmul.msk.f32.gmra.mxu1 %vm778_vm1, %v500_v49 }
  0x5e   : > { %2845 = vmatmul.msk.f32.gmra.mxu2 %vm568_vm0, %v533_v48  ;;  %2876 = vmatmul.msk.f32.gmra.mxu3 %vm778_vm1, %v500_v49 }
  0x64   : > { %2782 = vmatmul.msk.f32.gmra.mxu0 %vm568_vm0, %v534_v50 }
  0x65   : > { %2813 = vmatmul.msk.f32.gmra.mxu1 %vm778_vm1, %v501_v51 }
  0x66   : > { %2846 = vmatmul.msk.f32.gmra.mxu2 %vm568_vm0, %v534_v50  ;;  %2877 = vmatmul.msk.f32.gmra.mxu3 %vm778_vm1, %v501_v51  ;;  %v547_v50 = vld [vmem:[%s3296_s18 + $0xb8] sm:$0xff] }
  0x6c   : > { %2783 = vmatmul.msk.f32.gmra.mxu0 %vm568_vm0, %v535_v53 }
  0x6d   : > { %2814 = vmatmul.msk.f32.gmra.mxu1 %vm778_vm1, %v502_v54 }
  0x6e   : > { %2847 = vmatmul.msk.f32.gmra.mxu2 %vm568_vm0, %v535_v53  ;;  %2878 = vmatmul.msk.f32.gmra.mxu3 %vm778_vm1, %v502_v54  ;;  %v514_v53 = vld [vmem:[%s3331_s27 + $0xb0] sm:$0xff]  ;;  %v1227_v54 = vld [vmem:[%s4779_s3 + $0x8] sm:$0xff] }
  0x6f   : > { %1264 = vmatpush.msrb.mxu0 %v1227_v54  ;;  %2916 = vmatpush.msrb.mxu1 %v1227_v54 }
  0x74   : > { %2784 = vmatmul.msk.f32.gmra.mxu0 %vm568_vm0, %v536_v55 }
  0x75   : > { %2815 = vmatmul.msk.f32.gmra.mxu1 %vm778_vm1, %v503_v56 }
  0x76   : > { %2848 = vmatmul.msk.f32.gmra.mxu2 %vm568_vm0, %v536_v55  ;;  %2879 = vmatmul.msk.f32.gmra.mxu3 %vm778_vm1, %v503_v56 }
  0x7c   : > { %2785 = vmatmul.msk.f32.gmra.mxu0 %vm568_vm0, %v537_v58 }
  0x7d   : > { %2816 = vmatmul.msk.f32.gmra.mxu1 %vm778_vm1, %v504_v59 }
  0x7e   : > { %2849 = vmatmul.msk.f32.gmra.mxu2 %vm568_vm0, %v537_v58  ;;  %2880 = vmatmul.msk.f32.gmra.mxu3 %vm778_vm1, %v504_v59  ;;  %v548_v58 = vld [vmem:[%s3296_s18 + $0xc0] sm:$0xff] }
  0x84   : > { %2786 = vmatmul.msk.f32.gmra.mxu0 %vm568_vm0, %v538_v60 }
  0x85   : > { %2817 = vmatmul.msk.f32.gmra.mxu1 %vm778_vm1, %v505_v61 }
  0x86   : > { %2850 = vmatmul.msk.f32.gmra.mxu2 %vm568_vm0, %v538_v60  ;;  %2881 = vmatmul.msk.f32.gmra.mxu3 %vm778_vm1, %v505_v61  ;;  %v515_v61 = vld [vmem:[%s3331_s27 + $0xb8] sm:$0xff] }
  0x8c   : > { %2787 = vmatmul.msk.f32.gmra.mxu0 %vm568_vm0, %v539_v62 }
  0x8d   : > { %2818 = vmatmul.msk.f32.gmra.mxu1 %vm778_vm1, %v506_v63 }
  0x8e   : > { %2851 = vmatmul.msk.f32.gmra.mxu2 %vm568_vm0, %v539_v62  ;;  %2882 = vmatmul.msk.f32.gmra.mxu3 %vm778_vm1, %v506_v63  ;;  %v1279_v62 = vld [vmem:[%s4780_s4] sm:$0xff] }
  0x8f   : > { %1306 = vmatpush.msrb.mxu2 %v1279_v62  ;;  %2925 = vmatpush.msrb.mxu3 %v1279_v62 }
  0x91   : > { %v3450_v1 = vpop.f32.mrf.mxu0 }
  0x94   : > { %2788 = vmatmul.msk.f32.gmra.mxu0 %vm568_vm0, %v540_v2 }
  0x95   : > { %2819 = vmatmul.msk.f32.gmra.mxu1 %vm778_vm1, %v507_v3 }
  0x96   : > { %2852 = vmatmul.msk.f32.gmra.mxu2 %vm568_vm0, %v540_v2  ;;  %2883 = vmatmul.msk.f32.gmra.mxu3 %vm778_vm1, %v507_v3  ;;  %v549_v3 = vld [vmem:[%s3296_s18 + $0xc8] sm:$0xff] }
  0x98   : > { %v1017_v5 = vpop.f32.mrf.mxu2 }
  0x99   : > { %v3461_v6 = vpop.f32.mrf.mxu0 }
  0x9a   : > { %v3464_v8 = vpop.f32.mrf.mxu1 }
  0x9c   : > { %2789 = vmatmul.msk.f32.gmra.mxu0 %vm568_vm0, %v541_v7 }
  0x9d   : > { %2820 = vmatmul.msk.f32.gmra.mxu1 %vm778_vm1, %v508_v9 }
  0x9e   : > { %2853 = vmatmul.msk.f32.gmra.mxu2 %vm568_vm0, %v541_v7  ;;  %2884 = vmatmul.msk.f32.gmra.mxu3 %vm778_vm1, %v508_v9  ;;  %v516_v7 = vld [vmem:[%s3331_s27 + $0xc0] sm:$0xff] }
  0xa1   : > { %v1020_v10 = vpop.f32.mrf.mxu2  ;;  %v1130_v11 = vpop.f32.mrf.mxu3 }
  0xa2   : > { %v3471_v12 = vpop.f32.mrf.mxu0  ;;  %v3474_v14 = vadd.f32 %v1130_v11, %v1017_v5  ;;  %v3476_v15 = vpop.f32.mrf.mxu1 }
  0xa4   : > { %4793 = vst [vmem:[#allocation2_spill] sm:$0xff] %v3474_v14  ;;  %2790 = vmatmul.msk.f32.gmra.mxu0 %vm568_vm0, %v542_v13 }
  0xa5   : > { %2821 = vmatmul.msk.f32.gmra.mxu1 %vm778_vm1, %v509_v16 }
  0xa6   : > { %2854 = vmatmul.msk.f32.gmra.mxu2 %vm568_vm0, %v542_v13  ;;  %2885 = vmatmul.msk.f32.gmra.mxu3 %vm778_vm1, %v509_v16  ;;  %v550_v13 = vld [vmem:[%s3296_s18 + $0xd0] sm:$0xff] }
  0xa9   : > { %v1023_v17 = vpop.f32.mrf.mxu2  ;;  %v1133_v18 = vpop.f32.mrf.mxu3 }
  0xaa   : > { %v3483_v19 = vpop.f32.mrf.mxu0  ;;  %v3486_v21 = vadd.f32 %v1133_v18, %v1020_v10  ;;  %v3488_v22 = vpop.f32.mrf.mxu1  ;;  %v517_v18 = vld [vmem:[%s3331_s27 + $0xc8] sm:$0xff] }
  0xac   : > { %4794 = vst [vmem:[#allocation3_spill] sm:$0xff] %v3486_v21  ;;  %2791 = vmatmul.msk.f32.gmra.mxu0 %vm568_vm0, %v543_v20 }
  0xad   : > { %2822 = vmatmul.msk.f32.gmra.mxu1 %vm778_vm1, %v510_v23 }
  0xae   : > { %2855 = vmatmul.msk.f32.gmra.mxu2 %vm568_vm0, %v543_v20  ;;  %2886 = vmatmul.msk.f32.gmra.mxu3 %vm778_vm1, %v510_v23 }
  0xb1   : > { %v1026_v25 = vpop.f32.mrf.mxu2  ;;  %v1136_v26 = vpop.f32.mrf.mxu3 }
  0xb2   : > { %v3498_v27 = vpop.f32.mrf.mxu0  ;;  %v3501_v29 = vadd.f32 %v1136_v26, %v1023_v17  ;;  %v3503_v30 = vpop.f32.mrf.mxu1 }
  0xb4   : > { %4795 = vst [vmem:[#allocation4_spill] sm:$0xff] %v3501_v29  ;;  %2792 = vmatmul.msk.f32.gmra.mxu0 %vm568_vm0, %v544_v28 }
  0xb5   : > { %2823 = vmatmul.msk.f32.gmra.mxu1 %vm778_vm1, %v511_v31 }
  0xb6   : > { %2856 = vmatmul.msk.f32.gmra.mxu2 %vm568_vm0, %v544_v28  ;;  %2887 = vmatmul.msk.f32.gmra.mxu3 %vm778_vm1, %v511_v31  ;;  %v518_v28 = vld [vmem:[%s3331_s27 + $0xd0] sm:$0xff]  ;;  %v1226_v31 = vld [vmem:[%s4779_s3] sm:$0xff] }
  0xb7   : > { %1265 = vmatpush.msrb.mxu0 %v1226_v31  ;;  %2917 = vmatpush.msrb.mxu1 %v1226_v31 }
  0xb9   : > { %v1029_v33 = vpop.f32.mrf.mxu2  ;;  %v1139_v34 = vpop.f32.mrf.mxu3 }
  0xba   : > { %v3513_v35 = vpop.f32.mrf.mxu0  ;;  %v3516_v37 = vadd.f32 %v1139_v34, %v1026_v25  ;;  %v3518_v38 = vpop.f32.mrf.mxu1  ;;  %v551_v25 = vld [vmem:[%s3296_s18 + $0xd8] sm:$0xff] }
  0xbc   : > { %4796 = vst [vmem:[#allocation5_spill] sm:$0xff] %v3516_v37  ;;  %2793 = vmatmul.msk.f32.gmra.mxu0 %vm568_vm0, %v545_v36 }
  0xbd   : > { %2824 = vmatmul.msk.f32.gmra.mxu1 %vm778_vm1, %v512_v39 }
  0xbe   : > { %2857 = vmatmul.msk.f32.gmra.mxu2 %vm568_vm0, %v545_v36  ;;  %2888 = vmatmul.msk.f32.gmra.mxu3 %vm778_vm1, %v512_v39  ;;  %v552_v36 = vld [vmem:[%s3296_s18 + $0xe0] sm:$0xff] }
  0xc1   : > { %v1032_v40 = vpop.f32.mrf.mxu2  ;;  %v1142_v41 = vpop.f32.mrf.mxu3 }
  0xc2   : > { %v3525_v42 = vpop.f32.mrf.mxu0  ;;  %v3528_v44 = vadd.f32 %v1142_v41, %v1029_v33  ;;  %v3530_v45 = vpop.f32.mrf.mxu1 }
  0xc4   : > { %4797 = vst [vmem:[#allocation6_spill] sm:$0xff] %v3528_v44  ;;  %2794 = vmatmul.msk.f32.gmra.mxu0 %vm568_vm0, %v546_v43 }
  0xc5   : > { %2825 = vmatmul.msk.f32.gmra.mxu1 %vm778_vm1, %v513_v46 }
  0xc6   : > { %2858 = vmatmul.msk.f32.gmra.mxu2 %vm568_vm0, %v546_v43  ;;  %2889 = vmatmul.msk.f32.gmra.mxu3 %vm778_vm1, %v513_v46 }
  0xc9   : > { %v1035_v47 = vpop.f32.mrf.mxu2  ;;  %v1145_v48 = vpop.f32.mrf.mxu3 }
  0xca   : > { %v3537_v49 = vpop.f32.mrf.mxu0  ;;  %v3540_v51 = vadd.f32 %v1145_v48, %v1032_v40  ;;  %v3542_v52 = vpop.f32.mrf.mxu1  ;;  %v519_v40 = vld [vmem:[%s3331_s27 + $0xd8] sm:$0xff] }
  0xcc   : > { %4798 = vst [vmem:[#allocation7_spill] sm:$0xff] %v3540_v51  ;;  %2795 = vmatmul.msk.f32.gmra.mxu0 %vm568_vm0, %v547_v50 }
  0xcd   : > { %2826 = vmatmul.msk.f32.gmra.mxu1 %vm778_vm1, %v514_v53 }
  0xce   : > { %2859 = vmatmul.msk.f32.gmra.mxu2 %vm568_vm0, %v547_v50  ;;  %2890 = vmatmul.msk.f32.gmra.mxu3 %vm778_vm1, %v514_v53  ;;  %v520_v50 = vld [vmem:[%s3331_s27 + $0xe0] sm:$0xff] }
  0xd1   : > { %v1038_v55 = vpop.f32.mrf.mxu2  ;;  %v1148_v56 = vpop.f32.mrf.mxu3 }
  0xd2   : > { %v3552_v57 = vpop.f32.mrf.mxu0  ;;  %v3555_v59 = vadd.f32 %v1148_v56, %v1035_v47  ;;  %v3557_v60 = vpop.f32.mrf.mxu1  ;;  %v553_v47 = vld [vmem:[%s3296_s18 + $0xe8] sm:$0xff]  ;;  %v554_v56 = vld [vmem:[%s3296_s18 + $0xf0] sm:$0xff] }
  0xd4   : > { %4799 = vst [vmem:[#allocation8_spill] sm:$0xff] %v3555_v59  ;;  %2796 = vmatmul.msk.f32.gmra.mxu0 %vm568_vm0, %v548_v58 }
  0xd5   : > { %2827 = vmatmul.msk.f32.gmra.mxu1 %vm778_vm1, %v515_v61 }
  0xd6   : > { %2860 = vmatmul.msk.f32.gmra.mxu2 %vm568_vm0, %v548_v58  ;;  %2891 = vmatmul.msk.f32.gmra.mxu3 %vm778_vm1, %v515_v61  ;;  %v521_v61 = vld [vmem:[%s3331_s27 + $0xe8] sm:$0xff] }
  0xd9   : > { %v1041_v63 = vpop.f32.mrf.mxu2  ;;  %v1151_v0 = vpop.f32.mrf.mxu3 }
  0xda   : > { %v3567_v2 = vpop.f32.mrf.mxu0  ;;  %v3570_v4 = vadd.f32 %v1151_v0, %v1038_v55  ;;  %v3572_v5 = vpop.f32.mrf.mxu1 }
  0xdc   : > { %4800 = vst [vmem:[#allocation9_spill] sm:$0xff] %v3570_v4  ;;  %2797 = vmatmul.msk.f32.gmra.mxu0 %vm568_vm0, %v549_v3  ;;  %v490_v4 = vld [vmem:[%s3676_s20 + $0x10] sm:$0xff] }
  0xdd   : > { %2828 = vmatmul.msk.f32.gmra.mxu1 %vm778_vm1, %v516_v7 }
  0xde   : > { %2861 = vmatmul.msk.f32.gmra.mxu2 %vm568_vm0, %v549_v3  ;;  %2892 = vmatmul.msk.f32.gmra.mxu3 %vm778_vm1, %v516_v7  ;;  %v555_v3 = vld [vmem:[%s3296_s18 + $0xf8] sm:$0xff] }
  0xe1   : > { %v3579_v9 = vpop.f32.mrf.mxu2  ;;  %v1154_v10 = vpop.f32.mrf.mxu3 }
  0xe2   : > { %v3581_v11 = vpop.f32.mrf.mxu0  ;;  %v3584_v16 = vadd.f32 %v1154_v10, %v1041_v63  ;;  %v3586_v17 = vpop.f32.mrf.mxu1  ;;  %v522_v10 = vld [vmem:[%s3331_s27 + $0xf0] sm:$0xff] }
  0xe4   : > { %4801 = vst [vmem:[#allocation10_spill] sm:$0xff] %v3584_v16  ;;  %2798 = vmatmul.msk.f32.gmra.mxu0 %vm568_vm0, %v550_v13 }
  0xe5   : > { %2829 = vmatmul.msk.f32.gmra.mxu1 %vm778_vm1, %v517_v18 }
  0xe6   : > { %2862 = vmatmul.msk.f32.gmra.mxu2 %vm568_vm0, %v550_v13  ;;  %2893 = vmatmul.msk.f32.gmra.mxu3 %vm778_vm1, %v517_v18 }
  0xe9   : > { %v3593_v20 = vpop.f32.mrf.mxu2  ;;  %v3595_v23 = vpop.f32.mrf.mxu3 }
  0xea   : > { %v3597_v24 = vpop.f32.mrf.mxu0  ;;  %v3600_v26 = vpop.f32.mrf.mxu1 }
  0xec   : > { %2799 = vmatmul.msk.f32.gmra.mxu0 %vm568_vm0, %v551_v25 }
  0xed   : > { %2830 = vmatmul.msk.f32.gmra.mxu1 %vm778_vm1, %v518_v28 }
  0xee   : > { %2863 = vmatmul.msk.f32.gmra.mxu2 %vm568_vm0, %v551_v25  ;;  %2894 = vmatmul.msk.f32.gmra.mxu3 %vm778_vm1, %v518_v28  ;;  %v3683_v28 = vld [vmem:[%s3676_s20] sm:$0xff] }
  0xef   : > { %4803 = vst [vmem:[#allocation12_spill] sm:$0xff] %v3683_v28 }
  0xf1   : > { %v3610_v32 = vpop.f32.mrf.mxu2  ;;  %v3612_v33 = vpop.f32.mrf.mxu3 }
  0xf2   : > { %v3614_v34 = vpop.f32.mrf.mxu0  ;;  %v3617_v39 = vpop.f32.mrf.mxu1 }
  0xf4   : > { %2800 = vmatmul.msk.f32.gmra.mxu0 %vm568_vm0, %v552_v36 }
  0xf5   : > { %2831 = vmatmul.msk.f32.gmra.mxu1 %vm778_vm1, %v519_v40 }
  0xf6   : > { %2864 = vmatmul.msk.f32.gmra.mxu2 %vm568_vm0, %v552_v36  ;;  %2895 = vmatmul.msk.f32.gmra.mxu3 %vm778_vm1, %v519_v40  ;;  %v523_v36 = vld [vmem:[%s3331_s27 + $0xf8] sm:$0xff] }
  0xf9   : > { %v3624_v41 = vpop.f32.mrf.mxu2  ;;  %v3626_v43 = vpop.f32.mrf.mxu3 }
  0xfa   : > { %v3628_v46 = vpop.f32.mrf.mxu0  ;;  %v3631_v48 = vpop.f32.mrf.mxu1 }
  0xfc   : > { %2801 = vmatmul.msk.f32.gmra.mxu0 %vm568_vm0, %v553_v47 }
  0xfd   : > { %2832 = vmatmul.msk.f32.gmra.mxu1 %vm778_vm1, %v520_v50 }
  0xfe   : > { %2865 = vmatmul.msk.f32.gmra.mxu2 %vm568_vm0, %v553_v47  ;;  %2896 = vmatmul.msk.f32.gmra.mxu3 %vm778_vm1, %v520_v50 }
 0x101   : > { %v3638_v53 = vpop.f32.mrf.mxu2  ;;  %v3642_v54 = vpop.f32.mrf.mxu3 }
 0x102   : > { %v3644_v55 = vpop.f32.mrf.mxu0  ;;  %v3647_v58 = vpop.f32.mrf.mxu1 }
 0x104   : > { %2802 = vmatmul.msk.f32.gmra.mxu0 %vm568_vm0, %v554_v56 }
 0x105   : > { %2833 = vmatmul.msk.f32.gmra.mxu1 %vm778_vm1, %v521_v61 }
 0x106   : > { %2866 = vmatmul.msk.f32.gmra.mxu2 %vm568_vm0, %v554_v56  ;;  %2897 = vmatmul.msk.f32.gmra.mxu3 %vm778_vm1, %v521_v61  ;;  %v489_v56 = vld [vmem:[%s3676_s20 + $0x8] sm:$0xff] }
 0x109   : > { %v3656_v62 = vpop.f32.mrf.mxu2  ;;  %v3658_v63 = vpop.f32.mrf.mxu3 }
 0x10a   : > { %v3660_v0 = vpop.f32.mrf.mxu0  ;;  %v3663_v7 = vpop.f32.mrf.mxu1 }
 0x10c   : > { %2803 = vmatmul.msk.f32.gmra.mxu0 %vm568_vm0, %v555_v3 }
 0x10d   : > { %2834 = vmatmul.msk.f32.gmra.mxu1 %vm778_vm1, %v522_v10 }
 0x10e   : > { %2867 = vmatmul.msk.f32.gmra.mxu2 %vm568_vm0, %v555_v3  ;;  %2898 = vmatmul.msk.f32.gmra.mxu3 %vm778_vm1, %v522_v10  ;;  %v491_v3 = vld [vmem:[%s3676_s20 + $0x18] sm:$0xff]  ;;  %vm2563_vm0 = vcmask 1047559  }
 0x111   : > { %v3678_v13 = vpop.f32.mrf.mxu2  ;;  %v3680_v18 = vpop.f32.mrf.mxu3 }
 0x112   : > { %4802 = vst [vmem:[#allocation11_spill] sm:$0xff] %v3678_v13  ;;  %v730_v25 = vpop.f32.mrf.mxu0  ;;  %v3685_v31 = vpop.f32.mrf.mxu1 }
 0x114   : > { %2900 = vmatmul.msk.f32.vlgmr.msrb.gmra.mxu0 %vm778_vm1, %v3683_v28 }
 0x115   : > { %2835 = vmatmul.msk.f32.gmra.mxu1 %vm778_vm1, %v523_v36 }
 0x116   : > { %2904 = vmatmul.msk.f32.vlgmr.msrb.gmra.mxu2 %vm778_vm1, %v3683_v28  ;;  %2899 = vmatmul.msk.f32.gmra.mxu3 %vm778_vm1, %v523_v36 }
 0x119   : > { %v1065_v40 = vpop.f32.mrf.mxu2  ;;  %v3694_v47 = vpop.f32.mrf.mxu3 }
 0x11a   : > { %4804 = vst [vmem:[#allocation13_spill] sm:$0xff] %v3694_v47  ;;  %v733_v50 = vpop.f32.mrf.mxu0  ;;  %v940_v61 = vpop.f32.mrf.mxu1 }
 0x11b   : > { %v3698_v10 = vadd.f32 %v940_v61, %v730_v25 }
 0x11c   : > { %2901 = vmatmul.msk.f32.gmra.mxu0 %vm778_vm1, %v489_v56 }
 0x11d   : > { %4805 = vst [vmem:[#allocation14_spill] sm:$0xff] %v3698_v10  ;;  %2903 = vmatmul.msk.f32.vlgmr.msrb.gmra.mxu1 %vm778_vm1, %v491_v3 }
 0x11e   : > { %2905 = vmatmul.msk.f32.gmra.mxu2 %vm778_vm1, %v489_v56  ;;  %2907 = vmatmul.msk.f32.vlgmr.msrb.gmra.mxu3 %vm778_vm1, %v491_v3 }
 0x121   : > { %v1068_v16 = vpop.f32.mrf.mxu2  ;;  %v1178_v28 = vpop.f32.mrf.mxu3 }
 0x122   : > { %v736_v36 = vpop.f32.mrf.mxu0  ;;  %v3705_v59 = vadd.f32 %v1178_v28, %v1065_v40  ;;  %v943_v51 = vpop.f32.mrf.mxu1 }
 0x123   : > { %v3707_v44 = vadd.f32 %v943_v51, %v733_v50 }
 0x124   : > { %4806 = vst [vmem:[#allocation15_spill] sm:$0xff] %v3705_v59  ;;  %2902 = vmatmul.msk.f32.gmra.mxu0 %vm778_vm1, %v490_v4 }
 0x125   : > { %4807 = vst [vmem:[#allocation16_spill] sm:$0xff] %v3707_v44 }
 0x126   : > { %2906 = vmatmul.msk.f32.gmra.mxu2 %vm778_vm1, %v490_v4 }
 0x129   : > { %v1071_v25 = vpop.f32.mrf.mxu2  ;;  %v1181_v61 = vpop.f32.mrf.mxu3 }
 0x12a   : > { %v739_v10 = vpop.f32.mrf.mxu0  ;;  %v3711_v37 = vadd.f32 %v1181_v61, %v1068_v16  ;;  %v946_v56 = vpop.f32.mrf.mxu1 }
 0x12b   : > { %v3713_v3 = vadd.f32 %v946_v56, %v736_v36 }
 0x12c   : > { %4808 = vst [vmem:[#allocation17_spill] sm:$0xff] %v3711_v37 }
 0x12d   : > { %4809 = vst [vmem:[#allocation18_spill] sm:$0xff] %v3713_v3 }
 0x131   : > { %v1074_v29 = vpop.f32.mrf.mxu2  ;;  %v1184_v47 = vpop.f32.mrf.mxu3 }
 0x132   : > { %v742_v13 = vpop.f32.mrf.mxu0  ;;  %v3715_v28 = vadd.f32 %v1184_v47, %v1071_v25  ;;  %v949_v40 = vpop.f32.mrf.mxu1 }
 0x133   : > { %v3717_v51 = vadd.f32 %v949_v40, %v739_v10 }
 0x134   : > { %4810 = vst [vmem:[#allocation19_spill] sm:$0xff] %v3715_v28 }
 0x135   : > { %4811 = vst [vmem:[#allocation20_spill] sm:$0xff] %v3717_v51 }
 0x139   : > { %v1077_v50 = vpop.f32.mrf.mxu2  ;;  %v1187_v59 = vpop.f32.mrf.mxu3 }
 0x13a   : > { %v745_v44 = vpop.f32.mrf.mxu0  ;;  %v3719_v4 = vadd.f32 %v1187_v59, %v1074_v29  ;;  %v952_v21 = vpop.f32.mrf.mxu1 }
 0x13b   : > { %v3721_v14 = vadd.f32 %v952_v21, %v742_v13 }
 0x13c   : > { %4812 = vst [vmem:[#allocation21_spill] sm:$0xff] %v3719_v4 }
 0x13d   : > { %4813 = vst [vmem:[#allocation22_spill] sm:$0xff] %v3721_v14 }
 0x141   : > { %v1080_v16 = vpop.f32.mrf.mxu2  ;;  %v1190_v61 = vpop.f32.mrf.mxu3 }
 0x142   : > { %v748_v36 = vpop.f32.mrf.mxu0  ;;  %v3723_v56 = vadd.f32 %v1190_v61, %v1077_v50  ;;  %v955_v37 = vpop.f32.mrf.mxu1 }
 0x143   : > { %v3725_v3 = vadd.f32 %v955_v37, %v745_v44 }
 0x144   : > { %4814 = vst [vmem:[#allocation23_spill] sm:$0xff] %v3723_v56 }
 0x145   : > { %4815 = vst [vmem:[#allocation24_spill] sm:$0xff] %v3725_v3  ;;  %v899_v3 = vadd.f32 %v3488_v22, %v3471_v12  ;;  %v3797_v12 = vadd.f32 %v3586_v17, %v3567_v2 }
 0x149   : > { %v1083_v47 = vpop.f32.mrf.mxu2  ;;  %v1193_v25 = vpop.f32.mrf.mxu3 }
 0x14a   : > { %v751_v10 = vpop.f32.mrf.mxu0  ;;  %v3727_v40 = vadd.f32 %v1193_v25, %v1080_v16  ;;  %v958_v28 = vpop.f32.mrf.mxu1 }
 0x14b   : > { %v3729_v51 = vadd.f32 %v958_v28, %v748_v36 }
 0x14c   : > { %4816 = vst [vmem:[#allocation25_spill] sm:$0xff] %v3727_v40 }
 0x14d   : > { %4817 = vst [vmem:[#allocation26_spill] sm:$0xff] %v3729_v51  ;;  %v896_v51 = vadd.f32 %v3476_v15, %v3461_v6  ;;  %v914_v6 = vadd.f32 %v3557_v60, %v3537_v49  ;;  %v3801_v15 = vadd.f32 %v3595_v23, %v3579_v9 }
 0x14f   : > { %4834 = vst [vmem:[#allocation43_spill] sm:$0xff] %v3801_v15  ;;  %v3806_v15 = vld [vmem:[%s4786_s10] ss:$0 sm:$0xff] }
 0x150   : > { %4835 = vst [vmem:[#allocation44_spill] sm:$0xff] %v3806_v15 }
 0x151   : > { %v1086_v29 = vpop.f32.mrf.mxu2  ;;  %v1196_v59 = vpop.f32.mrf.mxu3 }
 0x152   : > { %v754_v21 = vpop.f32.mrf.mxu0  ;;  %v3731_v13 = vadd.f32 %v1196_v59, %v1083_v47  ;;  %v961_v4 = vpop.f32.mrf.mxu1 }
 0x153   : > { %v3733_v14 = vadd.f32 %v961_v4, %v751_v10 }
 0x154   : > { %4818 = vst [vmem:[#allocation27_spill] sm:$0xff] %v3731_v13 }
 0x155   : > { %4819 = vst [vmem:[#allocation28_spill] sm:$0xff] %v3733_v14  ;;  %v893_v14 = vadd.f32 %v3464_v8, %v3450_v1  ;;  %v3793_v8 = vadd.f32 %v3572_v5, %v3552_v57 }
 0x159   : > { %v1089_v50 = vpop.f32.mrf.mxu2  ;;  %v1199_v61 = vpop.f32.mrf.mxu3 }
 0x15a   : > { %v3735_v37 = vpop.f32.mrf.mxu0  ;;  %v3737_v44 = vadd.f32 %v1199_v61, %v1086_v29  ;;  %v964_v56 = vpop.f32.mrf.mxu1 }
 0x15b   : > { %v3739_v16 = vadd.f32 %v964_v56, %v754_v21 }
 0x15c   : > { %4820 = vst [vmem:[#allocation29_spill] sm:$0xff] %v3737_v44 }
 0x15d   : > { %4821 = vst [vmem:[#allocation30_spill] sm:$0xff] %v3739_v16 }
 0x161   : > { %v3741_v25 = vpop.f32.mrf.mxu2  ;;  %v1202_v28 = vpop.f32.mrf.mxu3 }
 0x162   : > { %v3743_v36 = vpop.f32.mrf.mxu0  ;;  %v3745_v40 = vadd.f32 %v1202_v28, %v1089_v50  ;;  %v3770_v28 = vld [vmem:[%s4785_s9] ss:$0 sm:$0xff] }
 0x163   : > { %4832 = vst [vmem:[#allocation41_spill] sm:$0xff] %v3770_v28 }
 0x164   : > { %4822 = vst [vmem:[#allocation31_spill] sm:$0xff] %v3745_v40  ;;  %v902_v40 = vadd.f32 %v3503_v30, %v3483_v19 }
 0x169   : > { %v3747_v47 = vpop.f32.mrf.mxu2 }
 0x16a   : > { %v3749_v4 = vpop.f32.mrf.mxu0 }
 0x16b   : > { %4823 = vst [vmem:[#allocation32_spill] sm:$0xff] %v3749_v4 }
 0x171   : > { %v3751_v10 = vpop.f32.mrf.mxu2 }
 0x172   : > { %4824 = vst [vmem:[#allocation33_spill] sm:$0xff] %v3751_v10  ;;  %v3753_v59 = vpop.f32.mrf.mxu0 }
 0x173   : > { %4825 = vst [vmem:[#allocation34_spill] sm:$0xff] %v3753_v59 }
 0x179   : > { %v3755_v29 = vpop.f32.mrf.mxu2 }
 0x17a   : > { %4826 = vst [vmem:[#allocation35_spill] sm:$0xff] %v3755_v29  ;;  %v3757_v61 = vpop.f32.mrf.mxu0 }
 0x17b   : > { %4827 = vst [vmem:[#allocation36_spill] sm:$0xff] %v3757_v61 }
 0x181   : > { %v3759_v56 = vpop.f32.mrf.mxu2 }
 0x182   : > { %4828 = vst [vmem:[#allocation37_spill] sm:$0xff] %v3759_v56  ;;  %v3761_v21 = vpop.f32.mrf.mxu0 }
 0x183   : > { %4829 = vst [vmem:[#allocation38_spill] sm:$0xff] %v3761_v21 }
 0x189   : > { %v3763_v44 = vpop.f32.mrf.mxu2 }
 0x18a   : > { %4830 = vst [vmem:[#allocation39_spill] sm:$0xff] %v3763_v44  ;;  %v3765_v50 = vpop.f32.mrf.mxu0  ;;  %v908_v44 = vadd.f32 %v3530_v45, %v3513_v35 }
 0x18b   : > { %4831 = vst [vmem:[#allocation40_spill] sm:$0xff] %v3765_v50  ;;  %v905_v50 = vadd.f32 %v3518_v38, %v3498_v27 }
 0x191   : > { %v3772_v13 = vpop.f32.mrf.mxu2 }
 0x192   : > { %4833 = vst [vmem:[#allocation42_spill] sm:$0xff] %v3772_v13  ;;  %v1267_v16 = vpop.f32.mrf.mxu0  ;;  %v911_v13 = vadd.f32 %v3542_v52, %v3525_v42 }
 0x193   : > { %v1268_v1 = vadd.f32 %v3770_v28, %v1267_v16 }
 0x195   : > { %v1324_v19 = vrot.slane %v1268_v1, 1  ;;  %v1325_v22 = vrot.slane %v1268_v1, 2  ;;  %v1326_v27 = vrot.slane %v1268_v1, 3  ;;  %v1327_v30 = vrot.slane %v1268_v1, 4 }
 0x196   : > { %v1328_v35 = vrot.slane %v1268_v1, 5  ;;  %v1329_v38 = vrot.slane %v1268_v1, 6  ;;  %v1330_v42 = vrot.slane %v1268_v1, 7  ;;  %v1352_v45 = vperm.slane %v1268_v1, 0 }
 0x197   : > { %v1353_v49 = vperm.slane %v1324_v19, 0  ;;  %v1354_v52 = vperm.slane %v1325_v22, 0  ;;  %v1355_v57 = vperm.slane %v1326_v27, 0  ;;  %v1356_v60 = vperm.slane %v1327_v30, 0 }
 0x198   : > { %v1357_v5 = vperm.slane %v1328_v35, 0  ;;  %v1358_v16 = vperm.slane %v1329_v38, 0  ;;  %v1359_v2 = vperm.slane %v1330_v42, 0  ;;  %v1416_v17 = vadd.f32 %v1352_v45, %v893_v14 }
 0x199   : > { %v1417_v21 = vadd.f32 %v1353_v49, %v896_v51  ;;  %v1418_v56 = vadd.f32 %v1354_v52, %v899_v3  ;;  %v1419_v9 = vadd.f32 %v1355_v57, %v902_v40  ;;  %v1420_v23 = vadd.f32 %v1356_v60, %v905_v50  ;;  %v1308_v30 = vpop.f32.mrf.mxu2 }
 0x19a   : > { %v3810_v1 = vadd.f32 %v3600_v26, %v3581_v11  ;;  %v1421_v19 = vadd.f32 %v1357_v5, %v908_v44  ;;  %v1422_v22 = vadd.f32 %v1358_v16, %v911_v13  ;;  %v1576_v27 = vmul.f32 0.5, %v1416_v17 }
 0x19b   : > { %v1423_v35 = vadd.f32 %v1359_v2, %v914_v6  ;;  %v1577_v38 = vmul.f32 0.5, %v1417_v21  ;;  %v1578_v14 = vmul.f32 0.5, %v1418_v56  ;;  %v1579_v51 = vmul.f32 0.5, %v1419_v9 }
 0x19c   : > { %v3814_v3 = vadd.f32 %v3612_v33, %v3593_v20  ;;  %v3818_v40 = vadd.f32 %v3617_v39, %v3597_v24  ;;  %v1580_v50 = vmul.f32 0.5, %v1420_v23  ;;  %2938 = vtanh.f32 %v1576_v27  ;;  %v4845_v27 = vld [vmem:[#allocation3_spill] sm:$0xff] }
 0x19d   : > { %v3822_v11 = vadd.f32 %v3626_v43, %v3610_v32  ;;  %v1581_v26 = vmul.f32 0.5, %v1421_v19  ;;  %2940 = vtanh.f32 %v1577_v38  ;;  %v1309_v13 = vadd.f32 %v3806_v15, %v1308_v30  ;;  %v967_v43 = vpop.f32.mrf.mxu1  ;;  %v4846_v38 = vld [vmem:[#allocation11_spill] sm:$0xff] }
 0x19e   : > { %4836 = vst [vmem:[#allocation45_spill] sm:$0xff] %v3814_v3  ;;  %v3827_v44 = vadd.f32 %v3631_v48, %v3614_v34  ;;  %v3831_v20 = vadd.f32 %v3642_v54, %v3624_v41  ;;  %v1582_v24 = vmul.f32 0.5, %v1422_v22  ;;  %2942 = vtanh.f32 %v1578_v14  ;;  %v4847_v14 = vld [vmem:[#allocation13_spill] sm:$0xff] }
 0x19f   : > { %4837 = vst [vmem:[#allocation46_spill] sm:$0xff] %v3822_v11  ;;  %v1583_v33 = vmul.f32 0.5, %v1423_v35  ;;  %2944 = vtanh.f32 %v1579_v51  ;;  %v1452_v39 = vrot.slane %v1309_v13, 1  ;;  %v1453_v56 = vrot.slane %v1309_v13, 2 }
 0x1a0   : > { %4838 = vst [vmem:[#allocation47_spill] sm:$0xff] %v3831_v20  ;;  %v3835_v32 = vadd.f32 %v3647_v58, %v3628_v46  ;;  %2946 = vtanh.f32 %v1580_v50  ;;  %v1454_v21 = vrot.slane %v1309_v13, 3  ;;  %v1455_v6 = vrot.slane %v1309_v13, 4 }
 0x1a1   : > { %2948 = vtanh.f32 %v1581_v26  ;;  %v1456_v34 = vrot.slane %v1309_v13, 5  ;;  %v1457_v48 = vrot.slane %v1309_v13, 6  ;;  %v1458_v42 = vrot.slane %v1309_v13, 7 }
 0x1a2   : > { %4839 = vst [vmem:[#allocation48_spill] sm:$0xff] %v3835_v32  ;;  %v2939_v41 = vpop.eup %2938  ;;  %v3839_v54 = vadd.f32 %v3658_v63, %v3638_v53  ;;  %2950 = vtanh.f32 %v1582_v24  ;;  %v1480_v45 = vperm.slane %v1309_v13, 0  ;;  %v1481_v49 = vperm.slane %v1452_v39, 0  ;;  %v4850_v13 = vld [vmem:[#allocation4_spill] sm:$0xff]  ;;  %v4851_v39 = vld [vmem:[#allocation5_spill] sm:$0xff] }
 0x1a3   : > { %v2941_v52 = vpop.eup %2940  ;;  %v3843_v46 = vadd.f32 %v3663_v7, %v3644_v55  ;;  %v3847_v58 = vadd.f32 %v3680_v18, %v3656_v62  ;;  %2952 = vtanh.f32 %v1583_v33  ;;  %v1482_v57 = vperm.slane %v1453_v56, 0  ;;  %v4844_v62 = vld [vmem:[#allocation2_spill] sm:$0xff] }
 0x1a4   : > { %4840 = vst [vmem:[#allocation49_spill] sm:$0xff] %v3839_v54  ;;  %v2943_v60 = vpop.eup %2942  ;;  %v1640_v5 = vadd.f32 1.0, %v2939_v41  ;;  %v1641_v16 = vadd.f32 1.0, %v2941_v52  ;;  %v1483_v2 = vperm.slane %v1454_v21, 0  ;;  %v1484_v53 = vperm.slane %v1455_v6, 0  ;;  %v4852_v21 = vld [vmem:[#allocation6_spill] sm:$0xff] }
 0x1a5   : > { %4841 = vst [vmem:[#allocation50_spill] sm:$0xff] %v3843_v46  ;;  %v2945_v63 = vpop.eup %2944  ;;  %v1642_v17 = vadd.f32 1.0, %v2943_v60  ;;  %v1485_v9 = vperm.slane %v1456_v34, 0  ;;  %v1486_v23 = vperm.slane %v1457_v48, 0  ;;  %v1487_v19 = vperm.slane %v1458_v42, 0  ;;  %v4854_v42 = vld [vmem:[#allocation8_spill] sm:$0xff]  ;;  %v3890_v52 = vpop.f32.mrf.mxu1 }
 0x1a6   : > { %4842 = vst [vmem:[#allocation51_spill] sm:$0xff] %v3847_v58  ;;  %v2947_v22 = vpop.eup %2946  ;;  %v3851_v55 = vadd.f32 %v3685_v31, %v3660_v0  ;;  %v1643_v7 = vadd.f32 1.0, %v2945_v63  ;;  %v3854_v18 = vadd.f32 %v1480_v45, %v4844_v62  ;;  %v3857_v30 = vadd.f32 %v1481_v49, %v4845_v27  ;;  %v4855_v45 = vld [vmem:[#allocation9_spill] sm:$0xff] }
 0x1a7   : > { %v2949_v35 = vpop.eup %2948  ;;  %v3861_v51 = vadd.f32 %v4847_v14, %v4846_v38  ;;  %v3864_v50 = vadd.f32 %v967_v43, %v3735_v37  ;;  %v1644_v26 = vadd.f32 1.0, %v2947_v22  ;;  %v3867_v24 = vadd.f32 %v1482_v57, %v4850_v13  ;;  %v4853_v37 = vld [vmem:[#allocation7_spill] sm:$0xff] }
 0x1a8   : > { %4843 = vst [vmem:[#allocation52_spill] sm:$0xff] %v3851_v55  ;;  %v2951_v0 = vpop.eup %2950  ;;  %v3869_v31 = vmul.f32 0.5, %v1640_v5  ;;  %v3871_v33 = vmul.f32 0.5, %v1641_v16  ;;  %v3874_v56 = vadd.f32 %v1483_v2, %v4851_v39  ;;  %v3877_v6 = vadd.f32 %v1484_v53, %v4852_v21  ;;  %v1270_v2 = vpop.f32.mrf.mxu0 }
 0x1a9   : > { %4848 = vst [vmem:[#allocation2_spill] sm:$0xff] %v3861_v51  ;;  %v2953_v34 = vpop.eup %2952  ;;  %v3879_v48 = vmul.f32 0.5, %v1642_v17  ;;  %v3882_v43 = vadd.f32 %v1485_v9, %v4853_v37  ;;  %v3885_v41 = vadd.f32 %v1486_v23, %v4854_v42  ;;  %v3888_v49 = vadd.f32 %v1487_v19, %v4855_v45 }
 0x1aa   : > { %4849 = vst [vmem:[#allocation3_spill] sm:$0xff] %v3864_v50  ;;  %v1645_v57 = vadd.f32 1.0, %v2949_v35  ;;  %v3892_v60 = vmul.f32 0.5, %v1643_v7  ;;  %v1646_v53 = vadd.f32 1.0, %v2951_v0  ;;  %v3896_v63 = vmul.f32 0.5, %v1644_v26 }
 0x1ab   : > { %v1736_v9 = vand.u32 2147483647, %v3854_v18  ;;  %v1647_v23 = vadd.f32 1.0, %v2953_v34  ;;  %v1737_v22 = vand.u32 2147483647, %v3857_v30  ;;  %v3907_v38 = vadd.f32 %v3770_v28, %v1270_v2 }
 0x1ac   : > { %v1738_v7 = vand.u32 2147483647, %v3867_v24  ;;  %v1739_v62 = vand.u32 2147483647, %v3874_v56  ;;  %v1740_v27 = vand.u32 2147483647, %v3877_v6 }
 0x1ad   : > { %v1741_v35 = vand.u32 2147483647, %v3882_v43  ;;  %v1742_v14 = vand.u32 2147483647, %v3885_v41  ;;  %v1743_v26 = vand.u32 2147483647, %v3888_v49 }
 0x1ae   : > { %v1768_v13 = vsub.f32 0.0, %v1736_v9  ;;  %v1769_v0 = vsub.f32 0.0, %v1737_v22  ;;  %v1770_v39 = vsub.f32 0.0, %v1738_v7  ;;  %v1771_v21 = vsub.f32 0.0, %v1739_v62  ;;  %v3919_v62 = vpop.f32.mrf.mxu1 }
 0x1af   : > { %v1772_v34 = vsub.f32 0.0, %v1740_v27  ;;  %v1773_v37 = vsub.f32 0.0, %v1741_v35  ;;  %v3911_v42 = vmul.f32 0.5, %v1645_v57  ;;  %v1774_v2 = vsub.f32 0.0, %v1742_v14  ;;  %4856 = vst [vmem:[#allocation11_spill] sm:$0xff] %v3919_v62 }
 0x1b0   : > { %v1800_v19 = vmul.f32 1.442695, %v1768_v13  ;;  %v1802_v17 = vmul.f32 1.442695, %v1769_v0  ;;  %v1804_v5 = vmul.f32 1.442695, %v1770_v39  ;;  %v3929_v39 = vpop.f32.mrf.mxu3 }
 0x1b1   : > { %v1806_v51 = vmul.f32 1.442695, %v1771_v21  ;;  %v3915_v58 = vmul.f32 0.5, %v1646_v53  ;;  %v1775_v54 = vsub.f32 0.0, %v1743_v26  ;;  %v1808_v9 = vmul.f32 1.442695, %v1772_v34 }
 0x1b2   : > { %2954 = vpow2.f32 %v1800_v19  ;;  %v1810_v22 = vmul.f32 1.442695, %v1773_v37  ;;  %v1331_v7 = vrot.slane %v3907_v38, 1  ;;  %v1332_v57 = vrot.slane %v3907_v38, 2 }
 0x1b3   : > { %2956 = vpow2.f32 %v1802_v17  ;;  %v1333_v27 = vrot.slane %v3907_v38, 3  ;;  %v1334_v35 = vrot.slane %v3907_v38, 4  ;;  %v1335_v14 = vrot.slane %v3907_v38, 5 }
 0x1b4   : > { %2958 = vpow2.f32 %v1804_v5  ;;  %v1812_v17 = vmul.f32 1.442695, %v1774_v2  ;;  %v3926_v26 = vmul.f32 0.5, %v1647_v23  ;;  %v1814_v13 = vmul.f32 1.442695, %v1775_v54 }
 0x1b5   : > { %2960 = vpow2.f32 %v1806_v51  ;;  %v1360_v21 = vperm.slane %v3907_v38, 0  ;;  %v3933_v34 = vperm.slane %v1331_v7, 0  ;;  %v3935_v37 = vperm.slane %v1332_v57, 0 }
 0x1b6   : > { %2962 = vpow2.f32 %v1808_v9  ;;  %v3937_v51 = vperm.slane %v1333_v27, 0  ;;  %v3939_v23 = vperm.slane %v1334_v35, 0  ;;  %v3941_v2 = vperm.slane %v1335_v14, 0  ;;  %v3954_v15 = vpop.f32.mrf.mxu1 }
 0x1b7   : > { %2964 = vpow2.f32 %v1810_v22  ;;  %v3944_v27 = vadd.f32 %v1360_v21, %v3793_v8  ;;  %4862 = vst [vmem:[#allocation4_spill] sm:$0xff] %v3954_v15 }
 0x1b8   : > { %v2955_v53 = vpop.eup %2954  ;;  %4857 = vst [vmem:[#allocation13_spill] sm:$0xff] %v3941_v2  ;;  %2966 = vpow2.f32 %v1812_v17  ;;  %v3960_v4 = vpop.f32.mrf.mxu3 }
 0x1b9   : > { %v2957_v54 = vpop.eup %2956  ;;  %v1864_v9 = vadd.f32 1.0, %v2955_v53  ;;  %v1867_v0 = vmul.f32 -0.5, %v2955_v53  ;;  %v1870_v19 = vand.u32 2147483647, %v2955_v53  ;;  %2968 = vpow2.f32 %v1814_v13 }
 0x1ba   : > { %v2959_v5 = vpop.eup %2958  ;;  %v1873_v16 = vadd.f32 1.0, %v2957_v54  ;;  %v1876_v7 = vmul.f32 -0.5, %v2957_v54  ;;  %v1879_v45 = vand.u32 2147483647, %v2957_v54 }
 0x1bb   : > { %v2961_v57 = vpop.eup %2960  ;;  %2970 = vlog2.f32 %v1864_v9  ;;  %v1868_v20 = vadd.f32 1.0, %v1867_v0  ;;  %v1882_v22 = vadd.f32 1.0, %v2959_v5  ;;  %vm3946_vm2 = vcmp.lt.f32.partialorder %v1870_v19, 0.0004427343 }
 0x1bc   : > { %v2963_v35 = vpop.eup %2962  ;;  %2972 = vlog2.f32 %v1873_v16  ;;  %v1877_v17 = vadd.f32 1.0, %v1876_v7  ;;  %v1885_v11 = vmul.f32 -0.5, %v2959_v5  ;;  %vm3950_vm3 = vcmp.lt.f32.partialorder %v1879_v45, 0.0004427343 }
 0x1bd   : > { %2974 = vlog2.f32 %v1882_v22  ;;  %v1888_v3 = vand.u32 2147483647, %v2959_v5  ;;  %v1891_v9 = vadd.f32 1.0, %v2961_v57  ;;  %v2965_v0 = vpop.eup %2964  ;;  %v1869_v8 = vmul.f32 %v2955_v53, %v1868_v20 }
 0x1be   : > { %v1886_v21 = vadd.f32 1.0, %v1885_v11  ;;  %v1894_v50 = vmul.f32 -0.5, %v2961_v57  ;;  %v1897_v19 = vand.u32 2147483647, %v2961_v57  ;;  %v2967_v61 = vpop.eup %2966  ;;  %v1878_v29 = vmul.f32 %v2957_v54, %v1877_v17 }
 0x1bf   : > { %2976 = vlog2.f32 %v1891_v9  ;;  %v1900_v16 = vadd.f32 1.0, %v2963_v35  ;;  %v1903_v7 = vmul.f32 -0.5, %v2963_v35  ;;  %v2969_v59 = vpop.eup %2968  ;;  %vm3956_vm4 = vcmp.lt.f32.partialorder %v1888_v3, 0.0004427343 }
 0x1c0   : > { %v1887_v45 = vmul.f32 %v2959_v5, %v1886_v21  ;;  %v1895_v22 = vadd.f32 1.0, %v1894_v50  ;;  %v1906_v10 = vand.u32 2147483647, %v2963_v35  ;;  %v1909_v20 = vadd.f32 1.0, %v2965_v0 }
 0x1c1   : > { %v2971_v62 = vpop.eup %2970  ;;  %2978 = vlog2.f32 %v1900_v16  ;;  %v1904_v11 = vadd.f32 1.0, %v1903_v7  ;;  %v1912_v53 = vmul.f32 -0.5, %v2965_v0  ;;  %vm3962_vm5 = vcmp.lt.f32.partialorder %v1897_v19, 0.0004427343 }
 0x1c2   : > { %v2973_v15 = vpop.eup %2972  ;;  %v1866_v54 = vmul.f32 0.6931472, %v2971_v62  ;;  %v1896_v17 = vmul.f32 %v2961_v57, %v1895_v22  ;;  %v1915_v3 = vand.u32 2147483647, %v2965_v0  ;;  %vm3966_vm6 = vcmp.lt.f32.partialorder %v1906_v10, 0.0004427343 }
 0x1c3   : > { %v2975_v5 = vpop.eup %2974  ;;  %v1875_v21 = vmul.f32 0.6931472, %v2973_v15  ;;  %2980 = vlog2.f32 %v1909_v20  ;;  %v1913_v46 = vadd.f32 1.0, %v1912_v53  ;;  %v1905_v28 = vmul.f32 %v2963_v35, %v1904_v11 }
 0x1c4   : > { %v1872_v16 = vsel %vm3946_vm2, %v1869_v8, %v1866_v54  ;;  %v1884_v7 = vmul.f32 0.6931472, %v2975_v5  ;;  %v1918_v62 = vadd.f32 1.0, %v2967_v61  ;;  %vm3974_vm7 = vcmp.lt.f32.partialorder %v1915_v3, 0.0004427343  ;;  %v3980_v54 = vpop.f32.mrf.mxu1 }
 0x1c5   : > { %v2977_v57 = vpop.eup %2976  ;;  %v1881_v19 = vsel %vm3950_vm3, %v1878_v29, %v1875_v21  ;;  %v1921_v10 = vmul.f32 -0.5, %v2967_v61  ;;  %v1924_v15 = vand.u32 2147483647, %v2967_v61  ;;  %v1914_v32 = vmul.f32 %v2965_v0, %v1913_v46 }
 0x1c6   : > { %v1893_v2 = vmul.f32 0.6931472, %v2977_v57  ;;  %2982 = vlog2.f32 %v1918_v62  ;;  %v1927_v20 = vadd.f32 1.0, %v2969_v59  ;;  %v1890_v14 = vsel %vm3956_vm4, %v1887_v45, %v1884_v7  ;;  %v3998_v57 = vpop.f32.mrf.mxu3 }
 0x1c7   : > { %v2979_v53 = vpop.eup %2978  ;;  %v1922_v35 = vadd.f32 1.0, %v1921_v10  ;;  %v1930_v8 = vmul.f32 -0.5, %v2969_v59  ;;  %v1933_v11 = vand.u32 2147483647, %v2969_v59  ;;  %v4871_v3 = vmax.f32 %v3854_v18, 0.0 }
 0x1c8   : > { %v1899_v29 = vsel %vm3962_vm5, %v1896_v17, %v1893_v2  ;;  %v1902_v13 = vmul.f32 0.6931472, %v2979_v53  ;;  %2984 = vlog2.f32 %v1927_v20  ;;  %vm3986_vm8 = vcmp.lt.f32.partialorder %v1924_v15, 0.0004427343 }
 0x1c9   : > { %v2152_v5 = vadd.f32 %v1872_v16, %v4871_v3  ;;  %v2981_v46 = vpop.eup %2980  ;;  %v1923_v0 = vmul.f32 %v2967_v61, %v1922_v35  ;;  %v1931_v55 = vadd.f32 1.0, %v1930_v8  ;;  %v4874_v45 = vmax.f32 %v3857_v30, 0.0 }
 0x1ca   : > { %v1908_v62 = vsel %vm3966_vm6, %v1905_v28, %v1902_v13  ;;  %v1911_v9 = vmul.f32 0.6931472, %v2981_v46  ;;  %v4875_v2 = vmax.f32 %v3867_v24, 0.0  ;;  %v4876_v18 = vmax.f32 %v3874_v56, 0.0 }
 0x1cb   : > { %v2153_v7 = vadd.f32 %v1881_v19, %v4874_v45  ;;  %vm4000_vm9 = vcmp.lt.f32.partialorder %v1933_v11, 0.0004427343  ;;  %v4879_v10 = vmax.f32 %v3877_v6, 0.0  ;;  %v2184_v19 = vmul.f32 %v2152_v5, %v3869_v31 }
 0x1cc   : > { %v2154_v17 = vadd.f32 %v1890_v14, %v4875_v2  ;;  %v2155_v16 = vadd.f32 %v1899_v29, %v4876_v18  ;;  %v2983_v50 = vpop.eup %2982  ;;  %v1917_v24 = vsel %vm3974_vm7, %v1914_v32, %v1911_v9  ;;  %v1932_v15 = vmul.f32 %v2969_v59, %v1931_v55  ;;  %v4028_v21 = vpop.f32.mrf.mxu1 }
 0x1cd   : > { %v2156_v30 = vadd.f32 %v1908_v62, %v4879_v10  ;;  %v2185_v28 = vmul.f32 %v2153_v7, %v3871_v33  ;;  %v1920_v53 = vmul.f32 0.6931472, %v2983_v50  ;;  %v4880_v14 = vmax.f32 %v3882_v43, 0.0 }
 0x1ce   : > { %v2186_v56 = vmul.f32 %v2154_v17, %v3879_v48  ;;  %v2187_v20 = vmul.f32 %v2155_v16, %v3892_v60  ;;  %v2216_v8 = vsel %vm778_vm1, %v2184_v19, 0.0  ;;  %v2985_v31 = vpop.eup %2984  ;;  %v4881_v29 = vmax.f32 %v3885_v41, 0.0 }
 0x1cf   : > { %v2157_v35 = vadd.f32 %v1917_v24, %v4880_v14  ;;  %v2188_v6 = vmul.f32 %v2156_v30, %v3896_v63  ;;  %v2217_v11 = vrot.slane %v2216_v8, 4  ;;  %v2223_v33 = vsel %vm778_vm1, %v2185_v28, 0.0  ;;  %v4035_v28 = vpop.f32.mrf.mxu3  ;;  %v4041_v14 = vld [vmem:[%s4787_s11] ss:$0 sm:$0xff] }
 0x1d0   : > { %v2230_v22 = vsel %vm778_vm1, %v2186_v56, 0.0  ;;  %v2237_v59 = vsel %vm778_vm1, %v2187_v20, 0.0  ;;  %v1926_v32 = vsel %vm3986_vm8, %v1923_v0, %v1920_v53  ;;  %v1929_v48 = vmul.f32 0.6931472, %v2985_v31 }
 0x1d1   : > { %v2189_v60 = vmul.f32 %v2157_v35, %v3911_v42  ;;  %v2224_v43 = vrot.slane %v2223_v33, 4  ;;  %v2158_v63 = vadd.f32 %v1926_v32, %v4881_v29  ;;  %v2218_v13 = vadd.f32 %v2217_v11, %v2216_v8 }
 0x1d2   : > { %v2231_v3 = vrot.slane %v2230_v22, 4  ;;  %v2238_v5 = vrot.slane %v2237_v59, 4  ;;  %v1935_v46 = vsel %vm4000_vm9, %v1932_v15, %v1929_v48  ;;  %v2244_v45 = vsel %vm778_vm1, %v2188_v6, 0.0 }
 0x1d3   : > { %v2225_v55 = vadd.f32 %v2224_v43, %v2223_v33  ;;  %v2251_v7 = vsel %vm778_vm1, %v2189_v60, 0.0  ;;  %v4882_v0 = vmax.f32 %v3888_v49, 0.0  ;;  %v2190_v62 = vmul.f32 %v2158_v63, %v3915_v58 }
 0x1d4   : > { %v2219_v41 = vrot.slane %v2218_v13, 2  ;;  %v2232_v9 = vadd.f32 %v2231_v3, %v2230_v22  ;;  %v2239_v17 = vadd.f32 %v2238_v5, %v2237_v59  ;;  %v2245_v18 = vrot.slane %v2244_v45, 4  ;;  %v4046_v59 = vld [vmem:[%s4788_s12] ss:$0 sm:$0xff] }
 0x1d5   : > { %v2159_v42 = vadd.f32 %v1935_v46, %v4882_v0  ;;  %v2226_v2 = vrot.slane %v2225_v55, 2  ;;  %v2252_v16 = vrot.slane %v2251_v7, 4  ;;  %v2258_v19 = vsel %vm778_vm1, %v2190_v62, 0.0 }
 0x1d6   : > { %v2220_v10 = vadd.f32 %v2219_v41, %v2218_v13  ;;  %v2233_v30 = vrot.slane %v2232_v9, 2  ;;  %v2240_v24 = vrot.slane %v2239_v17, 2  ;;  %v2246_v49 = vadd.f32 %v2245_v18, %v2244_v45 }
 0x1d7   : > { %v2191_v61 = vmul.f32 %v2159_v42, %v3926_v26  ;;  %v2227_v50 = vadd.f32 %v2226_v2, %v2225_v55  ;;  %v2253_v15 = vadd.f32 %v2252_v16, %v2251_v7  ;;  %v2259_v20 = vrot.slane %v2258_v19, 4  ;;  %v4050_v7 = vpop.f32.mrf.mxu1 }
 0x1d8   : > { %v2221_v56 = vrot.slane %v2220_v10, 1  ;;  %v2234_v58 = vadd.f32 %v2233_v30, %v2232_v9  ;;  %v2241_v35 = vadd.f32 %v2240_v24, %v2239_v17  ;;  %v2247_v6 = vrot.slane %v2246_v49, 2  ;;  %v4057_v30 = vpop.f32.mrf.mxu3 }
 0x1d9   : > { %v2265_v53 = vsel %vm778_vm1, %v2191_v61, 0.0  ;;  %v2228_v26 = vrot.slane %v2227_v50, 1  ;;  %v2254_v8 = vrot.slane %v2253_v15, 2  ;;  %v2260_v33 = vadd.f32 %v2259_v20, %v2258_v19 }
 0x1da   : > { %v2222_v31 = vadd.f32 %v2221_v56, %v2220_v10  ;;  %v2235_v11 = vrot.slane %v2234_v58, 1  ;;  %v2266_v22 = vrot.slane %v2265_v53, 4  ;;  %v2242_v48 = vrot.slane %v2241_v35, 1 }
 0x1db   : > { %v2229_v32 = vadd.f32 %v2228_v26, %v2227_v50  ;;  %v2248_v60 = vadd.f32 %v2247_v6, %v2246_v49  ;;  %v2255_v43 = vadd.f32 %v2254_v8, %v2253_v15  ;;  %v2261_v63 = vrot.slane %v2260_v33, 2 }
 0x1dc   : > { %v2236_v29 = vadd.f32 %v2235_v11, %v2234_v58  ;;  %v2267_v13 = vadd.f32 %v2266_v22, %v2265_v53  ;;  %v2444_v3 = vmul.f32 %v4041_v14, %v2222_v31  ;;  %v2243_v5 = vadd.f32 %v2242_v48, %v2241_v35 }
 0x1dd   : > { %v2249_v46 = vrot.slane %v2248_v60, 1  ;;  %v2256_v55 = vrot.slane %v2255_v43, 1  ;;  %v2445_v45 = vmul.f32 %v4041_v14, %v2229_v32  ;;  %v2262_v0 = vadd.f32 %v2261_v63, %v2260_v33 }
 0x1de   : > { %v2268_v42 = vrot.slane %v2267_v13, 2  ;;  %v2446_v62 = vmul.f32 %v4041_v14, %v2236_v29  ;;  %v2480_v41 = vadd.f32 %v4046_v59, %v2444_v3  ;;  %v2447_v17 = vmul.f32 %v4041_v14, %v2243_v5 }
 0x1df   : > { %v2250_v9 = vadd.f32 %v2249_v46, %v2248_v60  ;;  %v2257_v2 = vadd.f32 %v2256_v55, %v2255_v43  ;;  %v2481_v18 = vadd.f32 %v4046_v59, %v2445_v45  ;;  %v2263_v16 = vrot.slane %v2262_v0, 1  ;;  %v1276_v55 = vpop.f32.mrf.mxu1 }
 0x1e0   : > { %v2269_v61 = vadd.f32 %v2268_v42, %v2267_v13  ;;  %v2482_v10 = vadd.f32 %v4046_v59, %v2446_v62  ;;  %v2483_v24 = vadd.f32 %v4046_v59, %v2447_v17  ;;  %v1425_v22 = vadd.f32 %v3933_v34, %v3797_v12 }
 0x1e1   : > { %v2448_v19 = vmul.f32 %v4041_v14, %v2250_v9  ;;  %v2449_v50 = vmul.f32 %v4041_v14, %v2257_v2  ;;  %v2544_v49 = vrot.slane %v2481_v18, 7  ;;  %v2264_v15 = vadd.f32 %v2263_v16, %v2262_v0  ;;  %v4886_v9 = vld [vmem:[#allocation13_spill] sm:$0xff]  ;;  %v4888_v18 = vld [vmem:[#allocation50_spill] sm:$0xff] }
 0x1e2   : > { %v2270_v56 = vrot.slane %v2269_v61, 1  ;;  %v2547_v58 = vrot.slane %v2482_v10, 6  ;;  %v2550_v35 = vrot.slane %v2483_v24, 5  ;;  %v1426_v43 = vadd.f32 %v3935_v37, %v3810_v1 }
 0x1e3   : > { %v2484_v20 = vadd.f32 %v4046_v59, %v2448_v19  ;;  %v2485_v53 = vadd.f32 %v4046_v59, %v2449_v50  ;;  %v2546_v26 = vsel %vm2545_vm10, %v2544_v49, %v2480_v41  ;;  %v2450_v8 = vmul.f32 %v4041_v14, %v2264_v15  ;;  %v4892_v50 = vld [vmem:[#allocation33_spill] sm:$0xff]  ;;  %v4893_v49 = vld [vmem:[#allocation52_spill] sm:$0xff] }
 0x1e4   : > { %v2271_v6 = vadd.f32 %v2270_v56, %v2269_v61  ;;  %v2549_v31 = vsel %vm2548_vm11, %v2547_v58, %v2546_v26  ;;  %v4883_v63 = vrot.slane %v3907_v38, 6  ;;  %v1427_v3 = vadd.f32 %v3937_v51, %v3818_v40  ;;  %v4889_v61 = vld [vmem:[#allocation12_spill] sm:$0xff]  ;;  %v4894_v56 = vld [vmem:[#allocation34_spill] sm:$0xff] }
 0x1e5   : > { %v2552_v11 = vsel %vm2551_vm12, %v2550_v35, %v2549_v31  ;;  %v2553_v33 = vrot.slane %v2484_v20, 4  ;;  %v2486_v48 = vadd.f32 %v4046_v59, %v2450_v8  ;;  %v2556_v60 = vrot.slane %v2485_v53, 3  ;;  %v4895_v58 = vld [vmem:[#allocation4_spill] sm:$0xff] }
 0x1e6   : > { %v2451_v32 = vmul.f32 %v4041_v14, %v2271_v6  ;;  %v1366_v13 = vperm.slane %v4883_v63, 0  ;;  %v1584_v46 = vmul.f32 0.5, %v3944_v27  ;;  %v4084_v1 = vadd.f32 %v3929_v39, %v3741_v25  ;;  %v1220_v25 = vpop.f32.mrf.mxu3  ;;  %v4885_v39 = vld [vmem:[#allocation48_spill] sm:$0xff]  ;;  %v4896_v6 = vld [vmem:[#allocation35_spill] sm:$0xff] }
 0x1e7   : > { %v2555_v29 = vsel %vm2554_vm13, %v2553_v33, %v2552_v11  ;;  %v2559_v34 = vrot.slane %v2486_v48, 2  ;;  %v1428_v37 = vadd.f32 %v3939_v23, %v3827_v44  ;;  %v1585_v45 = vmul.f32 0.5, %v1425_v22  ;;  %v4887_v44 = vld [vmem:[#allocation41_spill] sm:$0xff]  ;;  %v4897_v11 = vld [vmem:[#allocation36_spill] sm:$0xff] }
 0x1e8   : > { %v2487_v5 = vadd.f32 %v4046_v59, %v2451_v32  ;;  %v2558_v12 = vsel %vm2557_vm14, %v2556_v60, %v2555_v29  ;;  %v4884_v51 = vrot.slane %v3907_v38, 7  ;;  %v1586_v62 = vmul.f32 0.5, %v1426_v43  ;;  %v4898_v60 = vld [vmem:[#allocation37_spill] sm:$0xff]  ;;  %v4899_v29 = vld [vmem:[#allocation38_spill] sm:$0xff] }
 0x1e9   : > { %v2561_v0 = vsel %vm2560_vm15, %v2559_v34, %v2558_v12  ;;  %v971_v27 = vadd.f32 %v3890_v52, %v3743_v36  ;;  %v4095_v41 = vadd.f32 %v3960_v4, %v3747_v47  ;;  %v1429_v2 = vadd.f32 %v4886_v9, %v4885_v39  ;;  %v4890_v4 = vld [vmem:[#allocation32_spill] sm:$0xff]  ;;  %v4891_v52 = vld [vmem:[#allocation11_spill] sm:$0xff]  ;;  %v1311_v39 = vpop.f32.mrf.mxu2 }
 0x1ea   : > { %v2562_v40 = vrot.slane %v2487_v5, 1  ;;  %v1367_v42 = vperm.slane %v4884_v51, 0  ;;  %v4100_v23 = vadd.f32 %v4887_v44, %v1276_v55  ;;  %v1430_v38 = vadd.f32 %v1366_v13, %v4888_v18 }
 0x1eb   : > { %v1587_v16 = vmul.f32 0.5, %v1427_v3  ;;  %2986 = vtanh.f32 %v1584_v46  ;;  %v1588_v36 = vmul.f32 0.5, %v1428_v37  ;;  %v974_v19 = vadd.f32 %v4891_v52, %v4890_v4  ;;  %v4900_v46 = vld [vmem:[#allocation39_spill] sm:$0xff]  ;;  %v4901_v37 = vld [vmem:[#allocation40_spill] sm:$0xff] }
 0x1ec   : > { %v2564_v17 = vsel %vm2563_vm0, %v2562_v40, %v2561_v0  ;;  %2988 = vtanh.f32 %v1585_v45  ;;  %v1345_v47 = vrot.slane %v4100_v23, 1  ;;  %v4112_v24 = vadd.f32 %v3998_v57, %v4892_v50  ;;  %v4902_v45 = vld [vmem:[#allocation30_spill] sm:$0xff]  ;;  %v4905_v52 = vld [vmem:[#allocation44_spill] sm:$0xff] }
 0x1ed   : > { %v4105_v10 = vadd.f32 %v2564_v17, %v4889_v61  ;;  %v1431_v15 = vadd.f32 %v1367_v42, %v4893_v49  ;;  %2990 = vtanh.f32 %v1586_v62  ;;  %v977_v20 = vadd.f32 %v4895_v58, %v4894_v56  ;;  %v4903_v42 = vld [vmem:[#allocation3_spill] sm:$0xff]  ;;  %v4904_v61 = vld [vmem:[#allocation42_spill] sm:$0xff] }
 0x1ee   : > { %v1589_v26 = vmul.f32 0.5, %v1429_v2  ;;  %v1346_v35 = vrot.slane %v4100_v23, 2  ;;  %v4121_v8 = vadd.f32 %v4035_v28, %v4896_v6  ;;  %v1590_v31 = vmul.f32 0.5, %v1430_v38 }
 0x1ef   : > { %v2619_v53 = vand.u32 2147483647, %v4105_v10  ;;  %2992 = vtanh.f32 %v1587_v16  ;;  %v1376_v57 = vperm.slane %v4100_v23, 0  ;;  %v980_v33 = vadd.f32 %v3980_v54, %v4897_v11 }
 0x1f0   : > { %2994 = vtanh.f32 %v1588_v36  ;;  %v1377_v32 = vperm.slane %v1345_v47, 0  ;;  %v4128_v43 = vadd.f32 %v4057_v30, %v4898_v60  ;;  %v983_v63 = vadd.f32 %v4028_v21, %v4899_v29  ;;  %v1223_v21 = vpop.f32.mrf.mxu3 }
 0x1f1   : > { %v2623_v22 = vsub.f32 0.0, %v2619_v53  ;;  %v2987_v48 = vpop.eup %2986  ;;  %v1591_v28 = vmul.f32 0.5, %v1431_v15  ;;  %v1347_v13 = vrot.slane %v4100_v23, 3  ;;  %2996 = vtanh.f32 %v1589_v26 }
 0x1f2   : > { %v2989_v3 = vpop.eup %2988  ;;  %v1348_v12 = vrot.slane %v4100_v23, 4  ;;  %v1378_v54 = vperm.slane %v1346_v35, 0  ;;  %v4135_v55 = vadd.f32 %v1220_v25, %v4900_v46  ;;  %v986_v30 = vadd.f32 %v4050_v7, %v4901_v37 }
 0x1f3   : > { %v2627_v5 = vmul.f32 1.442695, %v2623_v22  ;;  %v2991_v34 = vpop.eup %2990  ;;  %2998 = vtanh.f32 %v1590_v31  ;;  %v1440_v0 = vadd.f32 %v1376_v57, %v4902_v45  ;;  %v1349_v40 = vrot.slane %v4100_v23, 5 }
 0x1f4   : > { %v1350_v51 = vrot.slane %v4100_v23, 6  ;;  %v1441_v62 = vadd.f32 %v1377_v32, %v4903_v42  ;;  %v1648_v2 = vadd.f32 1.0, %v2987_v48  ;;  %v1351_v25 = vrot.slane %v4100_v23, 7 }
 0x1f5   : > { %3000 = vpow2.f32 %v2627_v5  ;;  %v2993_v9 = vpop.eup %2992  ;;  %v1379_v44 = vperm.slane %v1347_v13, 0  ;;  %v1649_v7 = vadd.f32 1.0, %v2989_v3  ;;  %v1650_v18 = vadd.f32 1.0, %v2991_v34 }
 0x1f6   : > { %3002 = vtanh.f32 %v1591_v28  ;;  %v2995_v17 = vpop.eup %2994  ;;  %v1380_v38 = vperm.slane %v1348_v12, 0  ;;  %v1442_v16 = vadd.f32 %v1378_v54, %v971_v27  ;;  %v4145_v36 = vadd.f32 %v1223_v21, %v4904_v61 }
 0x1f7   : > { %v2615_v47 = vmax.f32 %v4105_v10, 0.0  ;;  %v1600_v4 = vmul.f32 0.5, %v1440_v0  ;;  %v4149_v50 = vadd.f32 %v4905_v52, %v1311_v39  ;;  %v2997_v49 = vpop.eup %2996  ;;  %v1651_v15 = vadd.f32 1.0, %v2993_v9 }
 0x1f8   : > { %v1381_v56 = vperm.slane %v1349_v40, 0  ;;  %v1382_v58 = vperm.slane %v1350_v51, 0  ;;  %v1601_v23 = vmul.f32 0.5, %v1441_v62  ;;  %v1652_v26 = vadd.f32 1.0, %v2995_v17 }
 0x1f9   : > { %v2999_v53 = vpop.eup %2998  ;;  %v4151_v35 = vmul.f32 0.5, %v1648_v2  ;;  %v1383_v6 = vperm.slane %v1351_v25, 0  ;;  %v1443_v27 = vadd.f32 %v1379_v44, %v974_v19  ;;  %v4153_v57 = vmul.f32 0.5, %v1649_v7 }
 0x1fa   : > { %v4155_v11 = vmul.f32 0.5, %v1650_v18  ;;  %v1444_v22 = vadd.f32 %v1380_v38, %v977_v20  ;;  %v1602_v32 = vmul.f32 0.5, %v1442_v16  ;;  %v1653_v28 = vadd.f32 1.0, %v2997_v49 }
 0x1fb   : > { %v3001_v31 = vpop.eup %3000  ;;  %3004 = vtanh.f32 %v1600_v4  ;;  %v4157_v13 = vmul.f32 0.5, %v1651_v15  ;;  %v1445_v3 = vadd.f32 %v1381_v56, %v980_v33  ;;  %v1446_v5 = vadd.f32 %v1382_v58, %v983_v63 }
 0x1fc   : > { %v3003_v48 = vpop.eup %3002  ;;  %v2635_v60 = vadd.f32 1.0, %v3001_v31  ;;  %v2638_v29 = vmul.f32 -0.5, %v3001_v31  ;;  %3006 = vtanh.f32 %v1601_v23  ;;  %v1654_v12 = vadd.f32 1.0, %v2999_v53 }
 0x1fd   : > { %v4159_v19 = vmul.f32 0.5, %v1652_v26  ;;  %v1603_v54 = vmul.f32 0.5, %v1443_v27  ;;  %v1655_v34 = vadd.f32 1.0, %v3003_v48  ;;  %v1447_v46 = vadd.f32 %v1383_v6, %v986_v30  ;;  %v4906_v26 = vld [vmem:[#allocation10_spill] sm:$0xff] }
 0x1fe   : > { %3008 = vlog2.f32 %v2635_v60  ;;  %v1604_v37 = vmul.f32 0.5, %v1444_v22  ;;  %v2639_v20 = vadd.f32 1.0, %v2638_v29  ;;  %v4161_v45 = vmul.f32 0.5, %v1653_v28  ;;  %v4908_v60 = vld [vmem:[#allocation45_spill] sm:$0xff] }
 0x1ff   : > { %3010 = vtanh.f32 %v1602_v32  ;;  %v1459_v0 = vrot.slane %v4149_v50, 1  ;;  %v1460_v21 = vrot.slane %v4149_v50, 2  ;;  %v1605_v40 = vmul.f32 0.5, %v1445_v3  ;;  %v4907_v32 = vld [vmem:[#allocation43_spill] sm:$0xff]  ;;  %v4909_v3 = vld [vmem:[#allocation46_spill] sm:$0xff] }
 0x200   : > { %v1461_v33 = vrot.slane %v4149_v50, 3  ;;  %v1462_v63 = vrot.slane %v4149_v50, 4  ;;  %v1463_v51 = vrot.slane %v4149_v50, 5  ;;  %v2641_v62 = vand.u32 2147483647, %v3001_v31 }
 0x201   : > { %v3005_v42 = vpop.eup %3004  ;;  %3012 = vtanh.f32 %v1603_v54  ;;  %v1464_v30 = vrot.slane %v4149_v50, 6  ;;  %v1465_v39 = vrot.slane %v4149_v50, 7  ;;  %v4170_v2 = vmul.f32 0.5, %v1654_v12  ;;  %v4910_v12 = vld [vmem:[#allocation47_spill] sm:$0xff] }
 0x202   : > { %v3007_v9 = vpop.eup %3006  ;;  %v1606_v25 = vmul.f32 0.5, %v1446_v5  ;;  %3014 = vtanh.f32 %v1604_v37  ;;  %v1488_v44 = vperm.slane %v4149_v50, 0  ;;  %v2640_v7 = vmul.f32 %v3001_v31, %v2639_v20 }
 0x203   : > { %v1607_v18 = vmul.f32 0.5, %v1447_v46  ;;  %v1489_v38 = vperm.slane %v1459_v0, 0  ;;  %v1490_v16 = vperm.slane %v1460_v21, 0  ;;  %v1491_v52 = vperm.slane %v1461_v33, 0  ;;  %v4911_v46 = vld [vmem:[#allocation49_spill] sm:$0xff]  ;;  %v4913_v0 = vld [vmem:[#allocation2_spill] sm:$0xff] }
 0x204   : > { %v3009_v17 = vpop.eup %3008  ;;  %v1492_v49 = vperm.slane %v1462_v63, 0  ;;  %v1493_v15 = vperm.slane %v1463_v51, 0  ;;  %vm2642_vm2 = vcmp.lt.f32.partialorder %v2641_v62, 0.0004427343  ;;  %3016 = vtanh.f32 %v1605_v40  ;;  %v1317_v40 = vpop.f32.mrf.mxu3 }
 0x205   : > { %v3011_v61 = vpop.eup %3010  ;;  %v2637_v4 = vmul.f32 0.6931472, %v3009_v17  ;;  %v1494_v56 = vperm.slane %v1464_v30, 0  ;;  %v1495_v58 = vperm.slane %v1465_v39, 0  ;;  %v1664_v23 = vadd.f32 1.0, %v3005_v42 }
 0x206   : > { %v1665_v53 = vadd.f32 1.0, %v3007_v9  ;;  %v4181_v6 = vadd.f32 %v1488_v44, %v4906_v26  ;;  %v1666_v22 = vadd.f32 1.0, %v3011_v61  ;;  %v4186_v48 = vadd.f32 %v1489_v38, %v4907_v32 }
 0x207   : > { %v2643_v50 = vsel %vm2642_vm2, %v2640_v7, %v2637_v4  ;;  %v3013_v27 = vpop.eup %3012  ;;  %v4189_v29 = vadd.f32 %v1490_v16, %v4908_v60  ;;  %3018 = vtanh.f32 %v1606_v25  ;;  %v4192_v5 = vadd.f32 %v1491_v52, %v4909_v3  ;;  %v3146_v7 = vld [vmem:[%s4786_s10] ss:$0 sm:$0xff] }
 0x208   : > { %v2671_v31 = vadd.f32 %v2643_v50, %v2615_v47  ;;  %v3015_v28 = vpop.eup %3014  ;;  %v4195_v54 = vadd.f32 %v1492_v49, %v4910_v12  ;;  %v4198_v37 = vadd.f32 %v1493_v15, %v4911_v46  ;;  %v4202_v10 = vmul.f32 0.5, %v1655_v34  ;;  %v4912_v47 = vld [vmem:[#allocation51_spill] sm:$0xff] }
 0x209   : > { %3020 = vtanh.f32 %v1607_v18  ;;  %v4205_v20 = vadd.f32 %v1494_v56, %v4912_v47  ;;  %v4208_v21 = vadd.f32 %v1495_v58, %v4913_v0  ;;  %v4210_v33 = vadd.f32 1.0, %v3013_v27 }
 0x20a   : > { %2675 = vst.msk [vmem:[%s4178_s15] sm:$0xff] %vm778_vm1, %v2671_v31  ;;  %v4212_v63 = vmul.f32 0.5, %v1664_v23  ;;  %v4214_v51 = vmul.f32 0.5, %v1665_v53  ;;  %v1744_v42 = vand.u32 2147483647, %v4181_v6  ;;  %v4217_v62 = vpop.eup %3016  ;;  %v4219_v34 = vadd.f32 1.0, %v3015_v28 }
 0x20b   : > { %4914 = vst [vmem:[#allocation5_spill] sm:$0xff] %v4210_v33  ;;  %v4221_v30 = vmul.f32 0.5, %v1666_v22  ;;  %v1745_v39 = vand.u32 2147483647, %v4186_v48  ;;  %v1746_v9 = vand.u32 2147483647, %v4189_v29  ;;  %v4231_v18 = vadd.f32 %v3146_v7, %v1317_v40 }
 0x20c   : > { %4915 = vst [vmem:[#allocation6_spill] sm:$0xff] %v4212_v63  ;;  %v1747_v25 = vand.u32 2147483647, %v4192_v5  ;;  %v1748_v44 = vand.u32 2147483647, %v4195_v54  ;;  %v1776_v61 = vsub.f32 0.0, %v1744_v42 }
 0x20d   : > { %4916 = vst [vmem:[#allocation7_spill] sm:$0xff] %v4214_v51  ;;  %v1749_v17 = vand.u32 2147483647, %v4198_v37  ;;  %v1750_v38 = vand.u32 2147483647, %v4205_v20  ;;  %v1777_v4 = vsub.f32 0.0, %v1745_v39  ;;  %v4235_v52 = vpop.eup %3018 }
 0x20e   : > { %4917 = vst [vmem:[#allocation8_spill] sm:$0xff] %v4219_v34  ;;  %v1751_v16 = vand.u32 2147483647, %v4208_v21  ;;  %v1778_v49 = vsub.f32 0.0, %v1746_v9  ;;  %v1779_v15 = vsub.f32 0.0, %v1747_v25  ;;  %v1780_v56 = vsub.f32 0.0, %v1748_v44 }
 0x20f   : > { %4918 = vst [vmem:[#allocation9_spill] sm:$0xff] %v4221_v30  ;;  %v1781_v58 = vsub.f32 0.0, %v1749_v17  ;;  %v4237_v50 = vpop.eup %3020  ;;  %v1816_v26 = vmul.f32 1.442695, %v1776_v61  ;;  %v1818_v27 = vmul.f32 1.442695, %v1777_v4 }
 0x210   : > { %4919 = vst [vmem:[#allocation48_spill] sm:$0xff] %v4235_v52  ;;  %v1782_v22 = vsub.f32 0.0, %v1750_v38  ;;  %v1820_v32 = vmul.f32 1.442695, %v1778_v49  ;;  %v1822_v60 = vmul.f32 1.442695, %v1779_v15 }
 0x211   : > { %4920 = vst [vmem:[#allocation13_spill] sm:$0xff] %v4237_v50  ;;  %v1783_v3 = vsub.f32 0.0, %v1751_v16  ;;  %3022 = vpow2.f32 %v1816_v26  ;;  %v1824_v12 = vmul.f32 1.442695, %v1780_v56  ;;  %v1826_v47 = vmul.f32 1.442695, %v1781_v58 }
 0x212   : > { %3024 = vpow2.f32 %v1818_v27  ;;  %v1473_v0 = vrot.slane %v4231_v18, 1  ;;  %v1474_v40 = vrot.slane %v4231_v18, 2  ;;  %v1475_v42 = vrot.slane %v4231_v18, 3 }
 0x213   : > { %3026 = vpow2.f32 %v1820_v32  ;;  %v1476_v39 = vrot.slane %v4231_v18, 4  ;;  %v1828_v44 = vmul.f32 1.442695, %v1782_v22  ;;  %v1830_v7 = vmul.f32 1.442695, %v1783_v3 }
 0x214   : > { %3028 = vpow2.f32 %v1822_v60  ;;  %v1477_v38 = vrot.slane %v4231_v18, 5  ;;  %v4255_v49 = vperm.slane %v1473_v0, 0  ;;  %v4257_v56 = vperm.slane %v1474_v40, 0 }
 0x215   : > { %3030 = vpow2.f32 %v1824_v12  ;;  %v4259_v58 = vperm.slane %v1475_v42, 0  ;;  %v4261_v26 = vperm.slane %v1476_v39, 0 }
 0x216   : > { %3032 = vpow2.f32 %v1826_v47  ;;  %v4263_v40 = vperm.slane %v1477_v38, 0 }
 0x217   : > { %v3023_v15 = vpop.eup %3022  ;;  %3034 = vpow2.f32 %v1828_v44 }
 0x218   : > { %v3025_v27 = vpop.eup %3024  ;;  %v1936_v22 = vadd.f32 1.0, %v3023_v15  ;;  %v1939_v32 = vmul.f32 -0.5, %v3023_v15  ;;  %v1942_v60 = vand.u32 2147483647, %v3023_v15  ;;  %3036 = vpow2.f32 %v1830_v7 }
 0x219   : > { %v3027_v3 = vpop.eup %3026  ;;  %v1945_v12 = vadd.f32 1.0, %v3025_v27  ;;  %v1948_v61 = vmul.f32 -0.5, %v3025_v27  ;;  %v1951_v4 = vand.u32 2147483647, %v3025_v27 }
 0x21a   : > { %v3029_v0 = vpop.eup %3028  ;;  %3038 = vlog2.f32 %v1936_v22  ;;  %v1940_v16 = vadd.f32 1.0, %v1939_v32  ;;  %v1954_v47 = vadd.f32 1.0, %v3027_v3  ;;  %vm4265_vm3 = vcmp.lt.f32.partialorder %v1942_v60, 0.0004427343 }
 0x21b   : > { %v3031_v42 = vpop.eup %3030  ;;  %3040 = vlog2.f32 %v1945_v12  ;;  %v1949_v44 = vadd.f32 1.0, %v1948_v61  ;;  %v1957_v17 = vmul.f32 -0.5, %v3027_v3  ;;  %vm4269_vm4 = vcmp.lt.f32.partialorder %v1951_v4, 0.0004427343 }
 0x21c   : > { %3042 = vlog2.f32 %v1954_v47  ;;  %v1960_v7 = vand.u32 2147483647, %v3027_v3  ;;  %v1963_v9 = vadd.f32 1.0, %v3029_v0  ;;  %v3033_v22 = vpop.eup %3032  ;;  %v1941_v32 = vmul.f32 %v3023_v15, %v1940_v16 }
 0x21d   : > { %v1958_v46 = vadd.f32 1.0, %v1957_v17  ;;  %v1966_v38 = vmul.f32 -0.5, %v3029_v0  ;;  %v1969_v28 = vand.u32 2147483647, %v3029_v0  ;;  %v3035_v31 = vpop.eup %3034  ;;  %v1950_v60 = vmul.f32 %v3025_v27, %v1949_v44 }
 0x21e   : > { %3044 = vlog2.f32 %v1963_v9  ;;  %v1972_v53 = vadd.f32 1.0, %v3031_v42  ;;  %v1975_v23 = vmul.f32 -0.5, %v3031_v42  ;;  %v3037_v12 = vpop.eup %3036  ;;  %vm4273_vm5 = vcmp.lt.f32.partialorder %v1960_v7, 0.0004427343 }
 0x21f   : > { %v1959_v61 = vmul.f32 %v3027_v3, %v1958_v46  ;;  %v1967_v30 = vadd.f32 1.0, %v1966_v38  ;;  %v1978_v47 = vand.u32 2147483647, %v3031_v42  ;;  %v1981_v16 = vadd.f32 1.0, %v3033_v22 }
 0x220   : > { %v3039_v51 = vpop.eup %3038  ;;  %3046 = vlog2.f32 %v1972_v53  ;;  %v1976_v63 = vadd.f32 1.0, %v1975_v23  ;;  %v1984_v17 = vmul.f32 -0.5, %v3033_v22  ;;  %vm4277_vm6 = vcmp.lt.f32.partialorder %v1969_v28, 0.0004427343 }
 0x221   : > { %v3041_v15 = vpop.eup %3040  ;;  %v1938_v34 = vmul.f32 0.6931472, %v3039_v51  ;;  %v1968_v50 = vmul.f32 %v3029_v0, %v1967_v30  ;;  %v1987_v27 = vand.u32 2147483647, %v3033_v22  ;;  %vm4281_vm7 = vcmp.lt.f32.partialorder %v1978_v47, 0.0004427343 }
 0x222   : > { %v3043_v46 = vpop.eup %3042  ;;  %v1947_v3 = vmul.f32 0.6931472, %v3041_v15  ;;  %3048 = vlog2.f32 %v1981_v16  ;;  %v1985_v7 = vadd.f32 1.0, %v1984_v17  ;;  %v1977_v38 = vmul.f32 %v3031_v42, %v1976_v63 }
 0x223   : > { %v1944_v23 = vsel %vm4265_vm3, %v1941_v32, %v1938_v34  ;;  %v1956_v53 = vmul.f32 0.6931472, %v3043_v46  ;;  %v1990_v51 = vadd.f32 1.0, %v3035_v31  ;;  %vm4289_vm8 = vcmp.lt.f32.partialorder %v1987_v27, 0.0004427343 }
 0x224   : > { %v3045_v30 = vpop.eup %3044  ;;  %v1953_v28 = vsel %vm4269_vm4, %v1950_v60, %v1947_v3  ;;  %v1993_v47 = vmul.f32 -0.5, %v3035_v31  ;;  %v1996_v15 = vand.u32 2147483647, %v3035_v31  ;;  %v1986_v33 = vmul.f32 %v3033_v22, %v1985_v7 }
 0x225   : > { %v1965_v52 = vmul.f32 0.6931472, %v3045_v30  ;;  %3050 = vlog2.f32 %v1990_v51  ;;  %v1999_v16 = vadd.f32 1.0, %v3037_v12  ;;  %v1962_v34 = vsel %vm4273_vm5, %v1959_v61, %v1956_v53 }
 0x226   : > { %v3047_v17 = vpop.eup %3046  ;;  %v1994_v63 = vadd.f32 1.0, %v1993_v47  ;;  %v2002_v42 = vmul.f32 -0.5, %v3037_v12  ;;  %v2005_v39 = vand.u32 2147483647, %v3037_v12  ;;  %v4933_v60 = vmax.f32 %v4181_v6, 0.0 }
 0x227   : > { %v1971_v25 = vsel %vm4277_vm6, %v1968_v50, %v1965_v52  ;;  %v1974_v32 = vmul.f32 0.6931472, %v3047_v17  ;;  %3052 = vlog2.f32 %v1999_v16  ;;  %vm4299_vm9 = vcmp.lt.f32.partialorder %v1996_v15, 0.0004427343 }
 0x228   : > { %v2160_v27 = vadd.f32 %v1944_v23, %v4933_v60  ;;  %v3049_v46 = vpop.eup %3048  ;;  %v1995_v3 = vmul.f32 %v3035_v31, %v1994_v63  ;;  %v2003_v7 = vadd.f32 1.0, %v2002_v42  ;;  %v4936_v61 = vmax.f32 %v4186_v48, 0.0 }
 0x229   : > { %v1980_v53 = vsel %vm4281_vm7, %v1977_v38, %v1974_v32  ;;  %v1983_v9 = vmul.f32 0.6931472, %v3049_v46  ;;  %v4937_v52 = vmax.f32 %v4189_v29, 0.0  ;;  %v4938_v6 = vmax.f32 %v4192_v5, 0.0 }
 0x22a   : > { %v2161_v4 = vadd.f32 %v1953_v28, %v4936_v61  ;;  %vm4311_vm2 = vcmp.lt.f32.partialorder %v2005_v39, 0.0004427343  ;;  %v4941_v51 = vmax.f32 %v4195_v54, 0.0  ;;  %v2192_v48 = vmul.f32 %v2160_v27, %v4151_v35 }
 0x22b   : > { %v2162_v50 = vadd.f32 %v1962_v34, %v4937_v52  ;;  %v2163_v23 = vadd.f32 %v1971_v25, %v4938_v6  ;;  %v3051_v44 = vpop.eup %3050  ;;  %v1989_v38 = vsel %vm4289_vm8, %v1986_v33, %v1983_v9  ;;  %v2004_v29 = vmul.f32 %v3037_v12, %v2003_v7 }
 0x22c   : > { %v2164_v30 = vadd.f32 %v1980_v53, %v4941_v51  ;;  %v2193_v28 = vmul.f32 %v2161_v4, %v4153_v57  ;;  %v1992_v15 = vmul.f32 0.6931472, %v3051_v44  ;;  %v4942_v16 = vmax.f32 %v4198_v37, 0.0 }
 0x22d   : > { %v2194_v47 = vmul.f32 %v2162_v50, %v4155_v11  ;;  %v2195_v5 = vmul.f32 %v2163_v23, %v4157_v13  ;;  %v2272_v34 = vsel %vm778_vm1, %v2192_v48, 0.0  ;;  %v3053_v35 = vpop.eup %3052  ;;  %v4943_v42 = vmax.f32 %v4205_v20, 0.0 }
 0x22e   : > { %v2165_v17 = vadd.f32 %v1989_v38, %v4942_v16  ;;  %v2196_v54 = vmul.f32 %v2164_v30, %v4159_v19  ;;  %v2273_v63 = vrot.slane %v2272_v34, 4  ;;  %v2279_v57 = vsel %vm778_vm1, %v2193_v28, 0.0 }
 0x22f   : > { %v2286_v0 = vsel %vm778_vm1, %v2194_v47, 0.0  ;;  %v2293_v33 = vsel %vm778_vm1, %v2195_v5, 0.0  ;;  %v1998_v11 = vsel %vm4299_vm9, %v1995_v3, %v1992_v15  ;;  %v2001_v13 = vmul.f32 0.6931472, %v3053_v35 }
 0x230   : > { %v2197_v12 = vmul.f32 %v2165_v17, %v4161_v45  ;;  %v2280_v37 = vrot.slane %v2279_v57, 4  ;;  %v2166_v19 = vadd.f32 %v1998_v11, %v4943_v42  ;;  %v2274_v39 = vadd.f32 %v2273_v63, %v2272_v34 }
 0x231   : > { %v2287_v25 = vrot.slane %v2286_v0, 4  ;;  %v2294_v32 = vrot.slane %v2293_v33, 4  ;;  %v2007_v60 = vsel %vm4311_vm2, %v2004_v29, %v2001_v13  ;;  %v2300_v46 = vsel %vm778_vm1, %v2196_v54, 0.0 }
 0x232   : > { %v2281_v27 = vadd.f32 %v2280_v37, %v2279_v57  ;;  %v2307_v7 = vsel %vm778_vm1, %v2197_v12, 0.0  ;;  %v4944_v3 = vmax.f32 %v4208_v21, 0.0  ;;  %v2198_v45 = vmul.f32 %v2166_v19, %v4170_v2 }
 0x233   : > { %v2275_v61 = vrot.slane %v2274_v39, 2  ;;  %v2288_v4 = vadd.f32 %v2287_v25, %v2286_v0  ;;  %v2295_v53 = vadd.f32 %v2294_v32, %v2293_v33  ;;  %v2301_v9 = vrot.slane %v2300_v46, 4 }
 0x234   : > { %v2167_v22 = vadd.f32 %v2007_v60, %v4944_v3  ;;  %v2282_v20 = vrot.slane %v2281_v27, 2  ;;  %v2308_v52 = vrot.slane %v2307_v7, 4  ;;  %v2314_v31 = vsel %vm778_vm1, %v2198_v45, 0.0 }
 0x235   : > { %v2276_v6 = vadd.f32 %v2275_v61, %v2274_v39  ;;  %v2289_v23 = vrot.slane %v2288_v4, 2  ;;  %v2296_v30 = vrot.slane %v2295_v53, 2  ;;  %v2302_v48 = vadd.f32 %v2301_v9, %v2300_v46 }
 0x236   : > { %v2199_v50 = vmul.f32 %v2167_v22, %v4202_v10  ;;  %v2283_v51 = vadd.f32 %v2282_v20, %v2281_v27  ;;  %v2309_v28 = vadd.f32 %v2308_v52, %v2307_v7  ;;  %v2315_v38 = vrot.slane %v2314_v31, 4 }
 0x237   : > { %v2277_v21 = vrot.slane %v2276_v6, 1  ;;  %v2290_v44 = vadd.f32 %v2289_v23, %v2288_v4  ;;  %v2297_v47 = vadd.f32 %v2296_v30, %v2295_v53  ;;  %v2303_v5 = vrot.slane %v2302_v48, 2 }
 0x238   : > { %v2321_v2 = vsel %vm778_vm1, %v2199_v50, 0.0  ;;  %v2284_v29 = vrot.slane %v2283_v51, 1  ;;  %v2310_v15 = vrot.slane %v2309_v28, 2  ;;  %v2316_v10 = vadd.f32 %v2315_v38, %v2314_v31 }
 0x239   : > { %v2278_v16 = vadd.f32 %v2277_v21, %v2276_v6  ;;  %v2291_v17 = vrot.slane %v2290_v44, 1  ;;  %v2322_v54 = vrot.slane %v2321_v2, 4  ;;  %v2298_v35 = vrot.slane %v2297_v47, 1 }
 0x23a   : > { %v2285_v34 = vadd.f32 %v2284_v29, %v2283_v51  ;;  %v2304_v63 = vadd.f32 %v2303_v5, %v2302_v48  ;;  %v2311_v57 = vadd.f32 %v2310_v15, %v2309_v28  ;;  %v2317_v33 = vrot.slane %v2316_v10, 2 }
 0x23b   : > { %v2292_v0 = vadd.f32 %v2291_v17, %v2290_v44  ;;  %v2323_v11 = vadd.f32 %v2322_v54, %v2321_v2  ;;  %v2452_v13 = vmul.f32 %v4041_v14, %v2278_v16  ;;  %v2299_v12 = vadd.f32 %v2298_v35, %v2297_v47  ;;  %v4947_v47 = vld [vmem:[#allocation31_spill] sm:$0xff] }
 0x23c   : > { %v2305_v37 = vrot.slane %v2304_v63, 1  ;;  %v2312_v42 = vrot.slane %v2311_v57, 1  ;;  %v2453_v19 = vmul.f32 %v4041_v14, %v2285_v34  ;;  %v2318_v39 = vadd.f32 %v2317_v33, %v2316_v10 }
 0x23d   : > { %v2324_v25 = vrot.slane %v2323_v11, 2  ;;  %v2454_v32 = vmul.f32 %v4041_v14, %v2292_v0  ;;  %v4945_v60 = vrot.slane %v4231_v18, 6  ;;  %v2455_v3 = vmul.f32 %v4041_v14, %v2299_v12 }
 0x23e   : > { %v2306_v46 = vadd.f32 %v2305_v37, %v2304_v63  ;;  %v2313_v7 = vadd.f32 %v2312_v42, %v2311_v57  ;;  %v2489_v22 = vadd.f32 %v4046_v59, %v2453_v19  ;;  %v2319_v45 = vrot.slane %v2318_v39, 1 }
 0x23f   : > { %v1510_v27 = vperm.slane %v4945_v60, 0  ;;  %v2325_v61 = vadd.f32 %v2324_v25, %v2323_v11  ;;  %v2488_v4 = vadd.f32 %v4046_v59, %v2452_v13  ;;  %v2490_v20 = vadd.f32 %v4046_v59, %v2454_v32 }
 0x240   : > { %v2456_v53 = vmul.f32 %v4041_v14, %v2306_v46  ;;  %v2457_v9 = vmul.f32 %v4041_v14, %v2313_v7  ;;  %v2491_v52 = vadd.f32 %v4046_v59, %v2455_v3  ;;  %v2565_v50 = vrot.slane %v2489_v22, 7  ;;  %v4950_v46 = vld [vmem:[#allocation48_spill] sm:$0xff]  ;;  %v4951_v3 = vld [vmem:[#allocation13_spill] sm:$0xff] }
 0x241   : > { %v2320_v6 = vadd.f32 %v2319_v45, %v2318_v39  ;;  %v2326_v23 = vrot.slane %v2325_v61, 1  ;;  %v2567_v31 = vrot.slane %v2490_v20, 6  ;;  %v4946_v51 = vrot.slane %v4231_v18, 7  ;;  %v3147_v39 = vld [vmem:[%s3676_s20 + $0x8] sm:$0xff] }
 0x242   : > { %v2492_v48 = vadd.f32 %v4046_v59, %v2456_v53  ;;  %v2493_v28 = vadd.f32 %v4046_v59, %v2457_v9  ;;  %v2566_v21 = vsel %vm2545_vm10, %v2565_v50, %v2488_v4  ;;  %v2569_v44 = vrot.slane %v2491_v52, 5 }
 0x243   : > { %v1511_v30 = vperm.slane %v4946_v51, 0  ;;  %v2327_v38 = vadd.f32 %v2326_v23, %v2325_v61  ;;  %v2458_v2 = vmul.f32 %v4041_v14, %v2320_v6  ;;  %v2568_v29 = vsel %vm2548_vm11, %v2567_v31, %v2566_v21  ;;  %v4952_v23 = vld [vmem:[#allocation8_spill] sm:$0xff] }
 0x244   : > { %v4948_v5 = vperm.slane %v4231_v18, 0  ;;  %v2570_v16 = vsel %vm2551_vm12, %v2569_v44, %v2568_v29  ;;  %v2571_v17 = vrot.slane %v2492_v48, 4  ;;  %v4372_v10 = vadd.f32 %v4255_v49, %v4084_v1  ;;  %v1273_v29 = vpop.f32.mrf.mxu0 }
 0x245   : > { %v4376_v54 = vadd.f32 %v4257_v56, %v4095_v41  ;;  %v2459_v34 = vmul.f32 %v4041_v14, %v2327_v38  ;;  %v2494_v35 = vadd.f32 %v4046_v59, %v2458_v2  ;;  %v2573_v63 = vrot.slane %v2493_v28, 3 }
 0x246   : > { %v4367_v15 = vadd.f32 %v4948_v5, %v4947_v47  ;;  %v4382_v18 = vadd.f32 %v4259_v58, %v4112_v24  ;;  %v2572_v57 = vsel %vm2554_vm13, %v2571_v17, %v2570_v16  ;;  %v4387_v0 = vadd.f32 %v4261_v26, %v4121_v8  ;;  %v4949_v8 = vld [vmem:[#allocation5_spill] sm:$0xff] }
 0x247   : > { %v4391_v1 = vadd.f32 %v4263_v40, %v4128_v43  ;;  %v4394_v41 = vadd.f32 %v1510_v27, %v4135_v55  ;;  %v2495_v14 = vadd.f32 %v4046_v59, %v2459_v34  ;;  %v2574_v49 = vsel %vm2557_vm14, %v2573_v63, %v2572_v57 }
 0x248   : > { %v2575_v56 = vrot.slane %v2494_v35, 2  ;;  %v4399_v24 = vadd.f32 %v1511_v30, %v4145_v36  ;;  %v1669_v58 = vadd.f32 1.0, %v4217_v62  ;;  %v4403_v26 = vmul.f32 0.5, %v4949_v8 }
 0x249   : > { %v1760_v43 = vand.u32 2147483647, %v4367_v15  ;;  %v1761_v40 = vand.u32 2147483647, %v4372_v10  ;;  %v2577_v33 = vrot.slane %v2495_v14, 1  ;;  %v1670_v7 = vadd.f32 1.0, %v4950_v46 }
 0x24a   : > { %v2576_v55 = vsel %vm2560_vm15, %v2575_v56, %v2574_v49  ;;  %v1762_v59 = vand.u32 2147483647, %v4376_v54  ;;  %v1763_v11 = vand.u32 2147483647, %v4382_v18  ;;  %v1764_v36 = vand.u32 2147483647, %v4387_v0 }
 0x24b   : > { %v1765_v13 = vand.u32 2147483647, %v4391_v1  ;;  %v1766_v62 = vand.u32 2147483647, %v4394_v41  ;;  %v2578_v12 = vsel %vm2563_vm0, %v2577_v33, %v2576_v55  ;;  %v1767_v37 = vand.u32 2147483647, %v4399_v24 }
 0x24c   : > { %v1792_v42 = vsub.f32 0.0, %v1760_v43  ;;  %v1793_v19 = vsub.f32 0.0, %v1761_v40  ;;  %v4416_v25 = vadd.f32 %v3147_v39, %v2578_v12  ;;  %v1794_v32 = vsub.f32 0.0, %v1762_v59  ;;  %v3148_v49 = vld [vmem:[%s4785_s9] ss:$0 sm:$0xff] }
 0x24d   : > { %v1795_v60 = vsub.f32 0.0, %v1763_v11  ;;  %v1796_v27 = vsub.f32 0.0, %v1764_v36  ;;  %v1671_v22 = vadd.f32 1.0, %v4951_v3  ;;  %v1797_v45 = vsub.f32 0.0, %v1765_v13 }
 0x24e   : > { %v1848_v61 = vmul.f32 1.442695, %v1792_v42  ;;  %v2620_v4 = vand.u32 2147483647, %v4416_v25  ;;  %v1798_v20 = vsub.f32 0.0, %v1766_v62  ;;  %v1799_v53 = vsub.f32 0.0, %v1767_v37 }
 0x24f   : > { %v1850_v9 = vmul.f32 1.442695, %v1793_v19  ;;  %v1852_v52 = vmul.f32 1.442695, %v1794_v32  ;;  %v1854_v50 = vmul.f32 1.442695, %v1795_v60  ;;  %v4441_v56 = vadd.f32 %v3148_v49, %v1273_v29 }
 0x250   : > { %3054 = vpow2.f32 %v1848_v61  ;;  %v1856_v6 = vmul.f32 1.442695, %v1796_v27  ;;  %v4422_v31 = vmul.f32 0.5, %v4952_v23  ;;  %v4424_v51 = vmul.f32 0.5, %v1669_v58 }
 0x251   : > { %v2624_v30 = vsub.f32 0.0, %v2620_v4  ;;  %3056 = vpow2.f32 %v1850_v9  ;;  %v4426_v48 = vmul.f32 0.5, %v1670_v7  ;;  %v4428_v28 = vmul.f32 0.5, %v1671_v22 }
 0x252   : > { %3058 = vpow2.f32 %v1852_v52  ;;  %v1858_v21 = vmul.f32 1.442695, %v1797_v45  ;;  %v1728_v38 = vmax.f32 %v4367_v15, 0.0  ;;  %v1860_v2 = vmul.f32 1.442695, %v1798_v20 }
 0x253   : > { %v2629_v44 = vmul.f32 1.442695, %v2624_v30  ;;  %3060 = vpow2.f32 %v1854_v50  ;;  %v1729_v47 = vmax.f32 %v4372_v10, 0.0  ;;  %v1730_v5 = vmax.f32 %v4376_v54, 0.0 }
 0x254   : > { %3062 = vpow2.f32 %v1856_v6  ;;  %v1862_v16 = vmul.f32 1.442695, %v1799_v53  ;;  %v1731_v17 = vmax.f32 %v4382_v18, 0.0  ;;  %v1732_v34 = vmax.f32 %v4387_v0, 0.0 }
 0x255   : > { %3064 = vpow2.f32 %v2629_v44  ;;  %v1733_v35 = vmax.f32 %v4391_v1, 0.0  ;;  %v1734_v57 = vmax.f32 %v4394_v41, 0.0  ;;  %v1735_v14 = vmax.f32 %v4399_v24, 0.0 }
 0x256   : > { %v3055_v63 = vpop.eup %3054  ;;  %3066 = vpow2.f32 %v1858_v21  ;;  %v2616_v13 = vmax.f32 %v4416_v25, 0.0 }
 0x257   : > { %v3057_v58 = vpop.eup %3056  ;;  %3068 = vpow2.f32 %v1860_v2  ;;  %v2080_v8 = vadd.f32 1.0, %v3055_v63  ;;  %v2083_v43 = vmul.f32 -0.5, %v3055_v63  ;;  %v2086_v40 = vand.u32 2147483647, %v3055_v63 }
 0x258   : > { %v3059_v55 = vpop.eup %3058  ;;  %3070 = vpow2.f32 %v1862_v16  ;;  %v2089_v33 = vadd.f32 1.0, %v3057_v58  ;;  %v2092_v59 = vmul.f32 -0.5, %v3057_v58  ;;  %v2095_v11 = vand.u32 2147483647, %v3057_v58 }
 0x259   : > { %v3061_v36 = vpop.eup %3060  ;;  %3072 = vlog2.f32 %v2080_v8  ;;  %v2084_v62 = vadd.f32 1.0, %v2083_v43  ;;  %v2098_v12 = vadd.f32 1.0, %v3059_v55  ;;  %vm4444_vm3 = vcmp.lt.f32.partialorder %v2086_v40, 0.0004427343 }
 0x25a   : > { %v3063_v37 = vpop.eup %3062  ;;  %3074 = vlog2.f32 %v2089_v33  ;;  %v2093_v19 = vadd.f32 1.0, %v2092_v59  ;;  %v2101_v39 = vmul.f32 -0.5, %v3059_v55  ;;  %vm4448_vm4 = vcmp.lt.f32.partialorder %v2095_v11, 0.0004427343 }
 0x25b   : > { %v3065_v32 = vpop.eup %3064  ;;  %3076 = vlog2.f32 %v2098_v12  ;;  %v2104_v27 = vand.u32 2147483647, %v3059_v55  ;;  %v2107_v46 = vadd.f32 1.0, %v3061_v36  ;;  %v2085_v61 = vmul.f32 %v3055_v63, %v2084_v62 }
 0x25c   : > { %v3067_v7 = vpop.eup %3066  ;;  %v2644_v3 = vadd.f32 1.0, %v3065_v32  ;;  %v2647_v22 = vmul.f32 -0.5, %v3065_v32  ;;  %v2650_v45 = vand.u32 2147483647, %v3065_v32  ;;  %v4454_v20 = vmul.f32 %v3057_v58, %v2093_v19 }
 0x25d   : > { %v4452_v4 = vpop.eup %3068  ;;  %v2102_v53 = vadd.f32 1.0, %v2101_v39  ;;  %3078 = vlog2.f32 %v2107_v46  ;;  %v2110_v9 = vmul.f32 -0.5, %v3061_v36  ;;  %vm4458_vm5 = vcmp.lt.f32.partialorder %v2104_v27, 0.0004427343 }
 0x25e   : > { %v4456_v52 = vpop.eup %3070  ;;  %3080 = vlog2.f32 %v2644_v3  ;;  %v2648_v50 = vadd.f32 1.0, %v2647_v22  ;;  %v2113_v23 = vand.u32 2147483647, %v3061_v36  ;;  %vm4462_vm6 = vcmp.lt.f32.partialorder %v2650_v45, 0.0004427343 }
 0x25f   : > { %v3073_v30 = vpop.eup %3072  ;;  %v2111_v44 = vadd.f32 1.0, %v2110_v9  ;;  %v2116_v2 = vadd.f32 1.0, %v3063_v37  ;;  %v2119_v29 = vmul.f32 -0.5, %v3063_v37  ;;  %v2103_v58 = vmul.f32 %v3059_v55, %v2102_v53 }
 0x260   : > { %v3075_v16 = vpop.eup %3074  ;;  %v2649_v63 = vmul.f32 %v3065_v32, %v2648_v50  ;;  %v2082_v49 = vmul.f32 0.6931472, %v3073_v30  ;;  %v2122_v8 = vand.u32 2147483647, %v3063_v37  ;;  %vm4466_vm7 = vcmp.lt.f32.partialorder %v2113_v23, 0.0004427343 }
 0x261   : > { %v3077_v43 = vpop.eup %3076  ;;  %v2091_v40 = vmul.f32 0.6931472, %v3075_v16  ;;  %3082 = vlog2.f32 %v2116_v2  ;;  %v2120_v59 = vadd.f32 1.0, %v2119_v29  ;;  %v2112_v12 = vmul.f32 %v3061_v36, %v2111_v44 }
 0x262   : > { %v2088_v11 = vsel %vm4444_vm3, %v2085_v61, %v2082_v49  ;;  %v2100_v62 = vmul.f32 0.6931472, %v3077_v43  ;;  %v2125_v19 = vadd.f32 1.0, %v3067_v7  ;;  %vm4475_vm8 = vcmp.lt.f32.partialorder %v2122_v8, 0.0004427343 }
 0x263   : > { %v3079_v39 = vpop.eup %3078  ;;  %v2097_v55 = vsel %vm4448_vm4, %v4454_v20, %v2091_v40  ;;  %v2128_v27 = vmul.f32 -0.5, %v3067_v7  ;;  %v2131_v46 = vand.u32 2147483647, %v3067_v7  ;;  %v2121_v45 = vmul.f32 %v3063_v37, %v2120_v59 }
 0x264   : > { %v3081_v3 = vpop.eup %3080  ;;  %v2109_v22 = vmul.f32 0.6931472, %v3079_v39  ;;  %3084 = vlog2.f32 %v2125_v19  ;;  %v2134_v42 = vadd.f32 1.0, %v4452_v4  ;;  %v2106_v36 = vsel %vm4458_vm5, %v2103_v58, %v2100_v62 }
 0x265   : > { %v2646_v61 = vmul.f32 0.6931472, %v3081_v3  ;;  %v2129_v53 = vadd.f32 1.0, %v2128_v27  ;;  %v2137_v60 = vmul.f32 -0.5, %v4452_v4  ;;  %vm4483_vm9 = vcmp.lt.f32.partialorder %v2131_v46, 0.0004427343 }
 0x266   : > { %3086 = vlog2.f32 %v2134_v42  ;;  %v2140_v9 = vand.u32 2147483647, %v4452_v4  ;;  %v2143_v37 = vadd.f32 1.0, %v4456_v52  ;;  %v2115_v6 = vsel %vm4466_vm7, %v2112_v12, %v2109_v22  ;;  %v4970_v12 = vld [vmem:[#allocation7_spill] sm:$0xff] }
 0x267   : > { %v3083_v50 = vpop.eup %3082  ;;  %v2652_v23 = vsel %vm4462_vm6, %v2649_v63, %v2646_v61  ;;  %v2138_v30 = vadd.f32 1.0, %v2137_v60  ;;  %v2146_v44 = vmul.f32 -0.5, %v4456_v52  ;;  %v2130_v16 = vmul.f32 %v3067_v7, %v2129_v53 }
 0x268   : > { %v2672_v2 = vadd.f32 %v2652_v23, %v2616_v13  ;;  %v2118_v29 = vmul.f32 0.6931472, %v3083_v50  ;;  %3088 = vlog2.f32 %v2143_v37  ;;  %vm4496_vm2 = vcmp.lt.f32.partialorder %v2140_v9, 0.0004427343 }
 0x269   : > { %v2147_v58 = vadd.f32 1.0, %v2146_v44  ;;  %v2149_v21 = vand.u32 2147483647, %v4456_v52  ;;  %v2176_v63 = vadd.f32 %v2088_v11, %v1728_v38  ;;  %v2177_v13 = vadd.f32 %v2097_v55, %v1729_v47  ;;  %v4969_v11 = vld [vmem:[#allocation6_spill] sm:$0xff]  ;;  %v4971_v47 = vld [vmem:[#allocation9_spill] sm:$0xff] }
 0x26a   : > { %v3085_v8 = vpop.eup %3084  ;;  %2676 = vst.msk [vmem:[%s4178_s15 + $0x8] sm:$0xff] %vm778_vm1, %v2672_v2  ;;  %v2124_v25 = vsel %vm4475_vm8, %v2121_v45, %v2118_v29  ;;  %v2178_v7 = vadd.f32 %v2106_v36, %v1730_v5  ;;  %v2179_v43 = vadd.f32 %v2115_v6, %v1731_v17  ;;  %v2139_v33 = vmul.f32 %v4452_v4, %v2138_v30 }
 0x26b   : > { %v2127_v40 = vmul.f32 0.6931472, %v3085_v8  ;;  %v2148_v15 = vmul.f32 %v4456_v52, %v2147_v58  ;;  %v2180_v38 = vadd.f32 %v2124_v25, %v1732_v34  ;;  %v2208_v62 = vmul.f32 %v2176_v63, %v4969_v11 }
 0x26c   : > { %v3087_v59 = vpop.eup %3086  ;;  %v2209_v10 = vmul.f32 %v2177_v13, %v4970_v12  ;;  %v2210_v19 = vmul.f32 %v2178_v7, %v4971_v47  ;;  %v2211_v54 = vmul.f32 %v2179_v43, %v4403_v26  ;;  %vm4523_vm3 = vcmp.lt.f32.partialorder %v2149_v21, 0.0004427343 }
 0x26d   : > { %v2133_v18 = vsel %vm4483_vm9, %v2130_v16, %v2127_v40  ;;  %v2136_v5 = vmul.f32 0.6931472, %v3087_v59  ;;  %v2212_v0 = vmul.f32 %v2180_v38, %v4422_v31  ;;  %v2384_v52 = vsel %vm778_vm1, %v2208_v62, 0.0 }
 0x26e   : > { %v3089_v34 = vpop.eup %3088  ;;  %v2181_v4 = vadd.f32 %v2133_v18, %v1733_v35  ;;  %v2391_v39 = vsel %vm778_vm1, %v2209_v10, 0.0  ;;  %v2398_v26 = vsel %vm778_vm1, %v2210_v19, 0.0  ;;  %v2385_v27 = vrot.slane %v2384_v52, 4  ;;  %v4552_v10 = vld [vmem:[%s4787_s11] ss:$0 sm:$0xff] }
 0x26f   : > { %v2142_v55 = vsel %vm4496_vm2, %v2139_v33, %v2136_v5  ;;  %v2145_v32 = vmul.f32 0.6931472, %v3089_v34  ;;  %v2392_v46 = vrot.slane %v2391_v39, 4  ;;  %v2399_v22 = vrot.slane %v2398_v26, 4 }
 0x270   : > { %v2182_v3 = vadd.f32 %v2142_v55, %v1734_v57  ;;  %v2213_v31 = vmul.f32 %v2181_v4, %v4424_v51  ;;  %v2405_v1 = vsel %vm778_vm1, %v2211_v54, 0.0  ;;  %v2386_v45 = vadd.f32 %v2385_v27, %v2384_v52  ;;  %v4561_v4 = vld [vmem:[%s4788_s12] ss:$0 sm:$0xff] }
 0x271   : > { %v2151_v35 = vsel %vm4523_vm3, %v2148_v15, %v2145_v32  ;;  %v2393_v42 = vadd.f32 %v2392_v46, %v2391_v39  ;;  %v2406_v61 = vrot.slane %v2405_v1, 4  ;;  %v2400_v60 = vadd.f32 %v2399_v22, %v2398_v26 }
 0x272   : > { %v2183_v36 = vadd.f32 %v2151_v35, %v1735_v14  ;;  %v2214_v53 = vmul.f32 %v2182_v3, %v4426_v48  ;;  %v2412_v41 = vsel %vm778_vm1, %v2212_v0, 0.0  ;;  %v2387_v57 = vrot.slane %v2386_v45, 2 }
 0x273   : > { %v2394_v20 = vrot.slane %v2393_v42, 2  ;;  %v2407_v51 = vadd.f32 %v2406_v61, %v2405_v1  ;;  %v2413_v9 = vrot.slane %v2412_v41, 4  ;;  %v2401_v50 = vrot.slane %v2400_v60, 2 }
 0x274   : > { %v2215_v37 = vmul.f32 %v2183_v36, %v4428_v28  ;;  %v2419_v23 = vsel %vm778_vm1, %v2213_v31, 0.0  ;;  %v2426_v6 = vsel %vm778_vm1, %v2214_v53, 0.0  ;;  %v2388_v30 = vadd.f32 %v2387_v57, %v2386_v45 }
 0x275   : > { %v2395_v44 = vadd.f32 %v2394_v20, %v2393_v42  ;;  %v2408_v24 = vrot.slane %v2407_v51, 2  ;;  %v2414_v14 = vadd.f32 %v2413_v9, %v2412_v41  ;;  %v2402_v2 = vadd.f32 %v2401_v50, %v2400_v60 }
 0x276   : > { %v2420_v48 = vrot.slane %v2419_v23, 4  ;;  %v2427_v29 = vrot.slane %v2426_v6, 4  ;;  %v2433_v16 = vsel %vm778_vm1, %v2215_v37, 0.0  ;;  %v2389_v49 = vrot.slane %v2388_v30, 1 }
 0x277   : > { %v2396_v58 = vrot.slane %v2395_v44, 1  ;;  %v2409_v21 = vadd.f32 %v2408_v24, %v2407_v51  ;;  %v2415_v63 = vrot.slane %v2414_v14, 2  ;;  %v2403_v8 = vrot.slane %v2402_v2, 1 }
 0x278   : > { %v2421_v28 = vadd.f32 %v2420_v48, %v2419_v23  ;;  %v2428_v25 = vadd.f32 %v2427_v29, %v2426_v6  ;;  %v2434_v13 = vrot.slane %v2433_v16, 4  ;;  %v2390_v7 = vadd.f32 %v2389_v49, %v2388_v30 }
 0x279   : > { %v2397_v43 = vadd.f32 %v2396_v58, %v2395_v44  ;;  %v2410_v40 = vrot.slane %v2409_v21, 1  ;;  %v2416_v33 = vadd.f32 %v2415_v63, %v2414_v14  ;;  %v2404_v15 = vadd.f32 %v2403_v8, %v2402_v2  ;;  %v4974_v58 = vld [vmem:[#allocation14_spill] sm:$0xff]  ;;  %v1314_v63 = vpop.f32.mrf.mxu2 }
 0x27a   : > { %v2422_v38 = vrot.slane %v2421_v28, 2  ;;  %v2429_v59 = vrot.slane %v2428_v25, 2  ;;  %v2435_v11 = vadd.f32 %v2434_v13, %v2433_v16  ;;  %v2468_v47 = vmul.f32 %v4552_v10, %v2390_v7 }
 0x27b   : > { %v2411_v62 = vadd.f32 %v2410_v40, %v2409_v21  ;;  %v2417_v12 = vrot.slane %v2416_v33, 1  ;;  %v2469_v19 = vmul.f32 %v4552_v10, %v2397_v43  ;;  %v2470_v17 = vmul.f32 %v4552_v10, %v2404_v15 }
 0x27c   : > { %v2423_v54 = vadd.f32 %v2422_v38, %v2421_v28  ;;  %v2430_v18 = vadd.f32 %v2429_v59, %v2428_v25  ;;  %v2436_v5 = vrot.slane %v2435_v11, 2  ;;  %v1338_v39 = vrot.slane %v4441_v56, 1  ;;  %v4975_v38 = vld [vmem:[#allocation16_spill] sm:$0xff] }
 0x27d   : > { %v2418_v0 = vadd.f32 %v2417_v12, %v2416_v33  ;;  %v2471_v34 = vmul.f32 %v4552_v10, %v2411_v62  ;;  %v2505_v52 = vadd.f32 %v4561_v4, %v2469_v19  ;;  %v2506_v27 = vadd.f32 %v4561_v4, %v2470_v17  ;;  %v3151_v12 = vld [vmem:[%s4786_s10] ss:$0 sm:$0xff]  ;;  %v4977_v17 = vld [vmem:[#allocation20_spill] sm:$0xff] }
 0x27e   : > { %v2424_v26 = vrot.slane %v2423_v54, 1  ;;  %v2431_v55 = vrot.slane %v2430_v18, 1  ;;  %v2437_v32 = vadd.f32 %v2436_v5, %v2435_v11  ;;  %v2504_v3 = vadd.f32 %v4561_v4, %v2468_v47  ;;  %v4976_v11 = vld [vmem:[#allocation18_spill] sm:$0xff] }
 0x27f   : > { %v2472_v46 = vmul.f32 %v4552_v10, %v2418_v0  ;;  %v2507_v31 = vadd.f32 %v4561_v4, %v2471_v34  ;;  %v2593_v22 = vrot.slane %v2505_v52, 7  ;;  %v2595_v42 = vrot.slane %v2506_v27, 6  ;;  %v4978_v0 = vld [vmem:[#allocation22_spill] sm:$0xff] }
 0x280   : > { %v2425_v1 = vadd.f32 %v2424_v26, %v2423_v54  ;;  %v2432_v35 = vadd.f32 %v2431_v55, %v2430_v18  ;;  %v2438_v45 = vrot.slane %v2437_v32, 1  ;;  %v1339_v60 = vrot.slane %v4441_v56, 2 }
 0x281   : > { %v2508_v61 = vadd.f32 %v4561_v4, %v2472_v46  ;;  %v2594_v36 = vsel %vm2545_vm10, %v2593_v22, %v2504_v3  ;;  %v2597_v53 = vrot.slane %v2507_v31, 5  ;;  %v1368_v50 = vperm.slane %v4441_v56, 0  ;;  %v4979_v46 = vld [vmem:[#allocation24_spill] sm:$0xff]  ;;  %v4980_v31 = vld [vmem:[#allocation26_spill] sm:$0xff] }
 0x282   : > { %v2439_v41 = vadd.f32 %v2438_v45, %v2437_v32  ;;  %v2473_v57 = vmul.f32 %v4552_v10, %v2425_v1  ;;  %v2474_v20 = vmul.f32 %v4552_v10, %v2432_v35  ;;  %v2596_v51 = vsel %vm2548_vm11, %v2595_v42, %v2594_v36  ;;  %v4981_v36 = vld [vmem:[#allocation28_spill] sm:$0xff] }
 0x283   : > { %v2598_v9 = vsel %vm2551_vm12, %v2597_v53, %v2596_v51  ;;  %v2599_v37 = vrot.slane %v2508_v61, 4  ;;  %v1340_v24 = vrot.slane %v4441_v56, 3  ;;  %v1341_v14 = vrot.slane %v4441_v56, 4 }
 0x284   : > { %v2475_v23 = vmul.f32 %v4552_v10, %v2439_v41  ;;  %v2509_v6 = vadd.f32 %v4561_v4, %v2473_v57  ;;  %v2510_v30 = vadd.f32 %v4561_v4, %v2474_v20  ;;  %v1369_v29 = vperm.slane %v1338_v39, 0 }
 0x285   : > { %v2600_v44 = vsel %vm2554_vm13, %v2599_v37, %v2598_v9  ;;  %v1370_v16 = vperm.slane %v1339_v60, 0  ;;  %v1432_v21 = vadd.f32 %v1368_v50, %v4974_v58  ;;  %v1342_v25 = vrot.slane %v4441_v56, 5 }
 0x286   : > { %v2511_v2 = vadd.f32 %v4561_v4, %v2475_v23  ;;  %v2601_v48 = vrot.slane %v2509_v6, 3  ;;  %v2603_v49 = vrot.slane %v2510_v30, 2  ;;  %v1343_v13 = vrot.slane %v4441_v56, 6 }
 0x287   : > { %v1344_v43 = vrot.slane %v4441_v56, 7  ;;  %v1371_v40 = vperm.slane %v1340_v24, 0  ;;  %v1372_v33 = vperm.slane %v1341_v14, 0  ;;  %v1433_v59 = vadd.f32 %v1369_v29, %v4975_v38  ;;  %v4984_v29 = vld [vmem:[#allocation19_spill] sm:$0xff] }
 0x288   : > { %v2602_v8 = vsel %vm2557_vm14, %v2601_v48, %v2600_v44  ;;  %v2605_v28 = vrot.slane %v2511_v2, 1  ;;  %v1434_v62 = vadd.f32 %v1370_v16, %v4976_v11  ;;  %v1315_v47 = vadd.f32 %v3151_v12, %v1314_v63  ;;  %v4982_v44 = vld [vmem:[#allocation15_spill] sm:$0xff]  ;;  %v4983_v2 = vld [vmem:[#allocation17_spill] sm:$0xff] }
 0x289   : > { %v2604_v7 = vsel %vm2560_vm15, %v2603_v49, %v2602_v8  ;;  %v1592_v19 = vmul.f32 0.5, %v1432_v21  ;;  %v1373_v54 = vperm.slane %v1342_v25, 0  ;;  %v1374_v18 = vperm.slane %v1343_v13, 0  ;;  %v4985_v49 = vld [vmem:[#allocation21_spill] sm:$0xff]  ;;  %v4986_v21 = vld [vmem:[#allocation23_spill] sm:$0xff] }
 0x28a   : > { %v4591_v15 = vsel %vm2563_vm0, %v2605_v28, %v2604_v7  ;;  %v1375_v5 = vperm.slane %v1344_v43, 0  ;;  %v1435_v56 = vadd.f32 %v1371_v40, %v4977_v17  ;;  %v1436_v34 = vadd.f32 %v1372_v33, %v4978_v0  ;;  %v4987_v25 = vld [vmem:[#allocation25_spill] sm:$0xff]  ;;  %v4988_v43 = vld [vmem:[#allocation27_spill] sm:$0xff] }
 0x28b   : > { %v1593_v52 = vmul.f32 0.5, %v1433_v59  ;;  %v1594_v39 = vmul.f32 0.5, %v1434_v62  ;;  %v1466_v26 = vrot.slane %v1315_v47, 1  ;;  %3090 = vtanh.f32 %v1592_v19  ;;  %v4989_v33 = vld [vmem:[#allocation29_spill] sm:$0xff] }
 0x28c   : > { %v1467_v55 = vrot.slane %v1315_v47, 2  ;;  %v1468_v32 = vrot.slane %v1315_v47, 3  ;;  %v1469_v27 = vrot.slane %v1315_v47, 4  ;;  %v1437_v3 = vadd.f32 %v1373_v54, %v4979_v46 }
 0x28d   : > { %v1438_v22 = vadd.f32 %v1374_v18, %v4980_v31  ;;  %v1470_v1 = vrot.slane %v1315_v47, 5  ;;  %v1595_v35 = vmul.f32 0.5, %v1435_v56  ;;  %v1471_v45 = vrot.slane %v1315_v47, 6 }
 0x28e   : > { %v1472_v42 = vrot.slane %v1315_v47, 7  ;;  %v1496_v61 = vperm.slane %v1315_v47, 0  ;;  %v1439_v53 = vadd.f32 %v1375_v5, %v4981_v36  ;;  %v1596_v60 = vmul.f32 0.5, %v1436_v34 }
 0x28f   : > { %3092 = vtanh.f32 %v1593_v52  ;;  %v1497_v41 = vperm.slane %v1466_v26, 0  ;;  %v1498_v57 = vperm.slane %v1467_v55, 0  ;;  %v1499_v20 = vperm.slane %v1468_v32, 0 }
 0x290   : > { %3094 = vtanh.f32 %v1594_v39  ;;  %v1500_v51 = vperm.slane %v1469_v27, 0  ;;  %v1597_v9 = vmul.f32 0.5, %v1437_v3  ;;  %v1598_v37 = vmul.f32 0.5, %v1438_v22 }
 0x291   : > { %v1501_v50 = vperm.slane %v1470_v1, 0  ;;  %v3091_v23 = vpop.eup %3090  ;;  %3096 = vtanh.f32 %v1595_v35  ;;  %v1502_v6 = vperm.slane %v1471_v45, 0  ;;  %v1503_v30 = vperm.slane %v1472_v42, 0  ;;  %v3152_v42 = vld [vmem:[%s3676_s20 + $0x18] sm:$0xff] }
 0x292   : > { %v4604_v24 = vadd.f32 %v1496_v61, %v4982_v44  ;;  %v1599_v14 = vmul.f32 0.5, %v1439_v53  ;;  %3098 = vtanh.f32 %v1596_v60  ;;  %v4607_v48 = vadd.f32 %v1497_v41, %v4983_v2 }
 0x293   : > { %v4610_v16 = vadd.f32 %v1498_v57, %v4984_v29  ;;  %v4613_v58 = vadd.f32 %v1499_v20, %v4985_v49  ;;  %v4616_v63 = vadd.f32 %v1500_v51, %v4986_v21  ;;  %3100 = vtanh.f32 %v1597_v9 }
 0x294   : > { %v1656_v28 = vadd.f32 1.0, %v3091_v23  ;;  %v4619_v13 = vadd.f32 %v1501_v50, %v4987_v25  ;;  %3102 = vtanh.f32 %v1598_v37  ;;  %v4622_v40 = vadd.f32 %v1502_v6, %v4988_v43 }
 0x295   : > { %v3093_v8 = vpop.eup %3092  ;;  %v4625_v38 = vadd.f32 %v1503_v30, %v4989_v33  ;;  %v1752_v59 = vand.u32 2147483647, %v4604_v24  ;;  %3104 = vtanh.f32 %v1599_v14  ;;  %v1753_v11 = vand.u32 2147483647, %v4607_v48 }
 0x296   : > { %v3095_v7 = vpop.eup %3094  ;;  %v1754_v12 = vand.u32 2147483647, %v4610_v16  ;;  %v1755_v47 = vand.u32 2147483647, %v4613_v58  ;;  %v1756_v19 = vand.u32 2147483647, %v4616_v63  ;;  %v4639_v61 = vadd.f32 %v3152_v42, %v4591_v15 }
 0x297   : > { %v3097_v62 = vpop.eup %3096  ;;  %v1657_v18 = vadd.f32 1.0, %v3093_v8  ;;  %v1658_v5 = vadd.f32 1.0, %v3095_v7  ;;  %v4632_v17 = vmul.f32 0.5, %v1656_v28  ;;  %v1757_v56 = vand.u32 2147483647, %v4619_v13 }
 0x298   : > { %v3099_v54 = vpop.eup %3098  ;;  %v1758_v0 = vand.u32 2147483647, %v4622_v40  ;;  %v1759_v34 = vand.u32 2147483647, %v4625_v38  ;;  %v1784_v52 = vsub.f32 0.0, %v1752_v59  ;;  %v1785_v39 = vsub.f32 0.0, %v1753_v11 }
 0x299   : > { %v3101_v26 = vpop.eup %3100  ;;  %v1659_v55 = vadd.f32 1.0, %v3097_v62  ;;  %v1786_v32 = vsub.f32 0.0, %v1754_v12  ;;  %v1787_v27 = vsub.f32 0.0, %v1755_v47  ;;  %v1788_v46 = vsub.f32 0.0, %v1756_v19 }
 0x29a   : > { %v3103_v3 = vpop.eup %3102  ;;  %v1660_v31 = vadd.f32 1.0, %v3099_v54  ;;  %v1789_v22 = vsub.f32 0.0, %v1757_v56  ;;  %v1790_v1 = vsub.f32 0.0, %v1758_v0  ;;  %v1832_v35 = vmul.f32 1.442695, %v1784_v52 }
 0x29b   : > { %v3105_v45 = vpop.eup %3104  ;;  %v1834_v36 = vmul.f32 1.442695, %v1785_v39  ;;  %v1836_v53 = vmul.f32 1.442695, %v1786_v32  ;;  %v1838_v60 = vmul.f32 1.442695, %v1787_v27 }
 0x29c   : > { %v1661_v41 = vadd.f32 1.0, %v3101_v26  ;;  %v1791_v57 = vsub.f32 0.0, %v1759_v34  ;;  %3106 = vpow2.f32 %v1832_v35  ;;  %v1840_v20 = vmul.f32 1.442695, %v1788_v46 }
 0x29d   : > { %v1662_v51 = vadd.f32 1.0, %v3103_v3  ;;  %v4641_v9 = vmul.f32 0.5, %v1657_v18  ;;  %v4643_v37 = vmul.f32 0.5, %v1658_v5  ;;  %3108 = vpow2.f32 %v1834_v36 }
 0x29e   : > { %v1663_v50 = vadd.f32 1.0, %v3105_v45  ;;  %v4645_v23 = vmul.f32 0.5, %v1659_v55  ;;  %3110 = vpow2.f32 %v1836_v53  ;;  %v1842_v6 = vmul.f32 1.442695, %v1789_v22 }
 0x29f   : > { %v4647_v15 = vmul.f32 0.5, %v1660_v31  ;;  %v1720_v30 = vmax.f32 %v4604_v24, 0.0  ;;  %3112 = vpow2.f32 %v1838_v60  ;;  %v1844_v44 = vmul.f32 1.442695, %v1790_v1 }
 0x2a0   : > { %v4650_v14 = vmul.f32 0.5, %v1661_v41  ;;  %v1721_v2 = vmax.f32 %v4607_v48, 0.0  ;;  %3114 = vpow2.f32 %v1840_v20  ;;  %v1846_v29 = vmul.f32 1.442695, %v1791_v57 }
 0x2a1   : > { %v4653_v49 = vmul.f32 0.5, %v1662_v51  ;;  %v1722_v21 = vmax.f32 %v4610_v16, 0.0  ;;  %v1723_v8 = vmax.f32 %v4613_v58, 0.0  ;;  %v1724_v28 = vmax.f32 %v4616_v63, 0.0 }
 0x2a2   : > { %v3107_v25 = vpop.eup %3106  ;;  %v4658_v7 = vmul.f32 0.5, %v1663_v50  ;;  %v1725_v43 = vmax.f32 %v4619_v13, 0.0  ;;  %v1726_v33 = vmax.f32 %v4622_v40, 0.0  ;;  %3116 = vpow2.f32 %v1842_v6 }
 0x2a3   : > { %v3109_v59 = vpop.eup %3108  ;;  %3118 = vpow2.f32 %v1844_v44  ;;  %v2008_v11 = vadd.f32 1.0, %v3107_v25  ;;  %v2011_v62 = vmul.f32 -0.5, %v3107_v25  ;;  %v2014_v12 = vand.u32 2147483647, %v3107_v25 }
 0x2a4   : > { %v3111_v47 = vpop.eup %3110  ;;  %3120 = vpow2.f32 %v1846_v29  ;;  %v2017_v19 = vadd.f32 1.0, %v3109_v59  ;;  %v2020_v54 = vmul.f32 -0.5, %v3109_v59  ;;  %v2023_v18 = vand.u32 2147483647, %v3109_v59 }
 0x2a5   : > { %v3113_v5 = vpop.eup %3112  ;;  %v1727_v56 = vmax.f32 %v4625_v38, 0.0  ;;  %3122 = vlog2.f32 %v2008_v11  ;;  %v2012_v0 = vadd.f32 1.0, %v2011_v62  ;;  %v2026_v34 = vadd.f32 1.0, %v3111_v47 }
 0x2a6   : > { %v3115_v52 = vpop.eup %3114  ;;  %vm4663_vm4 = vcmp.lt.f32.partialorder %v2014_v12, 0.0004427343  ;;  %3124 = vlog2.f32 %v2017_v19  ;;  %v2021_v26 = vadd.f32 1.0, %v2020_v54  ;;  %v2029_v55 = vmul.f32 -0.5, %v3111_v47 }
 0x2a7   : > { %vm4667_vm5 = vcmp.lt.f32.partialorder %v2023_v18, 0.0004427343  ;;  %3126 = vlog2.f32 %v2026_v34  ;;  %v2032_v27 = vand.u32 2147483647, %v3111_v47  ;;  %v2035_v46 = vadd.f32 1.0, %v3113_v5 }
 0x2a8   : > { %v3117_v3 = vpop.eup %3116  ;;  %v2013_v31 = vmul.f32 %v3107_v25, %v2012_v0  ;;  %v2030_v22 = vadd.f32 1.0, %v2029_v55  ;;  %v2038_v1 = vmul.f32 -0.5, %v3113_v5  ;;  %v2041_v35 = vand.u32 2147483647, %v3113_v5 }
 0x2a9   : > { %v3119_v45 = vpop.eup %3118  ;;  %v2022_v42 = vmul.f32 %v3109_v59, %v2021_v26  ;;  %3128 = vlog2.f32 %v2035_v46  ;;  %v2044_v36 = vadd.f32 1.0, %v3115_v52  ;;  %v2047_v53 = vmul.f32 -0.5, %v3115_v52 }
 0x2aa   : > { %v3121_v60 = vpop.eup %3120  ;;  %v2031_v41 = vmul.f32 %v3111_v47, %v2030_v22  ;;  %vm4671_vm6 = vcmp.lt.f32.partialorder %v2032_v27, 0.0004427343  ;;  %v2039_v20 = vadd.f32 1.0, %v2038_v1  ;;  %v2050_v51 = vand.u32 2147483647, %v3115_v52 }
 0x2ab   : > { %v3123_v50 = vpop.eup %3122  ;;  %3130 = vlog2.f32 %v2044_v36  ;;  %v2048_v6 = vadd.f32 1.0, %v2047_v53  ;;  %v2053_v44 = vadd.f32 1.0, %v3117_v3  ;;  %v2056_v29 = vmul.f32 -0.5, %v3117_v3 }
 0x2ac   : > { %v3125_v25 = vpop.eup %3124  ;;  %v2010_v11 = vmul.f32 0.6931472, %v3123_v50  ;;  %v2040_v62 = vmul.f32 %v3113_v5, %v2039_v20  ;;  %vm4675_vm7 = vcmp.lt.f32.partialorder %v2041_v35, 0.0004427343  ;;  %v2059_v12 = vand.u32 2147483647, %v3117_v3 }
 0x2ad   : > { %v3127_v47 = vpop.eup %3126  ;;  %v2019_v19 = vmul.f32 0.6931472, %v3125_v25  ;;  %vm4679_vm8 = vcmp.lt.f32.partialorder %v2050_v51, 0.0004427343  ;;  %3132 = vlog2.f32 %v2053_v44  ;;  %v2057_v18 = vadd.f32 1.0, %v2056_v29 }
 0x2ae   : > { %v2016_v0 = vsel %vm4663_vm4, %v2013_v31, %v2010_v11  ;;  %v2028_v34 = vmul.f32 0.6931472, %v3127_v47  ;;  %v2049_v26 = vmul.f32 %v3115_v52, %v2048_v6  ;;  %v2062_v55 = vadd.f32 1.0, %v3119_v45 }
 0x2af   : > { %v3129_v5 = vpop.eup %3128  ;;  %v2025_v27 = vsel %vm4667_vm5, %v2022_v42, %v2019_v19  ;;  %vm4687_vm9 = vcmp.lt.f32.partialorder %v2059_v12, 0.0004427343  ;;  %v2065_v22 = vmul.f32 -0.5, %v3119_v45  ;;  %v2068_v1 = vand.u32 2147483647, %v3119_v45 }
 0x2b0   : > { %v2037_v35 = vmul.f32 0.6931472, %v3129_v5  ;;  %v2058_v36 = vmul.f32 %v3117_v3, %v2057_v18  ;;  %3134 = vlog2.f32 %v2062_v55  ;;  %v2071_v53 = vadd.f32 1.0, %v3121_v60 }
 0x2b1   : > { %v3131_v20 = vpop.eup %3130  ;;  %v2034_v39 = vsel %vm4671_vm6, %v2031_v41, %v2028_v34  ;;  %v2066_v52 = vadd.f32 1.0, %v2065_v22  ;;  %v2074_v31 = vmul.f32 -0.5, %v3121_v60  ;;  %v2077_v51 = vand.u32 2147483647, %v3121_v60 }
 0x2b2   : > { %v2043_v32 = vsel %vm4675_vm7, %v2040_v62, %v2037_v35  ;;  %v2046_v42 = vmul.f32 0.6931472, %v3131_v20  ;;  %3136 = vlog2.f32 %v2071_v53  ;;  %v2168_v50 = vadd.f32 %v2016_v0, %v1720_v30 }
 0x2b3   : > { %v3133_v6 = vpop.eup %3132  ;;  %v2067_v44 = vmul.f32 %v3119_v45, %v2066_v52  ;;  %vm4697_vm2 = vcmp.lt.f32.partialorder %v2068_v1, 0.0004427343  ;;  %v2075_v29 = vadd.f32 1.0, %v2074_v31  ;;  %v2169_v41 = vadd.f32 %v2025_v27, %v1721_v2 }
 0x2b4   : > { %v2052_v57 = vsel %vm4679_vm8, %v2049_v26, %v2046_v42  ;;  %v2055_v25 = vmul.f32 0.6931472, %v3133_v6  ;;  %v2170_v11 = vadd.f32 %v2034_v39, %v1722_v21  ;;  %v2171_v24 = vadd.f32 %v2043_v32, %v1723_v8 }
 0x2b5   : > { %vm4709_vm3 = vcmp.lt.f32.partialorder %v2077_v51, 0.0004427343  ;;  %v2172_v45 = vadd.f32 %v2052_v57, %v1724_v28  ;;  %v2200_v48 = vmul.f32 %v2168_v50, %v4632_v17  ;;  %v2201_v2 = vmul.f32 %v2169_v41, %v4641_v9 }
 0x2b6   : > { %v3135_v62 = vpop.eup %3134  ;;  %v2061_v59 = vsel %vm4687_vm9, %v2058_v36, %v2055_v25  ;;  %v2076_v16 = vmul.f32 %v3121_v60, %v2075_v29  ;;  %v2202_v21 = vmul.f32 %v2170_v11, %v4643_v37  ;;  %v2203_v58 = vmul.f32 %v2171_v24, %v4645_v23 }
 0x2b7   : > { %v2064_v8 = vmul.f32 0.6931472, %v3135_v62  ;;  %v2173_v12 = vadd.f32 %v2061_v59, %v1725_v43  ;;  %v2204_v63 = vmul.f32 %v2172_v45, %v4647_v15  ;;  %v2328_v28 = vsel %vm778_vm1, %v2200_v48, 0.0 }
 0x2b8   : > { %v3137_v17 = vpop.eup %3136  ;;  %v2329_v47 = vrot.slane %v2328_v28, 4  ;;  %v2335_v9 = vsel %vm778_vm1, %v2201_v2, 0.0  ;;  %v2342_v19 = vsel %vm778_vm1, %v2202_v21, 0.0  ;;  %v2349_v60 = vsel %vm778_vm1, %v2203_v58, 0.0 }
 0x2b9   : > { %v2070_v37 = vsel %vm4697_vm2, %v2067_v44, %v2064_v8  ;;  %v2073_v23 = vmul.f32 0.6931472, %v3137_v17  ;;  %v2205_v54 = vmul.f32 %v2173_v12, %v4650_v14  ;;  %v2336_v13 = vrot.slane %v2335_v9, 4 }
 0x2ba   : > { %v2174_v15 = vadd.f32 %v2070_v37, %v1726_v33  ;;  %v2330_v43 = vadd.f32 %v2329_v47, %v2328_v28  ;;  %v2343_v18 = vrot.slane %v2342_v19, 4  ;;  %v2350_v0 = vrot.slane %v2349_v60, 4 }
 0x2bb   : > { %v2079_v34 = vsel %vm4709_vm3, %v2076_v16, %v2073_v23  ;;  %v2337_v26 = vadd.f32 %v2336_v13, %v2335_v9  ;;  %v2356_v55 = vsel %vm778_vm1, %v2204_v63, 0.0  ;;  %v2363_v5 = vsel %vm778_vm1, %v2205_v54, 0.0 }
 0x2bc   : > { %v2175_v27 = vadd.f32 %v2079_v34, %v1727_v56  ;;  %v2206_v14 = vmul.f32 %v2174_v15, %v4653_v49  ;;  %v2331_v46 = vrot.slane %v2330_v43, 2  ;;  %v2344_v22 = vadd.f32 %v2343_v18, %v2342_v19 }
 0x2bd   : > { %v2338_v40 = vrot.slane %v2337_v26, 2  ;;  %v2351_v33 = vadd.f32 %v2350_v0, %v2349_v60  ;;  %v2357_v1 = vrot.slane %v2356_v55, 4  ;;  %v2364_v35 = vrot.slane %v2363_v5, 4 }
 0x2be   : > { %v2207_v36 = vmul.f32 %v2175_v27, %v4658_v7  ;;  %v2332_v53 = vadd.f32 %v2331_v46, %v2330_v43  ;;  %v2345_v20 = vrot.slane %v2344_v22, 2  ;;  %v2370_v39 = vsel %vm778_vm1, %v2206_v14, 0.0 }
 0x2bf   : > { %v2339_v52 = vadd.f32 %v2338_v40, %v2337_v26  ;;  %v2352_v31 = vrot.slane %v2351_v33, 2  ;;  %v2358_v51 = vadd.f32 %v2357_v1, %v2356_v55  ;;  %v2365_v32 = vadd.f32 %v2364_v35, %v2363_v5 }
 0x2c0   : > { %v2333_v38 = vrot.slane %v2332_v53, 1  ;;  %v2346_v56 = vadd.f32 %v2345_v20, %v2344_v22  ;;  %v2371_v42 = vrot.slane %v2370_v39, 4  ;;  %v2377_v49 = vsel %vm778_vm1, %v2207_v36, 0.0 }
 0x2c1   : > { %v2340_v50 = vrot.slane %v2339_v52, 1  ;;  %v2353_v6 = vadd.f32 %v2352_v31, %v2351_v33  ;;  %v2359_v44 = vrot.slane %v2358_v51, 2  ;;  %v2366_v3 = vrot.slane %v2365_v32, 2 }
 0x2c2   : > { %v2334_v29 = vadd.f32 %v2333_v38, %v2332_v53  ;;  %v2347_v41 = vrot.slane %v2346_v56, 1  ;;  %v2372_v7 = vadd.f32 %v2371_v42, %v2370_v39  ;;  %v2378_v57 = vrot.slane %v2377_v49, 4 }
 0x2c3   : > { %v2341_v25 = vadd.f32 %v2340_v50, %v2339_v52  ;;  %v2354_v11 = vrot.slane %v2353_v6, 1  ;;  %v2360_v24 = vadd.f32 %v2359_v44, %v2358_v51  ;;  %v2367_v30 = vadd.f32 %v2366_v3, %v2365_v32 }
 0x2c4   : > { %v2348_v45 = vadd.f32 %v2347_v41, %v2346_v56  ;;  %v2373_v48 = vrot.slane %v2372_v7, 2  ;;  %v2379_v2 = vadd.f32 %v2378_v57, %v2377_v49  ;;  %v2460_v62 = vmul.f32 %v4552_v10, %v2334_v29  ;;  %v3153_v49 = vld [vmem:[%s3676_s20 + $0x10] sm:$0xff] }
 0x2c5   : > { %v2355_v59 = vadd.f32 %v2354_v11, %v2353_v6  ;;  %v2361_v16 = vrot.slane %v2360_v24, 1  ;;  %v2368_v21 = vrot.slane %v2367_v30, 1  ;;  %v2461_v58 = vmul.f32 %v4552_v10, %v2341_v25 }
 0x2c6   : > { %v2622_v8 = vand.u32 2147483647, %v4639_v61  ;;  %v2374_v12 = vadd.f32 %v2373_v48, %v2372_v7  ;;  %v2380_v63 = vrot.slane %v2379_v2, 2  ;;  %v2462_v28 = vmul.f32 %v4552_v10, %v2348_v45 }
 0x2c7   : > { %v2362_v17 = vadd.f32 %v2361_v16, %v2360_v24  ;;  %v2369_v47 = vadd.f32 %v2368_v21, %v2367_v30  ;;  %v2463_v9 = vmul.f32 %v4552_v10, %v2355_v59  ;;  %v2497_v19 = vadd.f32 %v4561_v4, %v2461_v58 }
 0x2c8   : > { %v2375_v60 = vrot.slane %v2374_v12, 1  ;;  %v2381_v37 = vadd.f32 %v2380_v63, %v2379_v2  ;;  %v2496_v23 = vadd.f32 %v4561_v4, %v2460_v62  ;;  %v2498_v54 = vadd.f32 %v4561_v4, %v2462_v28 }
 0x2c9   : > { %v2464_v13 = vmul.f32 %v4552_v10, %v2362_v17  ;;  %v2465_v15 = vmul.f32 %v4552_v10, %v2369_v47  ;;  %v2499_v43 = vadd.f32 %v4561_v4, %v2463_v9  ;;  %v2579_v18 = vrot.slane %v2497_v19, 7 }
 0x2ca   : > { %v2376_v0 = vadd.f32 %v2375_v60, %v2374_v12  ;;  %v2382_v34 = vrot.slane %v2381_v37, 1  ;;  %v2581_v26 = vrot.slane %v2498_v54, 6  ;;  %v2626_v46 = vsub.f32 0.0, %v2622_v8 }
 0x2cb   : > { %v2500_v55 = vadd.f32 %v4561_v4, %v2464_v13  ;;  %v2501_v5 = vadd.f32 %v4561_v4, %v2465_v15  ;;  %v2580_v27 = vsel %vm2545_vm10, %v2579_v18, %v2496_v23  ;;  %v2583_v14 = vrot.slane %v2499_v43, 5 }
 0x2cc   : > { %v2383_v22 = vadd.f32 %v2382_v34, %v2381_v37  ;;  %v2466_v40 = vmul.f32 %v4552_v10, %v2376_v0  ;;  %v2582_v33 = vsel %vm2548_vm11, %v2581_v26, %v2580_v27  ;;  %v2633_v52 = vmul.f32 1.442695, %v2626_v46 }
 0x2cd   : > { %v2584_v1 = vsel %vm2551_vm12, %v2583_v14, %v2582_v33  ;;  %v2585_v35 = vrot.slane %v2500_v55, 4  ;;  %v2587_v20 = vrot.slane %v2501_v5, 3  ;;  %v2618_v8 = vmax.f32 %v4639_v61, 0.0 }
 0x2ce   : > { %v2467_v36 = vmul.f32 %v4552_v10, %v2383_v22  ;;  %v2502_v53 = vadd.f32 %v4561_v4, %v2466_v40  ;;  %3138 = vpow2.f32 %v2633_v52 }
 0x2cf   : > { %v2586_v39 = vsel %vm2554_vm13, %v2585_v35, %v2584_v1 }
 0x2d0   : > { %v2503_v31 = vadd.f32 %v4561_v4, %v2467_v36  ;;  %v2588_v51 = vsel %vm2557_vm14, %v2587_v20, %v2586_v39  ;;  %v2589_v32 = vrot.slane %v2502_v53, 2 }
 0x2d2   : > { %v2590_v38 = vsel %vm2560_vm15, %v2589_v32, %v2588_v51  ;;  %v2591_v56 = vrot.slane %v2503_v31, 1 }
 0x2d4   : > { %v2592_v42 = vsel %vm2563_vm0, %v2591_v56, %v2590_v38  ;;  %v3139_v44 = vpop.eup %3138 }
 0x2d5   : > { %v2613_v50 = vadd.f32 %v3153_v49, %v2592_v42  ;;  %v2662_v29 = vadd.f32 1.0, %v3139_v44  ;;  %v2665_v4 = vmul.f32 -0.5, %v3139_v44  ;;  %v2668_v24 = vand.u32 2147483647, %v3139_v44 }
 0x2d7   : > { %v2621_v10 = vand.u32 2147483647, %v2613_v50  ;;  %v2666_v11 = vadd.f32 1.0, %v2665_v4  ;;  %vm2669_vm10 = vcmp.lt.f32.partialorder %v2668_v24, 0.0004427343  ;;  %v2617_v58 = vmax.f32 %v2613_v50, 0.0 }
 0x2d9   : > { %v2625_v6 = vsub.f32 0.0, %v2621_v10  ;;  %v2667_v62 = vmul.f32 %v3139_v44, %v2666_v11 }
 0x2db   : > { %v2631_v3 = vmul.f32 1.442695, %v2625_v6 }
 0x2dd   : > { %3140 = vpow2.f32 %v2631_v3 }
 0x2de   : > { %3142 = vlog2.f32 %v2662_v29 }
 0x2e3   : > { %v3141_v41 = vpop.eup %3140 }
 0x2e4   : > { %v2653_v7 = vadd.f32 1.0, %v3141_v41  ;;  %v2656_v57 = vmul.f32 -0.5, %v3141_v41  ;;  %v3143_v25 = vpop.eup %3142  ;;  %v2659_v48 = vand.u32 2147483647, %v3141_v41 }
 0x2e5   : > { %v2664_v45 = vmul.f32 0.6931472, %v3143_v25 }
 0x2e6   : > { %3144 = vlog2.f32 %v2653_v7  ;;  %v2657_v30 = vadd.f32 1.0, %v2656_v57  ;;  %vm2660_vm11 = vcmp.lt.f32.partialorder %v2659_v48, 0.0004427343 }
 0x2e7   : > { %v2670_v21 = vsel %vm2669_vm10, %v2667_v62, %v2664_v45 }
 0x2e8   : > { %v2658_v16 = vmul.f32 %v3141_v41, %v2657_v30  ;;  %v2674_v28 = vadd.f32 %v2670_v21, %v2618_v8 }
 0x2ea   : > { %2678 = vst.msk [vmem:[%s4178_s15 + $0x18] sm:$0xff] %vm778_vm1, %v2674_v28 }
 0x2ec   : > { %v3145_v2 = vpop.eup %3144 }
 0x2ed   : > { %v2655_v59 = vmul.f32 0.6931472, %v3145_v2 }
 0x2ef   : > { %v2661_v12 = vsel %vm2660_vm11, %v2658_v16, %v2655_v59 }
 0x2f0   : > { %v2673_v63 = vadd.f32 %v2661_v12, %v2617_v58 }
 0x2f2   : > { %2677 = vst.msk [vmem:[%s4178_s15 + $0x10] sm:$0xff] %vm778_vm1, %v2673_v63 }
 0x2f3 PF: > { %s23_s25 = sadd.s32 1, %s3160_s25  }
 0x2f4   : > { %p20_p5 = scmp.ge.s32.totalorder %s23_s25, 4  }
 0x2f6   :  { %22 = sbr.rel (!%p20_p5) target bundleno = 1 (0x1), region = 108 }

</bundles_post_ra>
